<compile_context>
chip_gen: v7x
topology: tpu7x:2x2x1
jax: 0.10.0
libtpu: 0.0.40
codegen_flags: <defaults>
</compile_context>

<pallas_src>
import functools

import jax
import jax.numpy as jnp
from jax.experimental import pallas as pl
from jax.experimental.pallas import tpu as pltpu


def _round_up(x, m):
    return (x + m - 1) // m * m


# ----------------------------------------------------------------------------
# Pallas kernel: one bidirectional LSTM layer, both directions fused,
# T_CHUNK timesteps per grid step, recurrent state in VMEM scratch.
# Inputs are the precomputed input-projection gates gx = x @ W_ih + b.
# emit_y=False (last layer) drops the per-timestep y outputs entirely.
# ----------------------------------------------------------------------------
def _make_bilstm_kernel(Hp, t_chunk, t_pad, nc, emit_y):
    def kernel(gxf_ref, gxb_ref, len_ref, whhf_ref, whhb_ref, *refs):
        if emit_y:
            (yf_ref, yb_ref, hsum_ref, csum_ref,
             hf_sc, cf_sc, hb_sc, cb_sc) = refs
        else:
            yf_ref = yb_ref = None
            hsum_ref, csum_ref, hf_sc, cf_sc, hb_sc, cb_sc = refs

        c = pl.program_id(0)

        @pl.when(c == 0)
        def _init():
            hf_sc[...] = jnp.zeros_like(hf_sc)
            cf_sc[...] = jnp.zeros_like(cf_sc)
            hb_sc[...] = jnp.zeros_like(hb_sc)
            cb_sc[...] = jnp.zeros_like(cb_sc)

        lens = len_ref[...]          # (B_pad, 1) int32, fetched once
        whh_f = whhf_ref[...]        # (Hp, 4*Hp)
        whh_b = whhb_ref[...]        # (Hp, 4*Hp)

        def cell_step(gx, h, c_st, whh, valid):
            # gates: (B_pad, 4*Hp) = precomputed x-projection + h @ W_hh
            gates = gx + jnp.dot(h, whh, preferred_element_type=jnp.float32)
            # gate order (i, f, o, g): one contiguous sigmoid, one tanh slice
            sig = jax.nn.sigmoid(gates[:, :3 * Hp])
            i_g = sig[:, 0 * Hp:1 * Hp]
            f_g = sig[:, 1 * Hp:2 * Hp]
            o_g = sig[:, 2 * Hp:3 * Hp]
            g_g = jnp.tanh(gates[:, 3 * Hp:])
            c_new = f_g * c_st + i_g * g_g
            h_new = o_g * jnp.tanh(c_new)
            # Packed-sequence masking: padded steps hold the previous state.
            h_out = jnp.where(valid, h_new, h)
            c_out = jnp.where(valid, c_new, c_st)
            return h_out, c_out

        h_f, c_f = hf_sc[...], cf_sc[...]
        h_b, c_b = hb_sc[...], cb_sc[...]

        t0 = c * t_chunk
        for s in range(t_chunk):                   # fully unrolled, static slices
            t_fwd = t0 + s                         # forward global time index
            t_bwd = (t_pad - 1) - (t0 + s)         # backward-walk original time
            h_f, c_f = cell_step(gxf_ref[s], h_f, c_f, whh_f, t_fwd < lens)
            h_b, c_b = cell_step(gxb_ref[t_chunk - 1 - s], h_b, c_b, whh_b,
                                 t_bwd < lens)
            if emit_y:
                yf_ref[s] = h_f
                # y_b block maps to original-time chunk nc-1-c; write in
                # original time order.
                yb_ref[t_chunk - 1 - s] = h_b

        hf_sc[...] = h_f
        cf_sc[...] = c_f
        hb_sc[...] = h_b
        cb_sc[...] = c_b

        @pl.when(c == nc - 1)
        def _finalize():
            # Module sums the two directions' final states.
            hsum_ref[...] = h_f + h_b
            csum_ref[...] = c_f + c_b

    return kernel


def _bilstm_layer(gx, lens2d, w_hh_f, w_hh_b, *, Hp, t_chunk, emit_y):
    """One bidirectional LSTM layer over the whole (masked) padded sequence.

    gx:      (T_pad, B_pad, 8*Hp) f32 — precomputed x @ W_ih + b for both dirs
             (forward gates in [:4Hp], backward gates in [4Hp:]).
    lens2d:  (B_pad, 1) int32 sequence lengths.
    w_hh_*:  (Hp, 4*Hp) f32 recurrent weights.
    Returns y_f, y_b: (T_pad, B_pad, Hp) (or None, None if emit_y=False);
            h_sum, c_sum: (B_pad, Hp).
    """
    T_pad, B_pad, _ = gx.shape
    G = 4 * Hp
    nc = T_pad // t_chunk

    in_specs = [
        # forward half of gx, chunk c
        pl.BlockSpec((t_chunk, B_pad, G), lambda c: (c, 0, 0)),
        # backward half of gx, chunk nc-1-c (same HBM array, other lane half)
        pl.BlockSpec((t_chunk, B_pad, G), lambda c: (nc - 1 - c, 0, 1)),
        # lengths: constant index map -> fetched once
        pl.BlockSpec((B_pad, 1), lambda c: (0, 0)),
        pl.BlockSpec((Hp, G), lambda c: (0, 0)),
        pl.BlockSpec((Hp, G), lambda c: (0, 0)),
    ]
    state_specs = [pl.BlockSpec((B_pad, Hp), lambda c: (0, 0)),
                   pl.BlockSpec((B_pad, Hp), lambda c: (0, 0))]
    state_shapes = (jax.ShapeDtypeStruct((B_pad, Hp), jnp.float32),
                    jax.ShapeDtypeStruct((B_pad, Hp), jnp.float32))
    if emit_y:
        out_specs = [
            pl.BlockSpec((t_chunk, B_pad, Hp), lambda c: (c, 0, 0)),
            pl.BlockSpec((t_chunk, B_pad, Hp), lambda c: (nc - 1 - c, 0, 0)),
        ] + state_specs
        out_shape = (
            jax.ShapeDtypeStruct((T_pad, B_pad, Hp), jnp.float32),
            jax.ShapeDtypeStruct((T_pad, B_pad, Hp), jnp.float32),
        ) + state_shapes
    else:
        out_specs = state_specs
        out_shape = state_shapes

    grid_spec = pltpu.PrefetchScalarGridSpec(
        num_scalar_prefetch=0,
        grid=(nc,),
        in_specs=in_specs,
        out_specs=out_specs,
        scratch_shapes=[pltpu.VMEM((B_pad, Hp), jnp.float32)] * 4,
    )

    kernel = _make_bilstm_kernel(Hp, t_chunk, T_pad, nc, emit_y)
    outs = pl.pallas_call(
        kernel,
        grid_spec=grid_spec,
        out_shape=out_shape,
        compiler_params=pltpu.CompilerParams(
            dimension_semantics=("arbitrary",)),   # time is sequential
    )(gx, gx, lens2d, w_hh_f, w_hh_b)

    if emit_y:
        y_f, y_b, h_sum, c_sum = outs
    else:
        y_f = y_b = None
        h_sum, c_sum = outs
    return y_f, y_b, h_sum, c_sum


# ----------------------------------------------------------------------------
# Encoder forward (glue around the Pallas kernel)
# ----------------------------------------------------------------------------
@functools.partial(jax.jit, static_argnames=("H", "t_chunk"))
def encoder_forward(params, src, src_lengths, *, H, t_chunk=8):
    Hp = _round_up(H, 128)

    # Embedding lookup is a gather; kept in plain JAX (glue, not the hot path).
    emb = params["embedding"][src]                               # (B, T, E)
    B, T, E = emb.shape
    B_pad = _round_up(max(B, 8), 8)
    T_pad = _round_up(T, t_chunk)

    x = jnp.transpose(emb, (1, 0, 2)).astype(jnp.float32)        # (T, B, E)
    x = jnp.pad(x, ((0, T_pad - T), (0, B_pad - B), (0, 0)))     # (T_pad, B_pad, E)
    lens = jnp.pad(src_lengths.astype(jnp.int32), (0, B_pad - B))
    lens2d = lens[:, None]                                       # (B_pad, 1)

    n_layers = len(params["layers"])
    hiddens, cells = [], []
    y_f = y_b = None
    for li, layer in enumerate(params["layers"]):
        # Hoisted input projection: one big GEMM (both directions at once).
        if li == 0:
            gx = jnp.dot(x.reshape(T_pad * B_pad, E), layer["w_ih_x"],
                         preferred_element_type=jnp.float32)
        else:
            # No y_f/y_b concat: next layer's W_ih is split by input half.
            gx = (jnp.dot(y_f.reshape(T_pad * B_pad, Hp), layer["w_ih_yf"],
                          preferred_element_type=jnp.float32)
                  + jnp.dot(y_b.reshape(T_pad * B_pad, Hp), layer["w_ih_yb"],
                            preferred_element_type=jnp.float32))
        gx = (gx + layer["b_both"]).reshape(T_pad, B_pad, 8 * Hp)

        emit_y = li < n_layers - 1     # last layer: skip unused y outputs
        y_f, y_b, h_sum, c_sum = _bilstm_layer(
            gx, lens2d, layer["w_hh_f"], layer["w_hh_b"],
            Hp=Hp, t_chunk=t_chunk, emit_y=emit_y)

        hiddens.append(h_sum[:B, :H])   # drop batch / hidden padding
        cells.append(c_sum[:B, :H])

    hidden = jnp.stack(hiddens, axis=0)   # (num_layers, B, H)
    cell = jnp.stack(cells, axis=0)       # (num_layers, B, H)
    return hidden, cell


# ----------------------------------------------------------------------------
# Parameter init (PyTorch-layout "raw" params) and kernel-layout preparation
# ----------------------------------------------------------------------------
def init_raw_params(key, vocab, E, H, L):
    raw = {"lstm": []}
    key, ek = jax.random.split(key)
    raw["embedding"] = jax.random.normal(ek, (vocab, E), jnp.float32)
    bound = 1.0 / float(H) ** 0.5
    d_in = E
    for _ in range(L):
        layer = {}
        for tag in ("f", "b"):
            key, k1, k2, k3, k4 = jax.random.split(key, 5)
            layer[f"w_ih_{tag}"] = jax.random.uniform(
                k1, (4 * H, d_in), jnp.float32, -bound, bound)
            layer[f"w_hh_{tag}"] = jax.random.uniform(
                k2, (4 * H, H), jnp.float32, -bound, bound)
            layer[f"b_ih_{tag}"] = jax.random.uniform(
                k3, (4 * H,), jnp.float32, -bound, bound)
            layer[f"b_hh_{tag}"] = jax.random.uniform(
                k4, (4 * H,), jnp.float32, -bound, bound)
        raw["lstm"].append(layer)
        d_in = 2 * H   # next layer consumes both directions' outputs
    return raw


def _reorder_pad_gate_cols(w, H, Hp):
    """(..., 4H) in PyTorch gate order (i,f,g,o) -> (..., 4Hp) in (i,f,o,g),
    each gate block zero-padded H -> Hp (zeros keep padded units at 0)."""
    i, f, g, o = (w[..., k * H:(k + 1) * H] for k in range(4))
    pad_width = [(0, 0)] * (w.ndim - 1) + [(0, Hp - H)]
    pad = lambda a: jnp.pad(a, pad_width)
    return jnp.concatenate([pad(i), pad(f), pad(o), pad(g)], axis=-1)


def prepare_params(raw, H):
    """Convert PyTorch-layout params into the padded kernel layout."""
    Hp = _round_up(H, 128)
    layers = []
    for li, lyr in enumerate(raw["lstm"]):
        per_dir = {}
        for tag in ("f", "b"):
            w_ih_t = _reorder_pad_gate_cols(lyr[f"w_ih_{tag}"].T, H, Hp)  # (D_in, 4Hp)
            w_hh_t = _reorder_pad_gate_cols(lyr[f"w_hh_{tag}"].T, H, Hp)  # (H, 4Hp)
            w_hh_t = jnp.pad(w_hh_t, ((0, Hp - H), (0, 0)))               # (Hp, 4Hp)
            b = _reorder_pad_gate_cols(
                lyr[f"b_ih_{tag}"] + lyr[f"b_hh_{tag}"], H, Hp)           # (4Hp,)
            per_dir[tag] = (w_ih_t, w_hh_t, b)

        entry = {
            "w_hh_f": per_dir["f"][1],
            "w_hh_b": per_dir["b"][1],
            "b_both": jnp.concatenate([per_dir["f"][2], per_dir["b"][2]]),  # (8Hp,)
        }
        if li == 0:
            entry["w_ih_x"] = jnp.concatenate(
                [per_dir["f"][0], per_dir["b"][0]], axis=-1)               # (E, 8Hp)
        else:
            def split_pad(w):   # w: (2H, 4Hp) -> rows for y_f / y_b, padded to Hp
                a = jnp.pad(w[:H], ((0, Hp - H), (0, 0)))
                b_ = jnp.pad(w[H:], ((0, Hp - H), (0, 0)))
                return a, b_
            af, bf = split_pad(per_dir["f"][0])
            ab, bb = split_pad(per_dir["b"][0])
            entry["w_ih_yf"] = jnp.concatenate([af, ab], axis=-1)          # (Hp, 8Hp)
            entry["w_ih_yb"] = jnp.concatenate([bf, bb], axis=-1)          # (Hp, 8Hp)
        layers.append(entry)
    return {"embedding": raw["embedding"], "layers": layers}


# ----------------------------------------------------------------------------
# Pure-JAX reference (PyTorch semantics, unpadded) for correctness check
# ----------------------------------------------------------------------------
def _lstm_dir_ref(x, mask, w_ih, w_hh, b_ih, b_hh, reverse):
    T, B, _ = x.shape
    H = w_hh.shape[1]
    w_ih_t, w_hh_t = w_ih.T, w_hh.T
    bias = (b_ih + b_hh)[None, :]
    h = jnp.zeros((B, H), jnp.float32)
    c = jnp.zeros((B, H), jnp.float32)
    ys = [None] * T
    order = range(T - 1, -1, -1) if reverse else range(T)
    for t in order:
        gates = x[t] @ w_ih_t + h @ w_hh_t + bias
        i = jax.nn.sigmoid(gates[:, :H])
        f = jax.nn.sigmoid(gates[:, H:2 * H])
        g = jnp.tanh(gates[:, 2 * H:3 * H])
        o = jax.nn.sigmoid(gates[:, 3 * H:])
        c_new = f * c + i * g
        h_new = o * jnp.tanh(c_new)
        m = mask[t]
        h = m * h_new + (1.0 - m) * h
        c = m * c_new + (1.0 - m) * c
        ys[t] = h
    return jnp.stack(ys, 0), h, c


def encoder_forward_ref(raw, src, src_lengths):
    emb = raw["embedding"][src]
    x = jnp.transpose(emb, (1, 0, 2)).astype(jnp.float32)
    T, B, _ = x.shape
    mask = (jnp.arange(T)[:, None] < src_lengths[None, :]).astype(jnp.float32)[:, :, None]
    hiddens, cells = [], []
    layer_in = x
    for lyr in raw["lstm"]:
        y_f, h_f, c_f = _lstm_dir_ref(layer_in, mask, lyr["w_ih_f"], lyr["w_hh_f"],
                                      lyr["b_ih_f"], lyr["b_hh_f"], False)
        y_b, h_b, c_b = _lstm_dir_ref(layer_in, mask, lyr["w_ih_b"], lyr["w_hh_b"],
                                      lyr["b_ih_b"], lyr["b_hh_b"], True)
        layer_in = jnp.concatenate([y_f, y_b], axis=-1)
        hiddens.append(h_f + h_b)
        cells.append(c_f + c_b)
    return jnp.stack(hiddens, 0), jnp.stack(cells, 0)


if __name__ == "__main__":
    # Small shapes consistent with the module (vocab, E, H scaled down,
    # num_layers=3 as in the spec).
    VOCAB, E, H, L = 50, 20, 32, 3
    B, T = 6, 10          # B padded to 8, H padded to 128, T padded to 12 inside
    T_CHUNK = 4

    key = jax.random.PRNGKey(0)
    raw = init_raw_params(key, VOCAB, E, H, L)
    params = prepare_params(raw, H)

    key_src, _ = jax.random.split(jax.random.PRNGKey(0))
    src = jax.random.randint(key_src, (B, T), 0, VOCAB, dtype=jnp.int32)
    src_lengths = jnp.array([10, 7, 3, 6, 1, 9], dtype=jnp.int32)  # unsorted ok

    hidden, cell = encoder_forward(params, src, src_lengths, H=H, t_chunk=T_CHUNK)
    jax.block_until_ready((hidden, cell))

    # Validate against the pure-JAX reference.
    hidden_ref, cell_ref = encoder_forward_ref(raw, src, src_lengths)
    assert hidden.shape == (L, B, H) and cell.shape == (L, B, H)
    assert jnp.allclose(hidden, hidden_ref, atol=1e-4, rtol=1e-4)
    assert jnp.allclose(cell, cell_ref, atol=1e-4, rtol=1e-4)

    # TODO(synk): bf16 weight/activation casting (v6e/v7x) and a 2-TensorCore
    # per-direction split (v7x megacore) were left out to keep exact f32 parity
    # with the reference and good latency on single-core chips (v5e/v6e).
    print("KERNEL_OK")
</pallas_src>

<mosaic_0001>
module attributes {stable_mosaic.version = 11 : i64} {
  func.func @kernel(%arg0: i32, %arg1: memref<4x8x512xf32, #tpu.memory_space<vmem>>, %arg2: memref<4x8x512xf32, #tpu.memory_space<vmem>>, %arg3: memref<8x1xi32, #tpu.memory_space<vmem>>, %arg4: memref<128x512xf32, #tpu.memory_space<vmem>>, %arg5: memref<128x512xf32, #tpu.memory_space<vmem>>, %arg6: memref<4x8x128xf32, #tpu.memory_space<vmem>>, %arg7: memref<4x8x128xf32, #tpu.memory_space<vmem>>, %arg8: memref<8x128xf32, #tpu.memory_space<vmem>>, %arg9: memref<8x128xf32, #tpu.memory_space<vmem>>, %arg10: memref<8x128xf32, #tpu.memory_space<vmem>>, %arg11: memref<8x128xf32, #tpu.memory_space<vmem>>, %arg12: memref<8x128xf32, #tpu.memory_space<vmem>>, %arg13: memref<8x128xf32, #tpu.memory_space<vmem>>) attributes {dimension_semantics = [#tpu.dimension_semantics<arbitrary>], iteration_bounds = array<i64: 3>, scalar_prefetch = 0 : i64, scratch_operands = 4 : i64, tpu.core_type = #tpu.core_type<tc>, window_params = [{transform_indices = @transform_0, window_bounds = array<i64: 4, 8, 512>}, {transform_indices = @transform_1, window_bounds = array<i64: 4, 8, 512>}, {pipeline_mode = #tpu.pipeline_mode<synchronous>, transform_indices = @transform_2, window_bounds = array<i64: 8, 1>}, {pipeline_mode = #tpu.pipeline_mode<synchronous>, transform_indices = @transform_3, window_bounds = array<i64: 128, 512>}, {pipeline_mode = #tpu.pipeline_mode<synchronous>, transform_indices = @transform_4, window_bounds = array<i64: 128, 512>}, {transform_indices = @transform_5, window_bounds = array<i64: 4, 8, 128>}, {transform_indices = @transform_6, window_bounds = array<i64: 4, 8, 128>}, {pipeline_mode = #tpu.pipeline_mode<synchronous>, transform_indices = @transform_7, window_bounds = array<i64: 8, 128>}, {pipeline_mode = #tpu.pipeline_mode<synchronous>, transform_indices = @transform_8, window_bounds = array<i64: 8, 128>}]} {
    %c0_i32 = arith.constant 0 : i32
    %0 = arith.cmpi eq, %arg0, %c0_i32 : i32
    %1 = arith.extui %0 : i1 to i32
    %c0_i32_0 = arith.constant 0 : i32
    %2 = arith.cmpi ne, %1, %c0_i32_0 : i32
    scf.if %2 {
      %cst_92 = arith.constant 0.000000e+00 : f32
      %278 = vector.broadcast %cst_92 : f32 to vector<8x128xf32>
      %c0_93 = arith.constant 0 : index
      %c0_94 = arith.constant 0 : index
      %279 = vector.load %arg10[%c0_93, %c0_94] : memref<8x128xf32, #tpu.memory_space<vmem>>, vector<8x128xf32>
      tpu.vector_store %arg10[%c0_93, %c0_94], %278 {strides = array<i32>} : memref<8x128xf32, #tpu.memory_space<vmem>>, vector<8x128xf32>,
      %cst_95 = arith.constant 0.000000e+00 : f32
      %280 = vector.broadcast %cst_95 : f32 to vector<8x128xf32>
      %c0_96 = arith.constant 0 : index
      %c0_97 = arith.constant 0 : index
      %281 = vector.load %arg11[%c0_96, %c0_97] : memref<8x128xf32, #tpu.memory_space<vmem>>, vector<8x128xf32>
      tpu.vector_store %arg11[%c0_96, %c0_97], %280 {strides = array<i32>} : memref<8x128xf32, #tpu.memory_space<vmem>>, vector<8x128xf32>,
      %cst_98 = arith.constant 0.000000e+00 : f32
      %282 = vector.broadcast %cst_98 : f32 to vector<8x128xf32>
      %c0_99 = arith.constant 0 : index
      %c0_100 = arith.constant 0 : index
      %283 = vector.load %arg12[%c0_99, %c0_100] : memref<8x128xf32, #tpu.memory_space<vmem>>, vector<8x128xf32>
      tpu.vector_store %arg12[%c0_99, %c0_100], %282 {strides = array<i32>} : memref<8x128xf32, #tpu.memory_space<vmem>>, vector<8x128xf32>,
      %cst_101 = arith.constant 0.000000e+00 : f32
      %284 = vector.broadcast %cst_101 : f32 to vector<8x128xf32>
      %c0_102 = arith.constant 0 : index
      %c0_103 = arith.constant 0 : index
      %285 = vector.load %arg13[%c0_102, %c0_103] : memref<8x128xf32, #tpu.memory_space<vmem>>, vector<8x128xf32>
      tpu.vector_store %arg13[%c0_102, %c0_103], %284 {strides = array<i32>} : memref<8x128xf32, #tpu.memory_space<vmem>>, vector<8x128xf32>,
    } else {
    }
    %c0 = arith.constant 0 : index
    %c0_1 = arith.constant 0 : index
    %3 = vector.load %arg3[%c0, %c0_1] : memref<8x1xi32, #tpu.memory_space<vmem>>, vector<8x1xi32>
    %c0_2 = arith.constant 0 : index
    %c0_3 = arith.constant 0 : index
    %4 = vector.load %arg4[%c0_2, %c0_3] : memref<128x512xf32, #tpu.memory_space<vmem>>, vector<128x512xf32>
    %c0_4 = arith.constant 0 : index
    %c0_5 = arith.constant 0 : index
    %5 = vector.load %arg5[%c0_4, %c0_5] : memref<128x512xf32, #tpu.memory_space<vmem>>, vector<128x512xf32>
    %c0_6 = arith.constant 0 : index
    %c0_7 = arith.constant 0 : index
    %6 = vector.load %arg10[%c0_6, %c0_7] : memref<8x128xf32, #tpu.memory_space<vmem>>, vector<8x128xf32>
    %c0_8 = arith.constant 0 : index
    %c0_9 = arith.constant 0 : index
    %7 = vector.load %arg11[%c0_8, %c0_9] : memref<8x128xf32, #tpu.memory_space<vmem>>, vector<8x128xf32>
    %c0_10 = arith.constant 0 : index
    %c0_11 = arith.constant 0 : index
    %8 = vector.load %arg12[%c0_10, %c0_11] : memref<8x128xf32, #tpu.memory_space<vmem>>, vector<8x128xf32>
    %c0_12 = arith.constant 0 : index
    %c0_13 = arith.constant 0 : index
    %9 = vector.load %arg13[%c0_12, %c0_13] : memref<8x128xf32, #tpu.memory_space<vmem>>, vector<8x128xf32>
    %c4_i32 = arith.constant 4 : i32
    %10 = arith.muli %arg0, %c4_i32 : i32
    %c0_i32_14 = arith.constant 0 : i32
    %11 = arith.addi %10, %c0_i32_14 : i32
    %c0_i32_15 = arith.constant 0 : i32
    %12 = arith.addi %10, %c0_i32_15 : i32
    %c11_i32 = arith.constant 11 : i32
    %13 = arith.subi %c11_i32, %12 : i32
    %c0_16 = arith.constant 0 : index
    %c0_17 = arith.constant 0 : index
    %c0_18 = arith.constant 0 : index
    %14 = vector.load %arg1[%c0_16, %c0_17, %c0_18] : memref<4x8x512xf32, #tpu.memory_space<vmem>>, vector<1x8x512xf32>
    %15 = vector.shape_cast %14 : vector<1x8x512xf32> to vector<8x512xf32>
    %16 = vector.broadcast %11 : i32 to vector<8x1xi32>
    %17 = arith.cmpi slt, %16, %3 : vector<8x1xi32>
    %cst = arith.constant dense<0.000000e+00> : vector<8x512xf32>
    %18 = tpu.matmul %6, %4, %cst {dimension_numbers = #tpu.dot_dimension_numbers<[1], [0], [0], [1], [0, 0, 1, 1], [], []>} : vector<8x128xf32>, vector<128x512xf32>, vector<8x512xf32> -> vector<8x512xf32>
    %19 = arith.addf %15, %18 : vector<8x512xf32>
    %20 = vector.extract_strided_slice %19 {offsets = [0, 0], sizes = [8, 384], strides = [1, 1]} : vector<8x512xf32> to vector<8x384xf32>
    %21 = arith.negf %20 : vector<8x384xf32>
    %22 = math.exp %21 : vector<8x384xf32>
    %cst_19 = arith.constant 1.000000e+00 : f32
    %23 = vector.broadcast %cst_19 : f32 to vector<8x384xf32>
    %24 = arith.addf %23, %22 : vector<8x384xf32>
    %25 = arith.divf %23, %24 : vector<8x384xf32>
    %26 = vector.extract_strided_slice %25 {offsets = [0, 0], sizes = [8, 128], strides = [1, 1]} : vector<8x384xf32> to vector<8x128xf32>
    %27 = vector.extract_strided_slice %25 {offsets = [0, 128], sizes = [8, 128], strides = [1, 1]} : vector<8x384xf32> to vector<8x128xf32>
    %28 = vector.extract_strided_slice %25 {offsets = [0, 256], sizes = [8, 128], strides = [1, 1]} : vector<8x384xf32> to vector<8x128xf32>
    %29 = vector.extract_strided_slice %19 {offsets = [0, 384], sizes = [8, 128], strides = [1, 1]} : vector<8x512xf32> to vector<8x128xf32>
    %30 = math.tanh %29 : vector<8x128xf32>
    %31 = arith.mulf %27, %7 : vector<8x128xf32>
    %32 = arith.mulf %26, %30 : vector<8x128xf32>
    %33 = arith.addf %31, %32 : vector<8x128xf32>
    %34 = math.tanh %33 : vector<8x128xf32>
    %35 = arith.mulf %28, %34 : vector<8x128xf32>
    %36 = vector.shape_cast %17 : vector<8x1xi1> to vector<8x1xi1>
    %37 = vector.broadcast %36 : vector<8x1xi1> to vector<8x128xi1>
    %38 = arith.select %37, %35, %6 : vector<8x128xi1>, vector<8x128xf32>
    %39 = vector.shape_cast %17 : vector<8x1xi1> to vector<8x1xi1>
    %40 = vector.broadcast %39 : vector<8x1xi1> to vector<8x128xi1>
    %41 = arith.select %40, %33, %7 : vector<8x128xi1>, vector<8x128xf32>
    %c3 = arith.constant 3 : index
    %c0_20 = arith.constant 0 : index
    %c0_21 = arith.constant 0 : index
    %42 = vector.load %arg2[%c3, %c0_20, %c0_21] : memref<4x8x512xf32, #tpu.memory_space<vmem>>, vector<1x8x512xf32>
    %43 = vector.shape_cast %42 : vector<1x8x512xf32> to vector<8x512xf32>
    %44 = vector.broadcast %13 : i32 to vector<8x1xi32>
    %45 = arith.cmpi slt, %44, %3 : vector<8x1xi32>
    %cst_22 = arith.constant dense<0.000000e+00> : vector<8x512xf32>
    %46 = tpu.matmul %8, %5, %cst_22 {dimension_numbers = #tpu.dot_dimension_numbers<[1], [0], [0], [1], [0, 0, 1, 1], [], []>} : vector<8x128xf32>, vector<128x512xf32>, vector<8x512xf32> -> vector<8x512xf32>
    %47 = arith.addf %43, %46 : vector<8x512xf32>
    %48 = vector.extract_strided_slice %47 {offsets = [0, 0], sizes = [8, 384], strides = [1, 1]} : vector<8x512xf32> to vector<8x384xf32>
    %49 = arith.negf %48 : vector<8x384xf32>
    %50 = math.exp %49 : vector<8x384xf32>
    %cst_23 = arith.constant 1.000000e+00 : f32
    %51 = vector.broadcast %cst_23 : f32 to vector<8x384xf32>
    %52 = arith.addf %51, %50 : vector<8x384xf32>
    %53 = arith.divf %51, %52 : vector<8x384xf32>
    %54 = vector.extract_strided_slice %53 {offsets = [0, 0], sizes = [8, 128], strides = [1, 1]} : vector<8x384xf32> to vector<8x128xf32>
    %55 = vector.extract_strided_slice %53 {offsets = [0, 128], sizes = [8, 128], strides = [1, 1]} : vector<8x384xf32> to vector<8x128xf32>
    %56 = vector.extract_strided_slice %53 {offsets = [0, 256], sizes = [8, 128], strides = [1, 1]} : vector<8x384xf32> to vector<8x128xf32>
    %57 = vector.extract_strided_slice %47 {offsets = [0, 384], sizes = [8, 128], strides = [1, 1]} : vector<8x512xf32> to vector<8x128xf32>
    %58 = math.tanh %57 : vector<8x128xf32>
    %59 = arith.mulf %55, %9 : vector<8x128xf32>
    %60 = arith.mulf %54, %58 : vector<8x128xf32>
    %61 = arith.addf %59, %60 : vector<8x128xf32>
    %62 = math.tanh %61 : vector<8x128xf32>
    %63 = arith.mulf %56, %62 : vector<8x128xf32>
    %64 = vector.shape_cast %45 : vector<8x1xi1> to vector<8x1xi1>
    %65 = vector.broadcast %64 : vector<8x1xi1> to vector<8x128xi1>
    %66 = arith.select %65, %63, %8 : vector<8x128xi1>, vector<8x128xf32>
    %67 = vector.shape_cast %45 : vector<8x1xi1> to vector<8x1xi1>
    %68 = vector.broadcast %67 : vector<8x1xi1> to vector<8x128xi1>
    %69 = arith.select %68, %61, %9 : vector<8x128xi1>, vector<8x128xf32>
    %c0_24 = arith.constant 0 : index
    %c0_25 = arith.constant 0 : index
    %c0_26 = arith.constant 0 : index
    %70 = vector.load %arg6[%c0_24, %c0_25, %c0_26] : memref<4x8x128xf32, #tpu.memory_space<vmem>>, vector<1x8x128xf32>
    %71 = vector.shape_cast %70 : vector<1x8x128xf32> to vector<8x128xf32>
    %72 = vector.shape_cast %38 : vector<8x128xf32> to vector<1x8x128xf32>
    tpu.vector_store %arg6[%c0_24, %c0_25, %c0_26], %72 {strides = array<i32>} : memref<4x8x128xf32, #tpu.memory_space<vmem>>, vector<1x8x128xf32>,
    %c3_27 = arith.constant 3 : index
    %c0_28 = arith.constant 0 : index
    %c0_29 = arith.constant 0 : index
    %73 = vector.load %arg7[%c3_27, %c0_28, %c0_29] : memref<4x8x128xf32, #tpu.memory_space<vmem>>, vector<1x8x128xf32>
    %74 = vector.shape_cast %73 : vector<1x8x128xf32> to vector<8x128xf32>
    %75 = vector.shape_cast %66 : vector<8x128xf32> to vector<1x8x128xf32>
    tpu.vector_store %arg7[%c3_27, %c0_28, %c0_29], %75 {strides = array<i32>} : memref<4x8x128xf32, #tpu.memory_space<vmem>>, vector<1x8x128xf32>,
    %c1_i32 = arith.constant 1 : i32
    %76 = arith.addi %10, %c1_i32 : i32
    %c1_i32_30 = arith.constant 1 : i32
    %77 = arith.addi %10, %c1_i32_30 : i32
    %c11_i32_31 = arith.constant 11 : i32
    %78 = arith.subi %c11_i32_31, %77 : i32
    %c1 = arith.constant 1 : index
    %c0_32 = arith.constant 0 : index
    %c0_33 = arith.constant 0 : index
    %79 = vector.load %arg1[%c1, %c0_32, %c0_33] : memref<4x8x512xf32, #tpu.memory_space<vmem>>, vector<1x8x512xf32>
    %80 = vector.shape_cast %79 : vector<1x8x512xf32> to vector<8x512xf32>
    %81 = vector.broadcast %76 : i32 to vector<8x1xi32>
    %82 = arith.cmpi slt, %81, %3 : vector<8x1xi32>
    %cst_34 = arith.constant dense<0.000000e+00> : vector<8x512xf32>
    %83 = tpu.matmul %38, %4, %cst_34 {dimension_numbers = #tpu.dot_dimension_numbers<[1], [0], [0], [1], [0, 0, 1, 1], [], []>} : vector<8x128xf32>, vector<128x512xf32>, vector<8x512xf32> -> vector<8x512xf32>
    %84 = arith.addf %80, %83 : vector<8x512xf32>
    %85 = vector.extract_strided_slice %84 {offsets = [0, 0], sizes = [8, 384], strides = [1, 1]} : vector<8x512xf32> to vector<8x384xf32>
    %86 = arith.negf %85 : vector<8x384xf32>
    %87 = math.exp %86 : vector<8x384xf32>
    %cst_35 = arith.constant 1.000000e+00 : f32
    %88 = vector.broadcast %cst_35 : f32 to vector<8x384xf32>
    %89 = arith.addf %88, %87 : vector<8x384xf32>
    %90 = arith.divf %88, %89 : vector<8x384xf32>
    %91 = vector.extract_strided_slice %90 {offsets = [0, 0], sizes = [8, 128], strides = [1, 1]} : vector<8x384xf32> to vector<8x128xf32>
    %92 = vector.extract_strided_slice %90 {offsets = [0, 128], sizes = [8, 128], strides = [1, 1]} : vector<8x384xf32> to vector<8x128xf32>
    %93 = vector.extract_strided_slice %90 {offsets = [0, 256], sizes = [8, 128], strides = [1, 1]} : vector<8x384xf32> to vector<8x128xf32>
    %94 = vector.extract_strided_slice %84 {offsets = [0, 384], sizes = [8, 128], strides = [1, 1]} : vector<8x512xf32> to vector<8x128xf32>
    %95 = math.tanh %94 : vector<8x128xf32>
    %96 = arith.mulf %92, %41 : vector<8x128xf32>
    %97 = arith.mulf %91, %95 : vector<8x128xf32>
    %98 = arith.addf %96, %97 : vector<8x128xf32>
    %99 = math.tanh %98 : vector<8x128xf32>
    %100 = arith.mulf %93, %99 : vector<8x128xf32>
    %101 = vector.shape_cast %82 : vector<8x1xi1> to vector<8x1xi1>
    %102 = vector.broadcast %101 : vector<8x1xi1> to vector<8x128xi1>
    %103 = arith.select %102, %100, %38 : vector<8x128xi1>, vector<8x128xf32>
    %104 = vector.shape_cast %82 : vector<8x1xi1> to vector<8x1xi1>
    %105 = vector.broadcast %104 : vector<8x1xi1> to vector<8x128xi1>
    %106 = arith.select %105, %98, %41 : vector<8x128xi1>, vector<8x128xf32>
    %c2 = arith.constant 2 : index
    %c0_36 = arith.constant 0 : index
    %c0_37 = arith.constant 0 : index
    %107 = vector.load %arg2[%c2, %c0_36, %c0_37] : memref<4x8x512xf32, #tpu.memory_space<vmem>>, vector<1x8x512xf32>
    %108 = vector.shape_cast %107 : vector<1x8x512xf32> to vector<8x512xf32>
    %109 = vector.broadcast %78 : i32 to vector<8x1xi32>
    %110 = arith.cmpi slt, %109, %3 : vector<8x1xi32>
    %cst_38 = arith.constant dense<0.000000e+00> : vector<8x512xf32>
    %111 = tpu.matmul %66, %5, %cst_38 {dimension_numbers = #tpu.dot_dimension_numbers<[1], [0], [0], [1], [0, 0, 1, 1], [], []>} : vector<8x128xf32>, vector<128x512xf32>, vector<8x512xf32> -> vector<8x512xf32>
    %112 = arith.addf %108, %111 : vector<8x512xf32>
    %113 = vector.extract_strided_slice %112 {offsets = [0, 0], sizes = [8, 384], strides = [1, 1]} : vector<8x512xf32> to vector<8x384xf32>
    %114 = arith.negf %113 : vector<8x384xf32>
    %115 = math.exp %114 : vector<8x384xf32>
    %cst_39 = arith.constant 1.000000e+00 : f32
    %116 = vector.broadcast %cst_39 : f32 to vector<8x384xf32>
    %117 = arith.addf %116, %115 : vector<8x384xf32>
    %118 = arith.divf %116, %117 : vector<8x384xf32>
    %119 = vector.extract_strided_slice %118 {offsets = [0, 0], sizes = [8, 128], strides = [1, 1]} : vector<8x384xf32> to vector<8x128xf32>
    %120 = vector.extract_strided_slice %118 {offsets = [0, 128], sizes = [8, 128], strides = [1, 1]} : vector<8x384xf32> to vector<8x128xf32>
    %121 = vector.extract_strided_slice %118 {offsets = [0, 256], sizes = [8, 128], strides = [1, 1]} : vector<8x384xf32> to vector<8x128xf32>
    %122 = vector.extract_strided_slice %112 {offsets = [0, 384], sizes = [8, 128], strides = [1, 1]} : vector<8x512xf32> to vector<8x128xf32>
    %123 = math.tanh %122 : vector<8x128xf32>
    %124 = arith.mulf %120, %69 : vector<8x128xf32>
    %125 = arith.mulf %119, %123 : vector<8x128xf32>
    %126 = arith.addf %124, %125 : vector<8x128xf32>
    %127 = math.tanh %126 : vector<8x128xf32>
    %128 = arith.mulf %121, %127 : vector<8x128xf32>
    %129 = vector.shape_cast %110 : vector<8x1xi1> to vector<8x1xi1>
    %130 = vector.broadcast %129 : vector<8x1xi1> to vector<8x128xi1>
    %131 = arith.select %130, %128, %66 : vector<8x128xi1>, vector<8x128xf32>
    %132 = vector.shape_cast %110 : vector<8x1xi1> to vector<8x1xi1>
    %133 = vector.broadcast %132 : vector<8x1xi1> to vector<8x128xi1>
    %134 = arith.select %133, %126, %69 : vector<8x128xi1>, vector<8x128xf32>
    %c1_40 = arith.constant 1 : index
    %c0_41 = arith.constant 0 : index
    %c0_42 = arith.constant 0 : index
    %135 = vector.load %arg6[%c1_40, %c0_41, %c0_42] : memref<4x8x128xf32, #tpu.memory_space<vmem>>, vector<1x8x128xf32>
    %136 = vector.shape_cast %135 : vector<1x8x128xf32> to vector<8x128xf32>
    %137 = vector.shape_cast %103 : vector<8x128xf32> to vector<1x8x128xf32>
    tpu.vector_store %arg6[%c1_40, %c0_41, %c0_42], %137 {strides = array<i32>} : memref<4x8x128xf32, #tpu.memory_space<vmem>>, vector<1x8x128xf32>,
    %c2_43 = arith.constant 2 : index
    %c0_44 = arith.constant 0 : index
    %c0_45 = arith.constant 0 : index
    %138 = vector.load %arg7[%c2_43, %c0_44, %c0_45] : memref<4x8x128xf32, #tpu.memory_space<vmem>>, vector<1x8x128xf32>
    %139 = vector.shape_cast %138 : vector<1x8x128xf32> to vector<8x128xf32>
    %140 = vector.shape_cast %131 : vector<8x128xf32> to vector<1x8x128xf32>
    tpu.vector_store %arg7[%c2_43, %c0_44, %c0_45], %140 {strides = array<i32>} : memref<4x8x128xf32, #tpu.memory_space<vmem>>, vector<1x8x128xf32>,
    %c2_i32 = arith.constant 2 : i32
    %141 = arith.addi %10, %c2_i32 : i32
    %c2_i32_46 = arith.constant 2 : i32
    %142 = arith.addi %10, %c2_i32_46 : i32
    %c11_i32_47 = arith.constant 11 : i32
    %143 = arith.subi %c11_i32_47, %142 : i32
    %c2_48 = arith.constant 2 : index
    %c0_49 = arith.constant 0 : index
    %c0_50 = arith.constant 0 : index
    %144 = vector.load %arg1[%c2_48, %c0_49, %c0_50] : memref<4x8x512xf32, #tpu.memory_space<vmem>>, vector<1x8x512xf32>
    %145 = vector.shape_cast %144 : vector<1x8x512xf32> to vector<8x512xf32>
    %146 = vector.broadcast %141 : i32 to vector<8x1xi32>
    %147 = arith.cmpi slt, %146, %3 : vector<8x1xi32>
    %cst_51 = arith.constant dense<0.000000e+00> : vector<8x512xf32>
    %148 = tpu.matmul %103, %4, %cst_51 {dimension_numbers = #tpu.dot_dimension_numbers<[1], [0], [0], [1], [0, 0, 1, 1], [], []>} : vector<8x128xf32>, vector<128x512xf32>, vector<8x512xf32> -> vector<8x512xf32>
    %149 = arith.addf %145, %148 : vector<8x512xf32>
    %150 = vector.extract_strided_slice %149 {offsets = [0, 0], sizes = [8, 384], strides = [1, 1]} : vector<8x512xf32> to vector<8x384xf32>
    %151 = arith.negf %150 : vector<8x384xf32>
    %152 = math.exp %151 : vector<8x384xf32>
    %cst_52 = arith.constant 1.000000e+00 : f32
    %153 = vector.broadcast %cst_52 : f32 to vector<8x384xf32>
    %154 = arith.addf %153, %152 : vector<8x384xf32>
    %155 = arith.divf %153, %154 : vector<8x384xf32>
    %156 = vector.extract_strided_slice %155 {offsets = [0, 0], sizes = [8, 128], strides = [1, 1]} : vector<8x384xf32> to vector<8x128xf32>
    %157 = vector.extract_strided_slice %155 {offsets = [0, 128], sizes = [8, 128], strides = [1, 1]} : vector<8x384xf32> to vector<8x128xf32>
    %158 = vector.extract_strided_slice %155 {offsets = [0, 256], sizes = [8, 128], strides = [1, 1]} : vector<8x384xf32> to vector<8x128xf32>
    %159 = vector.extract_strided_slice %149 {offsets = [0, 384], sizes = [8, 128], strides = [1, 1]} : vector<8x512xf32> to vector<8x128xf32>
    %160 = math.tanh %159 : vector<8x128xf32>
    %161 = arith.mulf %157, %106 : vector<8x128xf32>
    %162 = arith.mulf %156, %160 : vector<8x128xf32>
    %163 = arith.addf %161, %162 : vector<8x128xf32>
    %164 = math.tanh %163 : vector<8x128xf32>
    %165 = arith.mulf %158, %164 : vector<8x128xf32>
    %166 = vector.shape_cast %147 : vector<8x1xi1> to vector<8x1xi1>
    %167 = vector.broadcast %166 : vector<8x1xi1> to vector<8x128xi1>
    %168 = arith.select %167, %165, %103 : vector<8x128xi1>, vector<8x128xf32>
    %169 = vector.shape_cast %147 : vector<8x1xi1> to vector<8x1xi1>
    %170 = vector.broadcast %169 : vector<8x1xi1> to vector<8x128xi1>
    %171 = arith.select %170, %163, %106 : vector<8x128xi1>, vector<8x128xf32>
    %c1_53 = arith.constant 1 : index
    %c0_54 = arith.constant 0 : index
    %c0_55 = arith.constant 0 : index
    %172 = vector.load %arg2[%c1_53, %c0_54, %c0_55] : memref<4x8x512xf32, #tpu.memory_space<vmem>>, vector<1x8x512xf32>
    %173 = vector.shape_cast %172 : vector<1x8x512xf32> to vector<8x512xf32>
    %174 = vector.broadcast %143 : i32 to vector<8x1xi32>
    %175 = arith.cmpi slt, %174, %3 : vector<8x1xi32>
    %cst_56 = arith.constant dense<0.000000e+00> : vector<8x512xf32>
    %176 = tpu.matmul %131, %5, %cst_56 {dimension_numbers = #tpu.dot_dimension_numbers<[1], [0], [0], [1], [0, 0, 1, 1], [], []>} : vector<8x128xf32>, vector<128x512xf32>, vector<8x512xf32> -> vector<8x512xf32>
    %177 = arith.addf %173, %176 : vector<8x512xf32>
    %178 = vector.extract_strided_slice %177 {offsets = [0, 0], sizes = [8, 384], strides = [1, 1]} : vector<8x512xf32> to vector<8x384xf32>
    %179 = arith.negf %178 : vector<8x384xf32>
    %180 = math.exp %179 : vector<8x384xf32>
    %cst_57 = arith.constant 1.000000e+00 : f32
    %181 = vector.broadcast %cst_57 : f32 to vector<8x384xf32>
    %182 = arith.addf %181, %180 : vector<8x384xf32>
    %183 = arith.divf %181, %182 : vector<8x384xf32>
    %184 = vector.extract_strided_slice %183 {offsets = [0, 0], sizes = [8, 128], strides = [1, 1]} : vector<8x384xf32> to vector<8x128xf32>
    %185 = vector.extract_strided_slice %183 {offsets = [0, 128], sizes = [8, 128], strides = [1, 1]} : vector<8x384xf32> to vector<8x128xf32>
    %186 = vector.extract_strided_slice %183 {offsets = [0, 256], sizes = [8, 128], strides = [1, 1]} : vector<8x384xf32> to vector<8x128xf32>
    %187 = vector.extract_strided_slice %177 {offsets = [0, 384], sizes = [8, 128], strides = [1, 1]} : vector<8x512xf32> to vector<8x128xf32>
    %188 = math.tanh %187 : vector<8x128xf32>
    %189 = arith.mulf %185, %134 : vector<8x128xf32>
    %190 = arith.mulf %184, %188 : vector<8x128xf32>
    %191 = arith.addf %189, %190 : vector<8x128xf32>
    %192 = math.tanh %191 : vector<8x128xf32>
    %193 = arith.mulf %186, %192 : vector<8x128xf32>
    %194 = vector.shape_cast %175 : vector<8x1xi1> to vector<8x1xi1>
    %195 = vector.broadcast %194 : vector<8x1xi1> to vector<8x128xi1>
    %196 = arith.select %195, %193, %131 : vector<8x128xi1>, vector<8x128xf32>
    %197 = vector.shape_cast %175 : vector<8x1xi1> to vector<8x1xi1>
    %198 = vector.broadcast %197 : vector<8x1xi1> to vector<8x128xi1>
    %199 = arith.select %198, %191, %134 : vector<8x128xi1>, vector<8x128xf32>
    %c2_58 = arith.constant 2 : index
    %c0_59 = arith.constant 0 : index
    %c0_60 = arith.constant 0 : index
    %200 = vector.load %arg6[%c2_58, %c0_59, %c0_60] : memref<4x8x128xf32, #tpu.memory_space<vmem>>, vector<1x8x128xf32>
    %201 = vector.shape_cast %200 : vector<1x8x128xf32> to vector<8x128xf32>
    %202 = vector.shape_cast %168 : vector<8x128xf32> to vector<1x8x128xf32>
    tpu.vector_store %arg6[%c2_58, %c0_59, %c0_60], %202 {strides = array<i32>} : memref<4x8x128xf32, #tpu.memory_space<vmem>>, vector<1x8x128xf32>,
    %c1_61 = arith.constant 1 : index
    %c0_62 = arith.constant 0 : index
    %c0_63 = arith.constant 0 : index
    %203 = vector.load %arg7[%c1_61, %c0_62, %c0_63] : memref<4x8x128xf32, #tpu.memory_space<vmem>>, vector<1x8x128xf32>
    %204 = vector.shape_cast %203 : vector<1x8x128xf32> to vector<8x128xf32>
    %205 = vector.shape_cast %196 : vector<8x128xf32> to vector<1x8x128xf32>
    tpu.vector_store %arg7[%c1_61, %c0_62, %c0_63], %205 {strides = array<i32>} : memref<4x8x128xf32, #tpu.memory_space<vmem>>, vector<1x8x128xf32>,
    %c3_i32 = arith.constant 3 : i32
    %206 = arith.addi %10, %c3_i32 : i32
    %c3_i32_64 = arith.constant 3 : i32
    %207 = arith.addi %10, %c3_i32_64 : i32
    %c11_i32_65 = arith.constant 11 : i32
    %208 = arith.subi %c11_i32_65, %207 : i32
    %c3_66 = arith.constant 3 : index
    %c0_67 = arith.constant 0 : index
    %c0_68 = arith.constant 0 : index
    %209 = vector.load %arg1[%c3_66, %c0_67, %c0_68] : memref<4x8x512xf32, #tpu.memory_space<vmem>>, vector<1x8x512xf32>
    %210 = vector.shape_cast %209 : vector<1x8x512xf32> to vector<8x512xf32>
    %211 = vector.broadcast %206 : i32 to vector<8x1xi32>
    %212 = arith.cmpi slt, %211, %3 : vector<8x1xi32>
    %cst_69 = arith.constant dense<0.000000e+00> : vector<8x512xf32>
    %213 = tpu.matmul %168, %4, %cst_69 {dimension_numbers = #tpu.dot_dimension_numbers<[1], [0], [0], [1], [0, 0, 1, 1], [], []>} : vector<8x128xf32>, vector<128x512xf32>, vector<8x512xf32> -> vector<8x512xf32>
    %214 = arith.addf %210, %213 : vector<8x512xf32>
    %215 = vector.extract_strided_slice %214 {offsets = [0, 0], sizes = [8, 384], strides = [1, 1]} : vector<8x512xf32> to vector<8x384xf32>
    %216 = arith.negf %215 : vector<8x384xf32>
    %217 = math.exp %216 : vector<8x384xf32>
    %cst_70 = arith.constant 1.000000e+00 : f32
    %218 = vector.broadcast %cst_70 : f32 to vector<8x384xf32>
    %219 = arith.addf %218, %217 : vector<8x384xf32>
    %220 = arith.divf %218, %219 : vector<8x384xf32>
    %221 = vector.extract_strided_slice %220 {offsets = [0, 0], sizes = [8, 128], strides = [1, 1]} : vector<8x384xf32> to vector<8x128xf32>
    %222 = vector.extract_strided_slice %220 {offsets = [0, 128], sizes = [8, 128], strides = [1, 1]} : vector<8x384xf32> to vector<8x128xf32>
    %223 = vector.extract_strided_slice %220 {offsets = [0, 256], sizes = [8, 128], strides = [1, 1]} : vector<8x384xf32> to vector<8x128xf32>
    %224 = vector.extract_strided_slice %214 {offsets = [0, 384], sizes = [8, 128], strides = [1, 1]} : vector<8x512xf32> to vector<8x128xf32>
    %225 = math.tanh %224 : vector<8x128xf32>
    %226 = arith.mulf %222, %171 : vector<8x128xf32>
    %227 = arith.mulf %221, %225 : vector<8x128xf32>
    %228 = arith.addf %226, %227 : vector<8x128xf32>
    %229 = math.tanh %228 : vector<8x128xf32>
    %230 = arith.mulf %223, %229 : vector<8x128xf32>
    %231 = vector.shape_cast %212 : vector<8x1xi1> to vector<8x1xi1>
    %232 = vector.broadcast %231 : vector<8x1xi1> to vector<8x128xi1>
    %233 = arith.select %232, %230, %168 : vector<8x128xi1>, vector<8x128xf32>
    %234 = vector.shape_cast %212 : vector<8x1xi1> to vector<8x1xi1>
    %235 = vector.broadcast %234 : vector<8x1xi1> to vector<8x128xi1>
    %236 = arith.select %235, %228, %171 : vector<8x128xi1>, vector<8x128xf32>
    %c0_71 = arith.constant 0 : index
    %c0_72 = arith.constant 0 : index
    %c0_73 = arith.constant 0 : index
    %237 = vector.load %arg2[%c0_71, %c0_72, %c0_73] : memref<4x8x512xf32, #tpu.memory_space<vmem>>, vector<1x8x512xf32>
    %238 = vector.shape_cast %237 : vector<1x8x512xf32> to vector<8x512xf32>
    %239 = vector.broadcast %208 : i32 to vector<8x1xi32>
    %240 = arith.cmpi slt, %239, %3 : vector<8x1xi32>
    %cst_74 = arith.constant dense<0.000000e+00> : vector<8x512xf32>
    %241 = tpu.matmul %196, %5, %cst_74 {dimension_numbers = #tpu.dot_dimension_numbers<[1], [0], [0], [1], [0, 0, 1, 1], [], []>} : vector<8x128xf32>, vector<128x512xf32>, vector<8x512xf32> -> vector<8x512xf32>
    %242 = arith.addf %238, %241 : vector<8x512xf32>
    %243 = vector.extract_strided_slice %242 {offsets = [0, 0], sizes = [8, 384], strides = [1, 1]} : vector<8x512xf32> to vector<8x384xf32>
    %244 = arith.negf %243 : vector<8x384xf32>
    %245 = math.exp %244 : vector<8x384xf32>
    %cst_75 = arith.constant 1.000000e+00 : f32
    %246 = vector.broadcast %cst_75 : f32 to vector<8x384xf32>
    %247 = arith.addf %246, %245 : vector<8x384xf32>
    %248 = arith.divf %246, %247 : vector<8x384xf32>
    %249 = vector.extract_strided_slice %248 {offsets = [0, 0], sizes = [8, 128], strides = [1, 1]} : vector<8x384xf32> to vector<8x128xf32>
    %250 = vector.extract_strided_slice %248 {offsets = [0, 128], sizes = [8, 128], strides = [1, 1]} : vector<8x384xf32> to vector<8x128xf32>
    %251 = vector.extract_strided_slice %248 {offsets = [0, 256], sizes = [8, 128], strides = [1, 1]} : vector<8x384xf32> to vector<8x128xf32>
    %252 = vector.extract_strided_slice %242 {offsets = [0, 384], sizes = [8, 128], strides = [1, 1]} : vector<8x512xf32> to vector<8x128xf32>
    %253 = math.tanh %252 : vector<8x128xf32>
    %254 = arith.mulf %250, %199 : vector<8x128xf32>
    %255 = arith.mulf %249, %253 : vector<8x128xf32>
    %256 = arith.addf %254, %255 : vector<8x128xf32>
    %257 = math.tanh %256 : vector<8x128xf32>
    %258 = arith.mulf %251, %257 : vector<8x128xf32>
    %259 = vector.shape_cast %240 : vector<8x1xi1> to vector<8x1xi1>
    %260 = vector.broadcast %259 : vector<8x1xi1> to vector<8x128xi1>
    %261 = arith.select %260, %258, %196 : vector<8x128xi1>, vector<8x128xf32>
    %262 = vector.shape_cast %240 : vector<8x1xi1> to vector<8x1xi1>
    %263 = vector.broadcast %262 : vector<8x1xi1> to vector<8x128xi1>
    %264 = arith.select %263, %256, %199 : vector<8x128xi1>, vector<8x128xf32>
    %c3_76 = arith.constant 3 : index
    %c0_77 = arith.constant 0 : index
    %c0_78 = arith.constant 0 : index
    %265 = vector.load %arg6[%c3_76, %c0_77, %c0_78] : memref<4x8x128xf32, #tpu.memory_space<vmem>>, vector<1x8x128xf32>
    %266 = vector.shape_cast %265 : vector<1x8x128xf32> to vector<8x128xf32>
    %267 = vector.shape_cast %233 : vector<8x128xf32> to vector<1x8x128xf32>
    tpu.vector_store %arg6[%c3_76, %c0_77, %c0_78], %267 {strides = array<i32>} : memref<4x8x128xf32, #tpu.memory_space<vmem>>, vector<1x8x128xf32>,
    %c0_79 = arith.constant 0 : index
    %c0_80 = arith.constant 0 : index
    %c0_81 = arith.constant 0 : index
    %268 = vector.load %arg7[%c0_79, %c0_80, %c0_81] : memref<4x8x128xf32, #tpu.memory_space<vmem>>, vector<1x8x128xf32>
    %269 = vector.shape_cast %268 : vector<1x8x128xf32> to vector<8x128xf32>
    %270 = vector.shape_cast %261 : vector<8x128xf32> to vector<1x8x128xf32>
    tpu.vector_store %arg7[%c0_79, %c0_80, %c0_81], %270 {strides = array<i32>} : memref<4x8x128xf32, #tpu.memory_space<vmem>>, vector<1x8x128xf32>,
    %c0_82 = arith.constant 0 : index
    %c0_83 = arith.constant 0 : index
    %271 = vector.load %arg10[%c0_82, %c0_83] : memref<8x128xf32, #tpu.memory_space<vmem>>, vector<8x128xf32>
    tpu.vector_store %arg10[%c0_82, %c0_83], %233 {strides = array<i32>} : memref<8x128xf32, #tpu.memory_space<vmem>>, vector<8x128xf32>,
    %c0_84 = arith.constant 0 : index
    %c0_85 = arith.constant 0 : index
    %272 = vector.load %arg11[%c0_84, %c0_85] : memref<8x128xf32, #tpu.memory_space<vmem>>, vector<8x128xf32>
    tpu.vector_store %arg11[%c0_84, %c0_85], %236 {strides = array<i32>} : memref<8x128xf32, #tpu.memory_space<vmem>>, vector<8x128xf32>,
    %c0_86 = arith.constant 0 : index
    %c0_87 = arith.constant 0 : index
    %273 = vector.load %arg12[%c0_86, %c0_87] : memref<8x128xf32, #tpu.memory_space<vmem>>, vector<8x128xf32>
    tpu.vector_store %arg12[%c0_86, %c0_87], %261 {strides = array<i32>} : memref<8x128xf32, #tpu.memory_space<vmem>>, vector<8x128xf32>,
    %c0_88 = arith.constant 0 : index
    %c0_89 = arith.constant 0 : index
    %274 = vector.load %arg13[%c0_88, %c0_89] : memref<8x128xf32, #tpu.memory_space<vmem>>, vector<8x128xf32>
    tpu.vector_store %arg13[%c0_88, %c0_89], %264 {strides = array<i32>} : memref<8x128xf32, #tpu.memory_space<vmem>>, vector<8x128xf32>,
    %c2_i32_90 = arith.constant 2 : i32
    %275 = arith.cmpi eq, %arg0, %c2_i32_90 : i32
    %276 = arith.extui %275 : i1 to i32
    %c0_i32_91 = arith.constant 0 : i32
    %277 = arith.cmpi ne, %276, %c0_i32_91 : i32
    scf.if %277 {
      %278 = arith.addf %233, %261 : vector<8x128xf32>
      %c0_92 = arith.constant 0 : index
      %c0_93 = arith.constant 0 : index
      %279 = vector.load %arg8[%c0_92, %c0_93] : memref<8x128xf32, #tpu.memory_space<vmem>>, vector<8x128xf32>
      tpu.vector_store %arg8[%c0_92, %c0_93], %278 {strides = array<i32>} : memref<8x128xf32, #tpu.memory_space<vmem>>, vector<8x128xf32>,
      %280 = arith.addf %236, %264 : vector<8x128xf32>
      %c0_94 = arith.constant 0 : index
      %c0_95 = arith.constant 0 : index
      %281 = vector.load %arg9[%c0_94, %c0_95] : memref<8x128xf32, #tpu.memory_space<vmem>>, vector<8x128xf32>
      tpu.vector_store %arg9[%c0_94, %c0_95], %280 {strides = array<i32>} : memref<8x128xf32, #tpu.memory_space<vmem>>, vector<8x128xf32>,
    } else {
    }
    return
  }
  func.func @transform_0(%arg0: i32) -> (i32, i32, i32) {
    %c0_i32 = arith.constant 0 : i32
    %c0_i32_0 = arith.constant 0 : i32
    %c0_i32_1 = arith.constant 0 : i32
    return %arg0, %c0_i32, %c0_i32_0 : i32, i32, i32
  }
  func.func @transform_1(%arg0: i32) -> (i32, i32, i32) {
    %c2_i32 = arith.constant 2 : i32
    %0 = arith.subi %c2_i32, %arg0 : i32
    %c0_i32 = arith.constant 0 : i32
    %c1_i32 = arith.constant 1 : i32
    %c0_i32_0 = arith.constant 0 : i32
    return %0, %c0_i32, %c1_i32 : i32, i32, i32
  }
  func.func @transform_2(%arg0: i32) -> (i32, i32) {
    %c0_i32 = arith.constant 0 : i32
    %c0_i32_0 = arith.constant 0 : i32
    %c0_i32_1 = arith.constant 0 : i32
    return %c0_i32, %c0_i32_0 : i32, i32
  }
  func.func @transform_3(%arg0: i32) -> (i32, i32) {
    %c0_i32 = arith.constant 0 : i32
    %c0_i32_0 = arith.constant 0 : i32
    %c0_i32_1 = arith.constant 0 : i32
    return %c0_i32, %c0_i32_0 : i32, i32
  }
  func.func @transform_4(%arg0: i32) -> (i32, i32) {
    %c0_i32 = arith.constant 0 : i32
    %c0_i32_0 = arith.constant 0 : i32
    %c0_i32_1 = arith.constant 0 : i32
    return %c0_i32, %c0_i32_0 : i32, i32
  }
  func.func @transform_5(%arg0: i32) -> (i32, i32, i32) {
    %c0_i32 = arith.constant 0 : i32
    %c0_i32_0 = arith.constant 0 : i32
    %c0_i32_1 = arith.constant 0 : i32
    return %arg0, %c0_i32, %c0_i32_0 : i32, i32, i32
  }
  func.func @transform_6(%arg0: i32) -> (i32, i32, i32) {
    %c2_i32 = arith.constant 2 : i32
    %0 = arith.subi %c2_i32, %arg0 : i32
    %c0_i32 = arith.constant 0 : i32
    %c0_i32_0 = arith.constant 0 : i32
    %c0_i32_1 = arith.constant 0 : i32
    return %0, %c0_i32, %c0_i32_0 : i32, i32, i32
  }
  func.func @transform_7(%arg0: i32) -> (i32, i32) {
    %c0_i32 = arith.constant 0 : i32
    %c0_i32_0 = arith.constant 0 : i32
    %c0_i32_1 = arith.constant 0 : i32
    return %c0_i32, %c0_i32_0 : i32, i32
  }
  func.func @transform_8(%arg0: i32) -> (i32, i32) {
    %c0_i32 = arith.constant 0 : i32
    %c0_i32_0 = arith.constant 0 : i32
    %c0_i32_1 = arith.constant 0 : i32
    return %c0_i32, %c0_i32_0 : i32, i32
  }
}

module attributes {stable_mosaic.version = 11 : i64} {
  func.func @kernel(%arg0: i32, %arg1: memref<4x8x512xf32, #tpu.memory_space<vmem>>, %arg2: memref<4x8x512xf32, #tpu.memory_space<vmem>>, %arg3: memref<8x1xi32, #tpu.memory_space<vmem>>, %arg4: memref<128x512xf32, #tpu.memory_space<vmem>>, %arg5: memref<128x512xf32, #tpu.memory_space<vmem>>, %arg6: memref<8x128xf32, #tpu.memory_space<vmem>>, %arg7: memref<8x128xf32, #tpu.memory_space<vmem>>, %arg8: memref<8x128xf32, #tpu.memory_space<vmem>>, %arg9: memref<8x128xf32, #tpu.memory_space<vmem>>, %arg10: memref<8x128xf32, #tpu.memory_space<vmem>>, %arg11: memref<8x128xf32, #tpu.memory_space<vmem>>) attributes {dimension_semantics = [#tpu.dimension_semantics<arbitrary>], iteration_bounds = array<i64: 3>, scalar_prefetch = 0 : i64, scratch_operands = 4 : i64, tpu.core_type = #tpu.core_type<tc>, window_params = [{transform_indices = @transform_0, window_bounds = array<i64: 4, 8, 512>}, {transform_indices = @transform_1, window_bounds = array<i64: 4, 8, 512>}, {pipeline_mode = #tpu.pipeline_mode<synchronous>, transform_indices = @transform_2, window_bounds = array<i64: 8, 1>}, {pipeline_mode = #tpu.pipeline_mode<synchronous>, transform_indices = @transform_3, window_bounds = array<i64: 128, 512>}, {pipeline_mode = #tpu.pipeline_mode<synchronous>, transform_indices = @transform_4, window_bounds = array<i64: 128, 512>}, {pipeline_mode = #tpu.pipeline_mode<synchronous>, transform_indices = @transform_5, window_bounds = array<i64: 8, 128>}, {pipeline_mode = #tpu.pipeline_mode<synchronous>, transform_indices = @transform_6, window_bounds = array<i64: 8, 128>}]} {
    %c0_i32 = arith.constant 0 : i32
    %0 = arith.cmpi eq, %arg0, %c0_i32 : i32
    %1 = arith.extui %0 : i1 to i32
    %c0_i32_0 = arith.constant 0 : i32
    %2 = arith.cmpi ne, %1, %c0_i32_0 : i32
    scf.if %2 {
      %cst_68 = arith.constant 0.000000e+00 : f32
      %254 = vector.broadcast %cst_68 : f32 to vector<8x128xf32>
      %c0_69 = arith.constant 0 : index
      %c0_70 = arith.constant 0 : index
      %255 = vector.load %arg8[%c0_69, %c0_70] : memref<8x128xf32, #tpu.memory_space<vmem>>, vector<8x128xf32>
      tpu.vector_store %arg8[%c0_69, %c0_70], %254 {strides = array<i32>} : memref<8x128xf32, #tpu.memory_space<vmem>>, vector<8x128xf32>,
      %cst_71 = arith.constant 0.000000e+00 : f32
      %256 = vector.broadcast %cst_71 : f32 to vector<8x128xf32>
      %c0_72 = arith.constant 0 : index
      %c0_73 = arith.constant 0 : index
      %257 = vector.load %arg9[%c0_72, %c0_73] : memref<8x128xf32, #tpu.memory_space<vmem>>, vector<8x128xf32>
      tpu.vector_store %arg9[%c0_72, %c0_73], %256 {strides = array<i32>} : memref<8x128xf32, #tpu.memory_space<vmem>>, vector<8x128xf32>,
      %cst_74 = arith.constant 0.000000e+00 : f32
      %258 = vector.broadcast %cst_74 : f32 to vector<8x128xf32>
      %c0_75 = arith.constant 0 : index
      %c0_76 = arith.constant 0 : index
      %259 = vector.load %arg10[%c0_75, %c0_76] : memref<8x128xf32, #tpu.memory_space<vmem>>, vector<8x128xf32>
      tpu.vector_store %arg10[%c0_75, %c0_76], %258 {strides = array<i32>} : memref<8x128xf32, #tpu.memory_space<vmem>>, vector<8x128xf32>,
      %cst_77 = arith.constant 0.000000e+00 : f32
      %260 = vector.broadcast %cst_77 : f32 to vector<8x128xf32>
      %c0_78 = arith.constant 0 : index
      %c0_79 = arith.constant 0 : index
      %261 = vector.load %arg11[%c0_78, %c0_79] : memref<8x128xf32, #tpu.memory_space<vmem>>, vector<8x128xf32>
      tpu.vector_store %arg11[%c0_78, %c0_79], %260 {strides = array<i32>} : memref<8x128xf32, #tpu.memory_space<vmem>>, vector<8x128xf32>,
    } else {
    }
    %c0 = arith.constant 0 : index
    %c0_1 = arith.constant 0 : index
    %3 = vector.load %arg3[%c0, %c0_1] : memref<8x1xi32, #tpu.memory_space<vmem>>, vector<8x1xi32>
    %c0_2 = arith.constant 0 : index
    %c0_3 = arith.constant 0 : index
    %4 = vector.load %arg4[%c0_2, %c0_3] : memref<128x512xf32, #tpu.memory_space<vmem>>, vector<128x512xf32>
    %c0_4 = arith.constant 0 : index
    %c0_5 = arith.constant 0 : index
    %5 = vector.load %arg5[%c0_4, %c0_5] : memref<128x512xf32, #tpu.memory_space<vmem>>, vector<128x512xf32>
    %c0_6 = arith.constant 0 : index
    %c0_7 = arith.constant 0 : index
    %6 = vector.load %arg8[%c0_6, %c0_7] : memref<8x128xf32, #tpu.memory_space<vmem>>, vector<8x128xf32>
    %c0_8 = arith.constant 0 : index
    %c0_9 = arith.constant 0 : index
    %7 = vector.load %arg9[%c0_8, %c0_9] : memref<8x128xf32, #tpu.memory_space<vmem>>, vector<8x128xf32>
    %c0_10 = arith.constant 0 : index
    %c0_11 = arith.constant 0 : index
    %8 = vector.load %arg10[%c0_10, %c0_11] : memref<8x128xf32, #tpu.memory_space<vmem>>, vector<8x128xf32>
    %c0_12 = arith.constant 0 : index
    %c0_13 = arith.constant 0 : index
    %9 = vector.load %arg11[%c0_12, %c0_13] : memref<8x128xf32, #tpu.memory_space<vmem>>, vector<8x128xf32>
    %c4_i32 = arith.constant 4 : i32
    %10 = arith.muli %arg0, %c4_i32 : i32
    %c0_i32_14 = arith.constant 0 : i32
    %11 = arith.addi %10, %c0_i32_14 : i32
    %c0_i32_15 = arith.constant 0 : i32
    %12 = arith.addi %10, %c0_i32_15 : i32
    %c11_i32 = arith.constant 11 : i32
    %13 = arith.subi %c11_i32, %12 : i32
    %c0_16 = arith.constant 0 : index
    %c0_17 = arith.constant 0 : index
    %c0_18 = arith.constant 0 : index
    %14 = vector.load %arg1[%c0_16, %c0_17, %c0_18] : memref<4x8x512xf32, #tpu.memory_space<vmem>>, vector<1x8x512xf32>
    %15 = vector.shape_cast %14 : vector<1x8x512xf32> to vector<8x512xf32>
    %16 = vector.broadcast %11 : i32 to vector<8x1xi32>
    %17 = arith.cmpi slt, %16, %3 : vector<8x1xi32>
    %cst = arith.constant dense<0.000000e+00> : vector<8x512xf32>
    %18 = tpu.matmul %6, %4, %cst {dimension_numbers = #tpu.dot_dimension_numbers<[1], [0], [0], [1], [0, 0, 1, 1], [], []>} : vector<8x128xf32>, vector<128x512xf32>, vector<8x512xf32> -> vector<8x512xf32>
    %19 = arith.addf %15, %18 : vector<8x512xf32>
    %20 = vector.extract_strided_slice %19 {offsets = [0, 0], sizes = [8, 384], strides = [1, 1]} : vector<8x512xf32> to vector<8x384xf32>
    %21 = arith.negf %20 : vector<8x384xf32>
    %22 = math.exp %21 : vector<8x384xf32>
    %cst_19 = arith.constant 1.000000e+00 : f32
    %23 = vector.broadcast %cst_19 : f32 to vector<8x384xf32>
    %24 = arith.addf %23, %22 : vector<8x384xf32>
    %25 = arith.divf %23, %24 : vector<8x384xf32>
    %26 = vector.extract_strided_slice %25 {offsets = [0, 0], sizes = [8, 128], strides = [1, 1]} : vector<8x384xf32> to vector<8x128xf32>
    %27 = vector.extract_strided_slice %25 {offsets = [0, 128], sizes = [8, 128], strides = [1, 1]} : vector<8x384xf32> to vector<8x128xf32>
    %28 = vector.extract_strided_slice %25 {offsets = [0, 256], sizes = [8, 128], strides = [1, 1]} : vector<8x384xf32> to vector<8x128xf32>
    %29 = vector.extract_strided_slice %19 {offsets = [0, 384], sizes = [8, 128], strides = [1, 1]} : vector<8x512xf32> to vector<8x128xf32>
    %30 = math.tanh %29 : vector<8x128xf32>
    %31 = arith.mulf %27, %7 : vector<8x128xf32>
    %32 = arith.mulf %26, %30 : vector<8x128xf32>
    %33 = arith.addf %31, %32 : vector<8x128xf32>
    %34 = math.tanh %33 : vector<8x128xf32>
    %35 = arith.mulf %28, %34 : vector<8x128xf32>
    %36 = vector.shape_cast %17 : vector<8x1xi1> to vector<8x1xi1>
    %37 = vector.broadcast %36 : vector<8x1xi1> to vector<8x128xi1>
    %38 = arith.select %37, %35, %6 : vector<8x128xi1>, vector<8x128xf32>
    %39 = vector.shape_cast %17 : vector<8x1xi1> to vector<8x1xi1>
    %40 = vector.broadcast %39 : vector<8x1xi1> to vector<8x128xi1>
    %41 = arith.select %40, %33, %7 : vector<8x128xi1>, vector<8x128xf32>
    %c3 = arith.constant 3 : index
    %c0_20 = arith.constant 0 : index
    %c0_21 = arith.constant 0 : index
    %42 = vector.load %arg2[%c3, %c0_20, %c0_21] : memref<4x8x512xf32, #tpu.memory_space<vmem>>, vector<1x8x512xf32>
    %43 = vector.shape_cast %42 : vector<1x8x512xf32> to vector<8x512xf32>
    %44 = vector.broadcast %13 : i32 to vector<8x1xi32>
    %45 = arith.cmpi slt, %44, %3 : vector<8x1xi32>
    %cst_22 = arith.constant dense<0.000000e+00> : vector<8x512xf32>
    %46 = tpu.matmul %8, %5, %cst_22 {dimension_numbers = #tpu.dot_dimension_numbers<[1], [0], [0], [1], [0, 0, 1, 1], [], []>} : vector<8x128xf32>, vector<128x512xf32>, vector<8x512xf32> -> vector<8x512xf32>
    %47 = arith.addf %43, %46 : vector<8x512xf32>
    %48 = vector.extract_strided_slice %47 {offsets = [0, 0], sizes = [8, 384], strides = [1, 1]} : vector<8x512xf32> to vector<8x384xf32>
    %49 = arith.negf %48 : vector<8x384xf32>
    %50 = math.exp %49 : vector<8x384xf32>
    %cst_23 = arith.constant 1.000000e+00 : f32
    %51 = vector.broadcast %cst_23 : f32 to vector<8x384xf32>
    %52 = arith.addf %51, %50 : vector<8x384xf32>
    %53 = arith.divf %51, %52 : vector<8x384xf32>
    %54 = vector.extract_strided_slice %53 {offsets = [0, 0], sizes = [8, 128], strides = [1, 1]} : vector<8x384xf32> to vector<8x128xf32>
    %55 = vector.extract_strided_slice %53 {offsets = [0, 128], sizes = [8, 128], strides = [1, 1]} : vector<8x384xf32> to vector<8x128xf32>
    %56 = vector.extract_strided_slice %53 {offsets = [0, 256], sizes = [8, 128], strides = [1, 1]} : vector<8x384xf32> to vector<8x128xf32>
    %57 = vector.extract_strided_slice %47 {offsets = [0, 384], sizes = [8, 128], strides = [1, 1]} : vector<8x512xf32> to vector<8x128xf32>
    %58 = math.tanh %57 : vector<8x128xf32>
    %59 = arith.mulf %55, %9 : vector<8x128xf32>
    %60 = arith.mulf %54, %58 : vector<8x128xf32>
    %61 = arith.addf %59, %60 : vector<8x128xf32>
    %62 = math.tanh %61 : vector<8x128xf32>
    %63 = arith.mulf %56, %62 : vector<8x128xf32>
    %64 = vector.shape_cast %45 : vector<8x1xi1> to vector<8x1xi1>
    %65 = vector.broadcast %64 : vector<8x1xi1> to vector<8x128xi1>
    %66 = arith.select %65, %63, %8 : vector<8x128xi1>, vector<8x128xf32>
    %67 = vector.shape_cast %45 : vector<8x1xi1> to vector<8x1xi1>
    %68 = vector.broadcast %67 : vector<8x1xi1> to vector<8x128xi1>
    %69 = arith.select %68, %61, %9 : vector<8x128xi1>, vector<8x128xf32>
    %c1_i32 = arith.constant 1 : i32
    %70 = arith.addi %10, %c1_i32 : i32
    %c1_i32_24 = arith.constant 1 : i32
    %71 = arith.addi %10, %c1_i32_24 : i32
    %c11_i32_25 = arith.constant 11 : i32
    %72 = arith.subi %c11_i32_25, %71 : i32
    %c1 = arith.constant 1 : index
    %c0_26 = arith.constant 0 : index
    %c0_27 = arith.constant 0 : index
    %73 = vector.load %arg1[%c1, %c0_26, %c0_27] : memref<4x8x512xf32, #tpu.memory_space<vmem>>, vector<1x8x512xf32>
    %74 = vector.shape_cast %73 : vector<1x8x512xf32> to vector<8x512xf32>
    %75 = vector.broadcast %70 : i32 to vector<8x1xi32>
    %76 = arith.cmpi slt, %75, %3 : vector<8x1xi32>
    %cst_28 = arith.constant dense<0.000000e+00> : vector<8x512xf32>
    %77 = tpu.matmul %38, %4, %cst_28 {dimension_numbers = #tpu.dot_dimension_numbers<[1], [0], [0], [1], [0, 0, 1, 1], [], []>} : vector<8x128xf32>, vector<128x512xf32>, vector<8x512xf32> -> vector<8x512xf32>
    %78 = arith.addf %74, %77 : vector<8x512xf32>
    %79 = vector.extract_strided_slice %78 {offsets = [0, 0], sizes = [8, 384], strides = [1, 1]} : vector<8x512xf32> to vector<8x384xf32>
    %80 = arith.negf %79 : vector<8x384xf32>
    %81 = math.exp %80 : vector<8x384xf32>
    %cst_29 = arith.constant 1.000000e+00 : f32
    %82 = vector.broadcast %cst_29 : f32 to vector<8x384xf32>
    %83 = arith.addf %82, %81 : vector<8x384xf32>
    %84 = arith.divf %82, %83 : vector<8x384xf32>
    %85 = vector.extract_strided_slice %84 {offsets = [0, 0], sizes = [8, 128], strides = [1, 1]} : vector<8x384xf32> to vector<8x128xf32>
    %86 = vector.extract_strided_slice %84 {offsets = [0, 128], sizes = [8, 128], strides = [1, 1]} : vector<8x384xf32> to vector<8x128xf32>
    %87 = vector.extract_strided_slice %84 {offsets = [0, 256], sizes = [8, 128], strides = [1, 1]} : vector<8x384xf32> to vector<8x128xf32>
    %88 = vector.extract_strided_slice %78 {offsets = [0, 384], sizes = [8, 128], strides = [1, 1]} : vector<8x512xf32> to vector<8x128xf32>
    %89 = math.tanh %88 : vector<8x128xf32>
    %90 = arith.mulf %86, %41 : vector<8x128xf32>
    %91 = arith.mulf %85, %89 : vector<8x128xf32>
    %92 = arith.addf %90, %91 : vector<8x128xf32>
    %93 = math.tanh %92 : vector<8x128xf32>
    %94 = arith.mulf %87, %93 : vector<8x128xf32>
    %95 = vector.shape_cast %76 : vector<8x1xi1> to vector<8x1xi1>
    %96 = vector.broadcast %95 : vector<8x1xi1> to vector<8x128xi1>
    %97 = arith.select %96, %94, %38 : vector<8x128xi1>, vector<8x128xf32>
    %98 = vector.shape_cast %76 : vector<8x1xi1> to vector<8x1xi1>
    %99 = vector.broadcast %98 : vector<8x1xi1> to vector<8x128xi1>
    %100 = arith.select %99, %92, %41 : vector<8x128xi1>, vector<8x128xf32>
    %c2 = arith.constant 2 : index
    %c0_30 = arith.constant 0 : index
    %c0_31 = arith.constant 0 : index
    %101 = vector.load %arg2[%c2, %c0_30, %c0_31] : memref<4x8x512xf32, #tpu.memory_space<vmem>>, vector<1x8x512xf32>
    %102 = vector.shape_cast %101 : vector<1x8x512xf32> to vector<8x512xf32>
    %103 = vector.broadcast %72 : i32 to vector<8x1xi32>
    %104 = arith.cmpi slt, %103, %3 : vector<8x1xi32>
    %cst_32 = arith.constant dense<0.000000e+00> : vector<8x512xf32>
    %105 = tpu.matmul %66, %5, %cst_32 {dimension_numbers = #tpu.dot_dimension_numbers<[1], [0], [0], [1], [0, 0, 1, 1], [], []>} : vector<8x128xf32>, vector<128x512xf32>, vector<8x512xf32> -> vector<8x512xf32>
    %106 = arith.addf %102, %105 : vector<8x512xf32>
    %107 = vector.extract_strided_slice %106 {offsets = [0, 0], sizes = [8, 384], strides = [1, 1]} : vector<8x512xf32> to vector<8x384xf32>
    %108 = arith.negf %107 : vector<8x384xf32>
    %109 = math.exp %108 : vector<8x384xf32>
    %cst_33 = arith.constant 1.000000e+00 : f32
    %110 = vector.broadcast %cst_33 : f32 to vector<8x384xf32>
    %111 = arith.addf %110, %109 : vector<8x384xf32>
    %112 = arith.divf %110, %111 : vector<8x384xf32>
    %113 = vector.extract_strided_slice %112 {offsets = [0, 0], sizes = [8, 128], strides = [1, 1]} : vector<8x384xf32> to vector<8x128xf32>
    %114 = vector.extract_strided_slice %112 {offsets = [0, 128], sizes = [8, 128], strides = [1, 1]} : vector<8x384xf32> to vector<8x128xf32>
    %115 = vector.extract_strided_slice %112 {offsets = [0, 256], sizes = [8, 128], strides = [1, 1]} : vector<8x384xf32> to vector<8x128xf32>
    %116 = vector.extract_strided_slice %106 {offsets = [0, 384], sizes = [8, 128], strides = [1, 1]} : vector<8x512xf32> to vector<8x128xf32>
    %117 = math.tanh %116 : vector<8x128xf32>
    %118 = arith.mulf %114, %69 : vector<8x128xf32>
    %119 = arith.mulf %113, %117 : vector<8x128xf32>
    %120 = arith.addf %118, %119 : vector<8x128xf32>
    %121 = math.tanh %120 : vector<8x128xf32>
    %122 = arith.mulf %115, %121 : vector<8x128xf32>
    %123 = vector.shape_cast %104 : vector<8x1xi1> to vector<8x1xi1>
    %124 = vector.broadcast %123 : vector<8x1xi1> to vector<8x128xi1>
    %125 = arith.select %124, %122, %66 : vector<8x128xi1>, vector<8x128xf32>
    %126 = vector.shape_cast %104 : vector<8x1xi1> to vector<8x1xi1>
    %127 = vector.broadcast %126 : vector<8x1xi1> to vector<8x128xi1>
    %128 = arith.select %127, %120, %69 : vector<8x128xi1>, vector<8x128xf32>
    %c2_i32 = arith.constant 2 : i32
    %129 = arith.addi %10, %c2_i32 : i32
    %c2_i32_34 = arith.constant 2 : i32
    %130 = arith.addi %10, %c2_i32_34 : i32
    %c11_i32_35 = arith.constant 11 : i32
    %131 = arith.subi %c11_i32_35, %130 : i32
    %c2_36 = arith.constant 2 : index
    %c0_37 = arith.constant 0 : index
    %c0_38 = arith.constant 0 : index
    %132 = vector.load %arg1[%c2_36, %c0_37, %c0_38] : memref<4x8x512xf32, #tpu.memory_space<vmem>>, vector<1x8x512xf32>
    %133 = vector.shape_cast %132 : vector<1x8x512xf32> to vector<8x512xf32>
    %134 = vector.broadcast %129 : i32 to vector<8x1xi32>
    %135 = arith.cmpi slt, %134, %3 : vector<8x1xi32>
    %cst_39 = arith.constant dense<0.000000e+00> : vector<8x512xf32>
    %136 = tpu.matmul %97, %4, %cst_39 {dimension_numbers = #tpu.dot_dimension_numbers<[1], [0], [0], [1], [0, 0, 1, 1], [], []>} : vector<8x128xf32>, vector<128x512xf32>, vector<8x512xf32> -> vector<8x512xf32>
    %137 = arith.addf %133, %136 : vector<8x512xf32>
    %138 = vector.extract_strided_slice %137 {offsets = [0, 0], sizes = [8, 384], strides = [1, 1]} : vector<8x512xf32> to vector<8x384xf32>
    %139 = arith.negf %138 : vector<8x384xf32>
    %140 = math.exp %139 : vector<8x384xf32>
    %cst_40 = arith.constant 1.000000e+00 : f32
    %141 = vector.broadcast %cst_40 : f32 to vector<8x384xf32>
    %142 = arith.addf %141, %140 : vector<8x384xf32>
    %143 = arith.divf %141, %142 : vector<8x384xf32>
    %144 = vector.extract_strided_slice %143 {offsets = [0, 0], sizes = [8, 128], strides = [1, 1]} : vector<8x384xf32> to vector<8x128xf32>
    %145 = vector.extract_strided_slice %143 {offsets = [0, 128], sizes = [8, 128], strides = [1, 1]} : vector<8x384xf32> to vector<8x128xf32>
    %146 = vector.extract_strided_slice %143 {offsets = [0, 256], sizes = [8, 128], strides = [1, 1]} : vector<8x384xf32> to vector<8x128xf32>
    %147 = vector.extract_strided_slice %137 {offsets = [0, 384], sizes = [8, 128], strides = [1, 1]} : vector<8x512xf32> to vector<8x128xf32>
    %148 = math.tanh %147 : vector<8x128xf32>
    %149 = arith.mulf %145, %100 : vector<8x128xf32>
    %150 = arith.mulf %144, %148 : vector<8x128xf32>
    %151 = arith.addf %149, %150 : vector<8x128xf32>
    %152 = math.tanh %151 : vector<8x128xf32>
    %153 = arith.mulf %146, %152 : vector<8x128xf32>
    %154 = vector.shape_cast %135 : vector<8x1xi1> to vector<8x1xi1>
    %155 = vector.broadcast %154 : vector<8x1xi1> to vector<8x128xi1>
    %156 = arith.select %155, %153, %97 : vector<8x128xi1>, vector<8x128xf32>
    %157 = vector.shape_cast %135 : vector<8x1xi1> to vector<8x1xi1>
    %158 = vector.broadcast %157 : vector<8x1xi1> to vector<8x128xi1>
    %159 = arith.select %158, %151, %100 : vector<8x128xi1>, vector<8x128xf32>
    %c1_41 = arith.constant 1 : index
    %c0_42 = arith.constant 0 : index
    %c0_43 = arith.constant 0 : index
    %160 = vector.load %arg2[%c1_41, %c0_42, %c0_43] : memref<4x8x512xf32, #tpu.memory_space<vmem>>, vector<1x8x512xf32>
    %161 = vector.shape_cast %160 : vector<1x8x512xf32> to vector<8x512xf32>
    %162 = vector.broadcast %131 : i32 to vector<8x1xi32>
    %163 = arith.cmpi slt, %162, %3 : vector<8x1xi32>
    %cst_44 = arith.constant dense<0.000000e+00> : vector<8x512xf32>
    %164 = tpu.matmul %125, %5, %cst_44 {dimension_numbers = #tpu.dot_dimension_numbers<[1], [0], [0], [1], [0, 0, 1, 1], [], []>} : vector<8x128xf32>, vector<128x512xf32>, vector<8x512xf32> -> vector<8x512xf32>
    %165 = arith.addf %161, %164 : vector<8x512xf32>
    %166 = vector.extract_strided_slice %165 {offsets = [0, 0], sizes = [8, 384], strides = [1, 1]} : vector<8x512xf32> to vector<8x384xf32>
    %167 = arith.negf %166 : vector<8x384xf32>
    %168 = math.exp %167 : vector<8x384xf32>
    %cst_45 = arith.constant 1.000000e+00 : f32
    %169 = vector.broadcast %cst_45 : f32 to vector<8x384xf32>
    %170 = arith.addf %169, %168 : vector<8x384xf32>
    %171 = arith.divf %169, %170 : vector<8x384xf32>
    %172 = vector.extract_strided_slice %171 {offsets = [0, 0], sizes = [8, 128], strides = [1, 1]} : vector<8x384xf32> to vector<8x128xf32>
    %173 = vector.extract_strided_slice %171 {offsets = [0, 128], sizes = [8, 128], strides = [1, 1]} : vector<8x384xf32> to vector<8x128xf32>
    %174 = vector.extract_strided_slice %171 {offsets = [0, 256], sizes = [8, 128], strides = [1, 1]} : vector<8x384xf32> to vector<8x128xf32>
    %175 = vector.extract_strided_slice %165 {offsets = [0, 384], sizes = [8, 128], strides = [1, 1]} : vector<8x512xf32> to vector<8x128xf32>
    %176 = math.tanh %175 : vector<8x128xf32>
    %177 = arith.mulf %173, %128 : vector<8x128xf32>
    %178 = arith.mulf %172, %176 : vector<8x128xf32>
    %179 = arith.addf %177, %178 : vector<8x128xf32>
    %180 = math.tanh %179 : vector<8x128xf32>
    %181 = arith.mulf %174, %180 : vector<8x128xf32>
    %182 = vector.shape_cast %163 : vector<8x1xi1> to vector<8x1xi1>
    %183 = vector.broadcast %182 : vector<8x1xi1> to vector<8x128xi1>
    %184 = arith.select %183, %181, %125 : vector<8x128xi1>, vector<8x128xf32>
    %185 = vector.shape_cast %163 : vector<8x1xi1> to vector<8x1xi1>
    %186 = vector.broadcast %185 : vector<8x1xi1> to vector<8x128xi1>
    %187 = arith.select %186, %179, %128 : vector<8x128xi1>, vector<8x128xf32>
    %c3_i32 = arith.constant 3 : i32
    %188 = arith.addi %10, %c3_i32 : i32
    %c3_i32_46 = arith.constant 3 : i32
    %189 = arith.addi %10, %c3_i32_46 : i32
    %c11_i32_47 = arith.constant 11 : i32
    %190 = arith.subi %c11_i32_47, %189 : i32
    %c3_48 = arith.constant 3 : index
    %c0_49 = arith.constant 0 : index
    %c0_50 = arith.constant 0 : index
    %191 = vector.load %arg1[%c3_48, %c0_49, %c0_50] : memref<4x8x512xf32, #tpu.memory_space<vmem>>, vector<1x8x512xf32>
    %192 = vector.shape_cast %191 : vector<1x8x512xf32> to vector<8x512xf32>
    %193 = vector.broadcast %188 : i32 to vector<8x1xi32>
    %194 = arith.cmpi slt, %193, %3 : vector<8x1xi32>
    %cst_51 = arith.constant dense<0.000000e+00> : vector<8x512xf32>
    %195 = tpu.matmul %156, %4, %cst_51 {dimension_numbers = #tpu.dot_dimension_numbers<[1], [0], [0], [1], [0, 0, 1, 1], [], []>} : vector<8x128xf32>, vector<128x512xf32>, vector<8x512xf32> -> vector<8x512xf32>
    %196 = arith.addf %192, %195 : vector<8x512xf32>
    %197 = vector.extract_strided_slice %196 {offsets = [0, 0], sizes = [8, 384], strides = [1, 1]} : vector<8x512xf32> to vector<8x384xf32>
    %198 = arith.negf %197 : vector<8x384xf32>
    %199 = math.exp %198 : vector<8x384xf32>
    %cst_52 = arith.constant 1.000000e+00 : f32
    %200 = vector.broadcast %cst_52 : f32 to vector<8x384xf32>
    %201 = arith.addf %200, %199 : vector<8x384xf32>
    %202 = arith.divf %200, %201 : vector<8x384xf32>
    %203 = vector.extract_strided_slice %202 {offsets = [0, 0], sizes = [8, 128], strides = [1, 1]} : vector<8x384xf32> to vector<8x128xf32>
    %204 = vector.extract_strided_slice %202 {offsets = [0, 128], sizes = [8, 128], strides = [1, 1]} : vector<8x384xf32> to vector<8x128xf32>
    %205 = vector.extract_strided_slice %202 {offsets = [0, 256], sizes = [8, 128], strides = [1, 1]} : vector<8x384xf32> to vector<8x128xf32>
    %206 = vector.extract_strided_slice %196 {offsets = [0, 384], sizes = [8, 128], strides = [1, 1]} : vector<8x512xf32> to vector<8x128xf32>
    %207 = math.tanh %206 : vector<8x128xf32>
    %208 = arith.mulf %204, %159 : vector<8x128xf32>
    %209 = arith.mulf %203, %207 : vector<8x128xf32>
    %210 = arith.addf %208, %209 : vector<8x128xf32>
    %211 = math.tanh %210 : vector<8x128xf32>
    %212 = arith.mulf %205, %211 : vector<8x128xf32>
    %213 = vector.shape_cast %194 : vector<8x1xi1> to vector<8x1xi1>
    %214 = vector.broadcast %213 : vector<8x1xi1> to vector<8x128xi1>
    %215 = arith.select %214, %212, %156 : vector<8x128xi1>, vector<8x128xf32>
    %216 = vector.shape_cast %194 : vector<8x1xi1> to vector<8x1xi1>
    %217 = vector.broadcast %216 : vector<8x1xi1> to vector<8x128xi1>
    %218 = arith.select %217, %210, %159 : vector<8x128xi1>, vector<8x128xf32>
    %c0_53 = arith.constant 0 : index
    %c0_54 = arith.constant 0 : index
    %c0_55 = arith.constant 0 : index
    %219 = vector.load %arg2[%c0_53, %c0_54, %c0_55] : memref<4x8x512xf32, #tpu.memory_space<vmem>>, vector<1x8x512xf32>
    %220 = vector.shape_cast %219 : vector<1x8x512xf32> to vector<8x512xf32>
    %221 = vector.broadcast %190 : i32 to vector<8x1xi32>
    %222 = arith.cmpi slt, %221, %3 : vector<8x1xi32>
    %cst_56 = arith.constant dense<0.000000e+00> : vector<8x512xf32>
    %223 = tpu.matmul %184, %5, %cst_56 {dimension_numbers = #tpu.dot_dimension_numbers<[1], [0], [0], [1], [0, 0, 1, 1], [], []>} : vector<8x128xf32>, vector<128x512xf32>, vector<8x512xf32> -> vector<8x512xf32>
    %224 = arith.addf %220, %223 : vector<8x512xf32>
    %225 = vector.extract_strided_slice %224 {offsets = [0, 0], sizes = [8, 384], strides = [1, 1]} : vector<8x512xf32> to vector<8x384xf32>
    %226 = arith.negf %225 : vector<8x384xf32>
    %227 = math.exp %226 : vector<8x384xf32>
    %cst_57 = arith.constant 1.000000e+00 : f32
    %228 = vector.broadcast %cst_57 : f32 to vector<8x384xf32>
    %229 = arith.addf %228, %227 : vector<8x384xf32>
    %230 = arith.divf %228, %229 : vector<8x384xf32>
    %231 = vector.extract_strided_slice %230 {offsets = [0, 0], sizes = [8, 128], strides = [1, 1]} : vector<8x384xf32> to vector<8x128xf32>
    %232 = vector.extract_strided_slice %230 {offsets = [0, 128], sizes = [8, 128], strides = [1, 1]} : vector<8x384xf32> to vector<8x128xf32>
    %233 = vector.extract_strided_slice %230 {offsets = [0, 256], sizes = [8, 128], strides = [1, 1]} : vector<8x384xf32> to vector<8x128xf32>
    %234 = vector.extract_strided_slice %224 {offsets = [0, 384], sizes = [8, 128], strides = [1, 1]} : vector<8x512xf32> to vector<8x128xf32>
    %235 = math.tanh %234 : vector<8x128xf32>
    %236 = arith.mulf %232, %187 : vector<8x128xf32>
    %237 = arith.mulf %231, %235 : vector<8x128xf32>
    %238 = arith.addf %236, %237 : vector<8x128xf32>
    %239 = math.tanh %238 : vector<8x128xf32>
    %240 = arith.mulf %233, %239 : vector<8x128xf32>
    %241 = vector.shape_cast %222 : vector<8x1xi1> to vector<8x1xi1>
    %242 = vector.broadcast %241 : vector<8x1xi1> to vector<8x128xi1>
    %243 = arith.select %242, %240, %184 : vector<8x128xi1>, vector<8x128xf32>
    %244 = vector.shape_cast %222 : vector<8x1xi1> to vector<8x1xi1>
    %245 = vector.broadcast %244 : vector<8x1xi1> to vector<8x128xi1>
    %246 = arith.select %245, %238, %187 : vector<8x128xi1>, vector<8x128xf32>
    %c0_58 = arith.constant 0 : index
    %c0_59 = arith.constant 0 : index
    %247 = vector.load %arg8[%c0_58, %c0_59] : memref<8x128xf32, #tpu.memory_space<vmem>>, vector<8x128xf32>
    tpu.vector_store %arg8[%c0_58, %c0_59], %215 {strides = array<i32>} : memref<8x128xf32, #tpu.memory_space<vmem>>, vector<8x128xf32>,
    %c0_60 = arith.constant 0 : index
    %c0_61 = arith.constant 0 : index
    %248 = vector.load %arg9[%c0_60, %c0_61] : memref<8x128xf32, #tpu.memory_space<vmem>>, vector<8x128xf32>
    tpu.vector_store %arg9[%c0_60, %c0_61], %218 {strides = array<i32>} : memref<8x128xf32, #tpu.memory_space<vmem>>, vector<8x128xf32>,
    %c0_62 = arith.constant 0 : index
    %c0_63 = arith.constant 0 : index
    %249 = vector.load %arg10[%c0_62, %c0_63] : memref<8x128xf32, #tpu.memory_space<vmem>>, vector<8x128xf32>
    tpu.vector_store %arg10[%c0_62, %c0_63], %243 {strides = array<i32>} : memref<8x128xf32, #tpu.memory_space<vmem>>, vector<8x128xf32>,
    %c0_64 = arith.constant 0 : index
    %c0_65 = arith.constant 0 : index
    %250 = vector.load %arg11[%c0_64, %c0_65] : memref<8x128xf32, #tpu.memory_space<vmem>>, vector<8x128xf32>
    tpu.vector_store %arg11[%c0_64, %c0_65], %246 {strides = array<i32>} : memref<8x128xf32, #tpu.memory_space<vmem>>, vector<8x128xf32>,
    %c2_i32_66 = arith.constant 2 : i32
    %251 = arith.cmpi eq, %arg0, %c2_i32_66 : i32
    %252 = arith.extui %251 : i1 to i32
    %c0_i32_67 = arith.constant 0 : i32
    %253 = arith.cmpi ne, %252, %c0_i32_67 : i32
    scf.if %253 {
      %254 = arith.addf %215, %243 : vector<8x128xf32>
      %c0_68 = arith.constant 0 : index
      %c0_69 = arith.constant 0 : index
      %255 = vector.load %arg6[%c0_68, %c0_69] : memref<8x128xf32, #tpu.memory_space<vmem>>, vector<8x128xf32>
      tpu.vector_store %arg6[%c0_68, %c0_69], %254 {strides = array<i32>} : memref<8x128xf32, #tpu.memory_space<vmem>>, vector<8x128xf32>,
      %256 = arith.addf %218, %246 : vector<8x128xf32>
      %c0_70 = arith.constant 0 : index
      %c0_71 = arith.constant 0 : index
      %257 = vector.load %arg7[%c0_70, %c0_71] : memref<8x128xf32, #tpu.memory_space<vmem>>, vector<8x128xf32>
      tpu.vector_store %arg7[%c0_70, %c0_71], %256 {strides = array<i32>} : memref<8x128xf32, #tpu.memory_space<vmem>>, vector<8x128xf32>,
    } else {
    }
    return
  }
  func.func @transform_0(%arg0: i32) -> (i32, i32, i32) {
    %c0_i32 = arith.constant 0 : i32
    %c0_i32_0 = arith.constant 0 : i32
    %c0_i32_1 = arith.constant 0 : i32
    return %arg0, %c0_i32, %c0_i32_0 : i32, i32, i32
  }
  func.func @transform_1(%arg0: i32) -> (i32, i32, i32) {
    %c2_i32 = arith.constant 2 : i32
    %0 = arith.subi %c2_i32, %arg0 : i32
    %c0_i32 = arith.constant 0 : i32
    %c1_i32 = arith.constant 1 : i32
    %c0_i32_0 = arith.constant 0 : i32
    return %0, %c0_i32, %c1_i32 : i32, i32, i32
  }
  func.func @transform_2(%arg0: i32) -> (i32, i32) {
    %c0_i32 = arith.constant 0 : i32
    %c0_i32_0 = arith.constant 0 : i32
    %c0_i32_1 = arith.constant 0 : i32
    return %c0_i32, %c0_i32_0 : i32, i32
  }
  func.func @transform_3(%arg0: i32) -> (i32, i32) {
    %c0_i32 = arith.constant 0 : i32
    %c0_i32_0 = arith.constant 0 : i32
    %c0_i32_1 = arith.constant 0 : i32
    return %c0_i32, %c0_i32_0 : i32, i32
  }
  func.func @transform_4(%arg0: i32) -> (i32, i32) {
    %c0_i32 = arith.constant 0 : i32
    %c0_i32_0 = arith.constant 0 : i32
    %c0_i32_1 = arith.constant 0 : i32
    return %c0_i32, %c0_i32_0 : i32, i32
  }
  func.func @transform_5(%arg0: i32) -> (i32, i32) {
    %c0_i32 = arith.constant 0 : i32
    %c0_i32_0 = arith.constant 0 : i32
    %c0_i32_1 = arith.constant 0 : i32
    return %c0_i32, %c0_i32_0 : i32, i32
  }
  func.func @transform_6(%arg0: i32) -> (i32, i32) {
    %c0_i32 = arith.constant 0 : i32
    %c0_i32_0 = arith.constant 0 : i32
    %c0_i32_1 = arith.constant 0 : i32
    return %c0_i32, %c0_i32_0 : i32, i32
  }
}

</mosaic_0001>

<bundles_post_ra>
// kernel: encoder_forward.3
= control target key start
LH: loop header
LB: loop body
LE: loop exit
PB: predicated region body
PF: predicated region fallthrough
CT: control target
= control target key end

     0   :  { %s3094_s27 = smov 0   ;;  %s3096_s28 = smov 0   ;;  %s4191_s0 = inlined_call_operand.vmem [shape: f32[12,8,1024], index: 0, kind: input, shape index: {}, may-alias: {0,1}]   ;;  %s4192_s1 = inlined_call_operand.vmem [shape: f32[12,8,1024], index: 1, kind: input, shape index: {}, may-alias: {0,1}]   ;;  %s4193_s2 = inlined_call_operand.vmem [shape: s32[8,1], index: 2, kind: input, shape index: {}]   ;;  %s4194_s3 = inlined_call_operand.vmem [shape: f32[128,512], index: 3, kind: input, shape index: {}]   ;;  %s4195_s4 = inlined_call_operand.vmem [shape: f32[128,512], index: 4, kind: input, shape index: {}]   ;;  %s4196_s5 = inlined_call_operand.vmem [shape: f32[12,8,128], index: 5, kind: output, shape index: {0}]   ;;  %s4197_s6 = inlined_call_operand.vmem [shape: f32[12,8,128], index: 6, kind: output, shape index: {1}]   ;;  %s4198_s7 = inlined_call_operand.vmem [shape: f32[8,128], index: 7, kind: output, shape index: {2}]   ;;  %s4199_s8 = inlined_call_operand.vmem [shape: f32[8,128], index: 8, kind: output, shape index: {3}]  }
   0x1   :  { %s3098_s29 = smov 0   ;;  %s3100_s30 = smov 0  }
   0x2   :  { %s3102_s9 = smov 0  }
   0x3 LB: > { %s3120_s10 = sadd.s32 4294967295, %s3044_s9   ;;  %s3123_s11 = sadd.s32 1, %s3044_s9   ;;  %s3044_s9 = sphi %s3102_s9, %s4354_s9   ;;  %s3040_s30 = sphi %s3100_s30, %s4353_s30   ;;  %s3036_s29 = sphi %s3098_s29, %s4352_s29   ;;  %s3032_s28 = sphi %s3096_s28, %s4351_s28   ;;  %s3028_s27 = sphi %s3094_s27, %s4350_s27  }
   0x4   : > { %s23_s12 = ssub.s32 %s3044_s9, %s3123_s11  ;;  %s26_s13 = sadd.s32 1, %s3040_s30 }
   0x5   : > { %p24_p0 = scmp.eq.s32.totalorder %s23_s12, 0  ;;  %p33_p1 = scmp.ne.s32.totalorder %s3040_s30, %s3036_s29 }
   0x6   : > { %p34_p2 = scmp.eq.s32.totalorder %s3044_s9, 0  ;;  %s49_s14 = ssub.s32 2, %s3044_s9 }
   0x7   : > { %s3133_s15 = scalar_select %p24_p0, %s3040_s30, %s26_s13  }
   0x8   : > { %p35_p3 = por %p34_p2, %p33_p1  ;;  %s50_s16 = ssub.s32 2, %s3123_s11 }
   0x9   : > { %s51_s17 = ssub.s32 %s49_s14, %s50_s16  ;;  %s54_s18 = sadd.s32 1, %s3032_s28 }
   0xa   : > { %p52_p4 = scmp.eq.s32.totalorder %s51_s17, 0  ;;  %p61_p5 = scmp.ne.s32.totalorder %s3032_s28, %s3028_s27 }
   0xb   : > { %p2228_p7 = scmp.ge.s32.totalorder %s3044_s9, 3 }
   0xc   : > { %s3142_s19 = scalar_select %p52_p4, %s3032_s28, %s54_s18  }
   0xd   : > { %p3144_p6 = por %p61_p5, %p34_p2  ;;  %255 = sbr.rel (%p2228_p7) target bundleno = 44 (0x2c), region = 28 }
  0x14   : > { %258 = sbr.rel (!%p35_p3) target bundleno = 32 (0x20), region = 32  ;;  %s260_s21 = sand.u32 (%p35_p3), 1, %s3040_s30  }
  0x15   : > { %s2319_s22 = sshll.u32 (%p35_p3), %s3044_s9, 8  ;;  %s2229_s23 = sshll.u32 (%p35_p3), %s260_s21, 7 }
  0x16   : > { %s3154_s26 = scalar_lea.vmem (%p35_p3), %s4191_s0, %s2319_s22  ;;  %s262_s12 = scalar_lea.vmem (%p35_p3), [#allocation6], %s2229_s23 }
  0x17   : > { %v279_v0 = vld [vmem:[%s3154_s26] sm:$0xff] (%p35_p3)  ;;  %v281_v1 = vld [vmem:[%s3154_s26 + $0x8] sm:$0xff] (%p35_p3)  ;;  %v283_v2 = vld [vmem:[%s3154_s26 + $0x10] sm:$0xff] (%p35_p3) }
  0x18   : > { %280 = vst [vmem:[%s262_s12] sm:$0xff] (%p35_p3), %v279_v0  ;;  %282 = vst [vmem:[%s262_s12 + $0x8] sm:$0xff] (%p35_p3), %v281_v1  ;;  %v285_v3 = vld [vmem:[%s3154_s26 + $0x18] sm:$0xff] (%p35_p3)  ;;  %v287_v4 = vld [vmem:[%s3154_s26 + $0x40] sm:$0xff] (%p35_p3) }
  0x19   : > { %284 = vst [vmem:[%s262_s12 + $0x10] sm:$0xff] (%p35_p3), %v283_v2  ;;  %v289_v5 = vld [vmem:[%s3154_s26 + $0x48] sm:$0xff] (%p35_p3)  ;;  %286 = vst [vmem:[%s262_s12 + $0x18] sm:$0xff] (%p35_p3), %v285_v3  ;;  %v291_v6 = vld [vmem:[%s3154_s26 + $0x50] sm:$0xff] (%p35_p3) }
  0x1a   : > { %288 = vst [vmem:[%s262_s12 + $0x20] sm:$0xff] (%p35_p3), %v287_v4  ;;  %290 = vst [vmem:[%s262_s12 + $0x28] sm:$0xff] (%p35_p3), %v289_v5  ;;  %v293_v7 = vld [vmem:[%s3154_s26 + $0x58] sm:$0xff] (%p35_p3)  ;;  %v295_v8 = vld [vmem:[%s3154_s26 + $0x80] sm:$0xff] (%p35_p3) }
  0x1b   : > { %292 = vst [vmem:[%s262_s12 + $0x30] sm:$0xff] %v291_v6  ;;  %294 = vst [vmem:[%s262_s12 + $0x38] sm:$0xff] %v293_v7  ;;  %v297_v9 = vld [vmem:[%s3154_s26 + $0x88] sm:$0xff]  ;;  %v299_v10 = vld [vmem:[%s3154_s26 + $0x90] sm:$0xff] }
  0x1c   : > { %296 = vst [vmem:[%s262_s12 + $0x40] sm:$0xff] %v295_v8  ;;  %v301_v11 = vld [vmem:[%s3154_s26 + $0x98] sm:$0xff]  ;;  %298 = vst [vmem:[%s262_s12 + $0x48] sm:$0xff] %v297_v9  ;;  %v303_v12 = vld [vmem:[%s3154_s26 + $0xc0] sm:$0xff] }
  0x1d   : > { %300 = vst [vmem:[%s262_s12 + $0x50] sm:$0xff] %v299_v10  ;;  %302 = vst [vmem:[%s262_s12 + $0x58] sm:$0xff] %v301_v11  ;;  %v305_v13 = vld [vmem:[%s3154_s26 + $0xc8] sm:$0xff]  ;;  %v307_v14 = vld [vmem:[%s3154_s26 + $0xd0] sm:$0xff] }
  0x1e   : > { %304 = vst [vmem:[%s262_s12 + $0x60] sm:$0xff] %v303_v12  ;;  %306 = vst [vmem:[%s262_s12 + $0x68] sm:$0xff] %v305_v13  ;;  %v309_v15 = vld [vmem:[%s3154_s26 + $0xd8] sm:$0xff] }
  0x1f   : > { %308 = vst [vmem:[%s262_s12 + $0x70] sm:$0xff] %v307_v14  ;;  %310 = vst [vmem:[%s262_s12 + $0x78] sm:$0xff] %v309_v15 }
  0x20 PF: > { %316 = sbr.rel (!%p3144_p6) target bundleno = 44 (0x2c), region = 55  ;;  %s318_s13 = sand.u32 (%p3144_p6), 1, %s3032_s28  }
  0x21   : > { %s2320_s16 = sshll.u32 (%p3144_p6), %s49_s14, 8  ;;  %s2233_s17 = sshll.u32 (%p3144_p6), %s318_s13, 7 }
  0x22   : > { %s3180_s22 = scalar_lea.vmem (%p3144_p6), %s4192_s1, %s2320_s16  ;;  %s320_s20 = scalar_lea.vmem (%p3144_p6), [#allocation7], %s2233_s17 }
  0x23   : > { %v2236_v16 = vld [vmem:[%s3180_s22 + $0x20] sm:$0xff] (%p3144_p6)  ;;  %v2237_v17 = vld [vmem:[%s3180_s22 + $0x28] sm:$0xff] (%p3144_p6)  ;;  %v2238_v18 = vld [vmem:[%s3180_s22 + $0x30] sm:$0xff] (%p3144_p6) }
  0x24   : > { %340 = vst [vmem:[%s320_s20] sm:$0xff] (%p3144_p6), %v2236_v16  ;;  %342 = vst [vmem:[%s320_s20 + $0x8] sm:$0xff] (%p3144_p6), %v2237_v17  ;;  %v2239_v19 = vld [vmem:[%s3180_s22 + $0x38] sm:$0xff] (%p3144_p6)  ;;  %v2240_v20 = vld [vmem:[%s3180_s22 + $0x60] sm:$0xff] (%p3144_p6) }
  0x25   : > { %344 = vst [vmem:[%s320_s20 + $0x10] sm:$0xff] (%p3144_p6), %v2238_v18  ;;  %v2241_v21 = vld [vmem:[%s3180_s22 + $0x68] sm:$0xff] (%p3144_p6)  ;;  %346 = vst [vmem:[%s320_s20 + $0x18] sm:$0xff] (%p3144_p6), %v2239_v19  ;;  %v2242_v22 = vld [vmem:[%s3180_s22 + $0x70] sm:$0xff] (%p3144_p6) }
  0x26   : > { %348 = vst [vmem:[%s320_s20 + $0x20] sm:$0xff] (%p3144_p6), %v2240_v20  ;;  %350 = vst [vmem:[%s320_s20 + $0x28] sm:$0xff] (%p3144_p6), %v2241_v21  ;;  %v2243_v23 = vld [vmem:[%s3180_s22 + $0x78] sm:$0xff] (%p3144_p6)  ;;  %v2244_v24 = vld [vmem:[%s3180_s22 + $0xa0] sm:$0xff] (%p3144_p6) }
  0x27   : > { %352 = vst [vmem:[%s320_s20 + $0x30] sm:$0xff] %v2242_v22  ;;  %354 = vst [vmem:[%s320_s20 + $0x38] sm:$0xff] %v2243_v23  ;;  %v2245_v25 = vld [vmem:[%s3180_s22 + $0xa8] sm:$0xff]  ;;  %v2246_v26 = vld [vmem:[%s3180_s22 + $0xb0] sm:$0xff] }
  0x28   : > { %356 = vst [vmem:[%s320_s20 + $0x40] sm:$0xff] %v2244_v24  ;;  %v2247_v27 = vld [vmem:[%s3180_s22 + $0xb8] sm:$0xff]  ;;  %358 = vst [vmem:[%s320_s20 + $0x48] sm:$0xff] %v2245_v25  ;;  %v2248_v28 = vld [vmem:[%s3180_s22 + $0xe0] sm:$0xff] }
  0x29   : > { %360 = vst [vmem:[%s320_s20 + $0x50] sm:$0xff] %v2246_v26  ;;  %362 = vst [vmem:[%s320_s20 + $0x58] sm:$0xff] %v2247_v27  ;;  %v2249_v29 = vld [vmem:[%s3180_s22 + $0xe8] sm:$0xff]  ;;  %v2250_v30 = vld [vmem:[%s3180_s22 + $0xf0] sm:$0xff] }
  0x2a   : > { %364 = vst [vmem:[%s320_s20 + $0x60] sm:$0xff] %v2248_v28  ;;  %366 = vst [vmem:[%s320_s20 + $0x68] sm:$0xff] %v2249_v29  ;;  %v2251_v31 = vld [vmem:[%s3180_s22 + $0xf8] sm:$0xff] }
  0x2b   : > { %368 = vst [vmem:[%s320_s20 + $0x70] sm:$0xff] %v2250_v30  ;;  %370 = vst [vmem:[%s320_s20 + $0x78] sm:$0xff] %v2251_v31 }
  0x2c PF: > { %p2252_p8 = scmp.ge.s32.totalorder %s3044_s9, 1  ;;  %p375_p9 = scmp.lt.s32.totalorder %s3044_s9, 4 }
  0x2e   : > { %p376_p10 = pnand %p2252_p8, %p375_p9 }
  0x30   : > { %379 = sbr.rel (%p376_p10) target bundleno = 1180 (0x49c), region = 78 }
  0x37   : > { %s382_s14 = sand.u32 1, %s3036_s29   ;;  %s389_s23 = sand.u32 1, %s3028_s27  }
  0x38   : > { %s2253_s24 = sshll.u32 %s382_s14, 7  ;;  %s2254_s25 = sshll.u32 %s389_s23, 7 }
  0x39   : > { %s3203_s26 = sshll.u32 %s3120_s10, 2  ;;  %s441_s12 = ssub.s32 2, %s3120_s10 }
  0x3a   : > { %p436_p11 = scmp.lt.s32.totalorder %s3203_s26, 11  ;;  %s2257_s13 = sshll.u32 %s441_s12, 2 }
  0x3b   : > { %p443_p12 = scmp.lt.s32.totalorder %s2257_s13, 11  ;;  %s3218_s14 = scalar_lea.vmem [#allocation6], %s2253_s24 }
  0x3c   : > { %s437_s16 = scalar_select %p436_p11, %s3203_s26, 11 }
  0x3d   : > { %s4356_s13 = smov (!%p443_p12, %s2257_s13), 11  ;;  %s3220_s23 = scalar_lea.vmem [#allocation7], %s2254_s25 }
  0x3e   : > { %s2256_s9 = sshll.u32 %s437_s16, 3  ;;  %s2258_s29 = sshll.u32 %s4356_s13, 3 }
  0x3f   : > { %s3211_s21 = scalar_lea.vmem %s4196_s5, %s2256_s9  ;;  %s3216_s20 = scalar_lea.vmem %s4197_s6, %s2258_s29 }
  0x40   : > { %p2259_p13 = scmp.ne.s32.totalorder %s3120_s10, 0 }
  0x41   : > { %v3046_v32 = vmov (!%p2259_p13), 0.0  }
  0x42   : > { %452 = sbr.rel (%p2259_p13) target bundleno = 73 (0x49), region = 90  ;;  %453 = vst [vmem:[#allocation2] sm:$0xff] (!%p2259_p13), %v3046_v32  ;;  %454 = vst [vmem:[#allocation3] sm:$0xff] (!%p2259_p13), %v3046_v32 }
  0x43   : > { %455 = vst [vmem:[#allocation4] sm:$0xff] (!%p2259_p13), %v3046_v32  ;;  %456 = vst [vmem:[#allocation5] sm:$0xff] (!%p2259_p13), %v3046_v32 }
  0x49 PF: > { %v459_v33 = vld [vmem:[%s4194_s3 + $0x8] sm:$0xff]  ;;  %v458_v35 = vld [vmem:[%s4194_s3] sm:$0xff]  ;;  %v4200_v40 = vmov 0.0   ;;  %v4206_v46 = vmov 0   ;;  %v461_v53 = vld [vmem:[%s4194_s3 + $0x18] sm:$0xff]  ;;  %s591_s18 = ssub.s32 11, %s3203_s26 }
  0x4a   : > { %v463_v34 = vld [vmem:[%s4194_s3 + $0x28] sm:$0xff]  ;;  %v462_v37 = vld [vmem:[%s4194_s3 + $0x20] sm:$0xff]  ;;  %662 = vmatprep.mubr.f32.mxu0 %v4200_v40  ;;  %733 = vmatprep.mubr.f32.mxu1 %v4200_v40  ;;  %v465_v54 = vld [vmem:[%s4194_s3 + $0x38] sm:$0xff]  ;;  %s1336_s9 = sadd.s32 2, %s3203_s26  ;;  %s1710_s13 = sadd.s32 3, %s3203_s26 }
  0x4b   : > { %v3232_v36 = vpack.c.bf16 %v463_v34, %v459_v33  ;;  %v467_v38 = vld [vmem:[%s4194_s3 + $0x48] sm:$0xff]  ;;  %v3245_v41 = vpack.c.bf16 %v462_v37, %v458_v35  ;;  %v466_v43 = vld [vmem:[%s4194_s3 + $0x40] sm:$0xff]  ;;  %2876 = vset.pattern.permute.xlu0 %v4206_v46  ;;  %2877 = vset.pattern.permute.xlu1 %v4206_v46  ;;  %v3288_v56 = vpack.c.bf16 %v465_v54, %v461_v53  ;;  %v460_v57 = vld [vmem:[%s4194_s3 + $0x10] sm:$0xff]  ;;  %s962_s22 = sadd.s32 1, %s3203_s26  ;;  %s963_s12 = ssub.s32 10, %s3203_s26 }
  0x4c   : > { %v471_v39 = vld [vmem:[%s4194_s3 + $0x68] sm:$0xff]  ;;  %v470_v44 = vld [vmem:[%s4194_s3 + $0x60] sm:$0xff]  ;;  %v464_v58 = vld [vmem:[%s4194_s3 + $0x30] sm:$0xff]  ;;  %s1337_s16 = ssub.s32 9, %s3203_s26  ;;  %p2315_p0 = scmp.ne.s32.totalorder %s3120_s10, 2 }
  0x4d   : > { %v3247_v42 = vpack.c.bf16 %v471_v39, %v467_v38  ;;  %v475_v45 = vld [vmem:[%s4194_s3 + $0x88] sm:$0xff]  ;;  %2322 = vmatprep.subr.bf16.mxu0 %v3232_v36  ;;  %v3265_v48 = vpack.c.bf16 %v470_v44, %v466_v43  ;;  %v474_v49 = vld [vmem:[%s4194_s3 + $0x80] sm:$0xff]  ;;  %v3296_v59 = vpack.c.bf16 %v464_v58, %v460_v57  ;;  %2354 = vmatprep.subr.bf16.mxu1 %v3288_v56  ;;  %v469_v61 = vld [vmem:[%s4194_s3 + $0x58] sm:$0xff] }
  0x4e   : > { %v479_v47 = vld [vmem:[%s4194_s3 + $0xa8] sm:$0xff]  ;;  %2324 = vmatpush1.bf16.msra.mxu0 %v3245_v41  ;;  %v478_v50 = vld [vmem:[%s4194_s3 + $0xa0] sm:$0xff]  ;;  %v473_v62 = vld [vmem:[%s4194_s3 + $0x78] sm:$0xff] }
  0x4f   : > { %2326 = vmatprep.subr.bf16.mxu0 %v3247_v42  ;;  %v3274_v51 = vpack.c.bf16 %v479_v47, %v475_v45  ;;  %v483_v52 = vld [vmem:[%s4194_s3 + $0xc8] sm:$0xff]  ;;  %v3299_v60 = vpack.c.bf16 %v478_v50, %v474_v49  ;;  %v468_v63 = vld [vmem:[%s4194_s3 + $0x50] sm:$0xff]  ;;  %v482_v1 = vld [vmem:[%s4194_s3 + $0xc0] sm:$0xff]  ;;  %2356 = vmatpush1.bf16.msra.mxu1 %v3296_v59  ;;  %v3321_v3 = vpack.c.bf16 %v473_v62, %v469_v61 }
  0x50   : > { %v487_v55 = vld [vmem:[%s4194_s3 + $0xe8] sm:$0xff]  ;;  %v486_v2 = vld [vmem:[%s4194_s3 + $0xe0] sm:$0xff]  ;;  %v472_v4 = vld [vmem:[%s4194_s3 + $0x70] sm:$0xff] }
  0x51   : > { %4264 = vst [vmem:[#allocation8_spill] sm:$0xff] %v3299_v60  ;;  %v3312_v0 = vpack.c.bf16 %v487_v55, %v483_v52  ;;  %v491_v5 = vld [vmem:[%s4194_s3 + $0x108] sm:$0xff]  ;;  %v3332_v7 = vpack.c.bf16 %v472_v4, %v468_v63  ;;  %v477_v8 = vld [vmem:[%s4194_s3 + $0x98] sm:$0xff]  ;;  %2358 = vmatprep.subr.bf16.mxu1 %v3321_v3  ;;  %v476_v10 = vld [vmem:[%s4194_s3 + $0x90] sm:$0xff]  ;;  %v3348_v12 = vpack.c.bf16 %v486_v2, %v482_v1 }
  0x52   : > { %2328 = vmatpush1.bf16.msra.mxu0 %v3265_v48  ;;  %v495_v6 = vld [vmem:[%s4194_s3 + $0x128] sm:$0xff]  ;;  %v481_v9 = vld [vmem:[%s4194_s3 + $0xb8] sm:$0xff]  ;;  %v480_v11 = vld [vmem:[%s4194_s3 + $0xb0] sm:$0xff] }
  0x53   : > { %2330 = vmatprep.subr.bf16.mxu0 %v3274_v51  ;;  %4265 = vst [vmem:[#allocation9_spill] sm:$0xff] %v3312_v0  ;;  %4266 = vst [vmem:[#allocation10_spill] sm:$0xff] %v3348_v12  ;;  %v490_v13 = vld [vmem:[%s4194_s3 + $0x100] sm:$0xff]  ;;  %v3356_v15 = vpack.c.bf16 %v481_v9, %v477_v8  ;;  %v3359_v16 = vpack.c.bf16 %v495_v6, %v491_v5  ;;  %2360 = vmatpush1.bf16.msra.mxu1 %v3332_v7  ;;  %v499_v17 = vld [vmem:[%s4194_s3 + $0x148] sm:$0xff] }
  0x54   : > { %v494_v14 = vld [vmem:[%s4194_s3 + $0x120] sm:$0xff]  ;;  %v3365_v18 = vpack.c.bf16 %v480_v11, %v476_v10  ;;  %v485_v19 = vld [vmem:[%s4194_s3 + $0xd8] sm:$0xff]  ;;  %v503_v21 = vld [vmem:[%s4194_s3 + $0x168] sm:$0xff] }
  0x55   : > { %4267 = vst [vmem:[#allocation11_spill] sm:$0xff] %v3356_v15  ;;  %4268 = vst [vmem:[#allocation12_spill] sm:$0xff] %v3359_v16  ;;  %v489_v20 = vld [vmem:[%s4194_s3 + $0xf8] sm:$0xff]  ;;  %2362 = vmatprep.subr.bf16.mxu1 %v3356_v15  ;;  %v484_v23 = vld [vmem:[%s4194_s3 + $0xd0] sm:$0xff]  ;;  %v3386_v25 = vpack.c.bf16 %v494_v14, %v490_v13  ;;  %v3395_v28 = vpack.c.bf16 %v503_v21, %v499_v17 }
  0x56   : > { %2332 = vmatpush1.bf16.msra.mxu0 %v3299_v60  ;;  %4269 = vst [vmem:[#allocation13_spill] sm:$0xff] %v3365_v18  ;;  %v3377_v22 = vpack.c.bf16 %v489_v20, %v485_v19  ;;  %v488_v24 = vld [vmem:[%s4194_s3 + $0xf0] sm:$0xff]  ;;  %v493_v26 = vld [vmem:[%s4194_s3 + $0x118] sm:$0xff]  ;;  %v498_v29 = vld [vmem:[%s4194_s3 + $0x140] sm:$0xff] }
  0x57   : > { %2334 = vmatprep.subr.bf16.mxu0 %v3312_v0  ;;  %4271 = vst [vmem:[#allocation15_spill] sm:$0xff] %v3386_v25  ;;  %v497_v27 = vld [vmem:[%s4194_s3 + $0x138] sm:$0xff]  ;;  %4272 = vst [vmem:[#allocation16_spill] sm:$0xff] %v3395_v28  ;;  %v502_v30 = vld [vmem:[%s4194_s3 + $0x160] sm:$0xff]  ;;  %2364 = vmatpush1.bf16.msra.mxu1 %v3365_v18  ;;  %v3407_v32 = vpack.c.bf16 %v488_v24, %v484_v23 }
  0x58   : > { %4270 = vst [vmem:[#allocation14_spill] sm:$0xff] %v3377_v22  ;;  %v507_v31 = vld [vmem:[%s4194_s3 + $0x188] sm:$0xff]  ;;  %2366 = vmatprep.subr.bf16.mxu1 %v3377_v22  ;;  %v3413_v34 = vpack.c.bf16 %v497_v27, %v493_v26  ;;  %v492_v35 = vld [vmem:[%s4194_s3 + $0x110] sm:$0xff]  ;;  %v501_v38 = vld [vmem:[%s4194_s3 + $0x158] sm:$0xff]  ;;  %v3428_v43 = vpack.c.bf16 %v502_v30, %v498_v29 }
  0x59   : > { %4273 = vst [vmem:[#allocation17_spill] sm:$0xff] %v3407_v32  ;;  %v511_v33 = vld [vmem:[%s4194_s3 + $0x1a8] sm:$0xff]  ;;  %v496_v37 = vld [vmem:[%s4194_s3 + $0x130] sm:$0xff]  ;;  %v505_v39 = vld [vmem:[%s4194_s3 + $0x178] sm:$0xff] }
  0x5a   : > { %2336 = vmatpush1.bf16.msra.mxu0 %v3348_v12  ;;  %4274 = vst [vmem:[#allocation18_spill] sm:$0xff] %v3413_v34  ;;  %4275 = vst [vmem:[#allocation19_spill] sm:$0xff] %v3428_v43  ;;  %v3431_v44 = vpack.c.bf16 %v511_v33, %v507_v31  ;;  %v506_v45 = vld [vmem:[%s4194_s3 + $0x180] sm:$0xff]  ;;  %v515_v49 = vld [vmem:[%s4194_s3 + $0x1c8] sm:$0xff]  ;;  %v3443_v50 = vpack.c.bf16 %v496_v37, %v492_v35  ;;  %v3449_v53 = vpack.c.bf16 %v505_v39, %v501_v38 }
  0x5b   : > { %2338 = vmatprep.subr.bf16.mxu0 %v3359_v16  ;;  %v510_v47 = vld [vmem:[%s4194_s3 + $0x1a0] sm:$0xff]  ;;  %2368 = vmatpush1.bf16.msra.mxu1 %v3407_v32  ;;  %v519_v52 = vld [vmem:[%s4194_s3 + $0x1e8] sm:$0xff]  ;;  %v500_v54 = vld [vmem:[%s4194_s3 + $0x150] sm:$0xff] }
  0x5c   : > { %4276 = vst [vmem:[#allocation20_spill] sm:$0xff] %v3431_v44  ;;  %4277 = vst [vmem:[#allocation21_spill] sm:$0xff] %v3443_v50  ;;  %2370 = vmatprep.subr.bf16.mxu1 %v3413_v34  ;;  %v504_v55 = vld [vmem:[%s4194_s3 + $0x170] sm:$0xff]  ;;  %v509_v57 = vld [vmem:[%s4194_s3 + $0x198] sm:$0xff]  ;;  %v3464_v61 = vpack.c.bf16 %v510_v47, %v506_v45  ;;  %v3467_v62 = vpack.c.bf16 %v519_v52, %v515_v49 }
  0x5d   : > { %4278 = vst [vmem:[#allocation22_spill] sm:$0xff] %v3449_v53  ;;  %v513_v58 = vld [vmem:[%s4194_s3 + $0x1b8] sm:$0xff]  ;;  %v514_v63 = vld [vmem:[%s4194_s3 + $0x1c0] sm:$0xff]  ;;  %v523_v2 = vld [vmem:[%s4195_s4 + $0x8] sm:$0xff]  ;;  %v3479_v4 = vpack.c.bf16 %v504_v55, %v500_v54 }
  0x5e   : > { %2340 = vmatpush1.bf16.msra.mxu0 %v3386_v25  ;;  %4279 = vst [vmem:[#allocation23_spill] sm:$0xff] %v3464_v61  ;;  %4280 = vst [vmem:[#allocation24_spill] sm:$0xff] %v3467_v62  ;;  %v518_v1 = vld [vmem:[%s4194_s3 + $0x1e0] sm:$0xff]  ;;  %v527_v5 = vld [vmem:[%s4195_s4 + $0x28] sm:$0xff]  ;;  %v3485_v6 = vpack.c.bf16 %v513_v58, %v509_v57 }
  0x5f   : > { %2342 = vmatprep.subr.bf16.mxu0 %v3395_v28  ;;  %2372 = vmatpush1.bf16.msra.mxu1 %v3443_v50  ;;  %4281 = vst [vmem:[#allocation25_spill] sm:$0xff] %v3479_v4  ;;  %v508_v8 = vld [vmem:[%s4194_s3 + $0x190] sm:$0xff]  ;;  %v517_v10 = vld [vmem:[%s4194_s3 + $0x1d8] sm:$0xff]  ;;  %v3500_v13 = vpack.c.bf16 %v518_v1, %v514_v63  ;;  %v3503_v14 = vpack.c.bf16 %v527_v5, %v523_v2  ;;  %v522_v17 = vld [vmem:[%s4195_s4] sm:$0xff] }
  0x60   : > { %2374 = vmatprep.subr.bf16.mxu1 %v3449_v53  ;;  %4282 = vst [vmem:[#allocation26_spill] sm:$0xff] %v3485_v6  ;;  %v512_v9 = vld [vmem:[%s4194_s3 + $0x1b0] sm:$0xff]  ;;  %v521_v11 = vld [vmem:[%s4194_s3 + $0x1f8] sm:$0xff]  ;;  %v526_v19 = vld [vmem:[%s4195_s4 + $0x20] sm:$0xff] }
  0x61   : > { %4283 = vst [vmem:[#allocation27_spill] sm:$0xff] %v3500_v13  ;;  %4284 = vst [vmem:[#allocation28_spill] sm:$0xff] %v3503_v14  ;;  %v531_v20 = vld [vmem:[%s4195_s4 + $0x48] sm:$0xff]  ;;  %v3515_v21 = vpack.c.bf16 %v512_v9, %v508_v8  ;;  %v3521_v24 = vpack.c.bf16 %v521_v11, %v517_v10  ;;  %v516_v26 = vld [vmem:[%s4194_s3 + $0x1d0] sm:$0xff]  ;;  %v3538_v33 = vpack.c.bf16 %v526_v19, %v522_v17 }
  0x62   : > { %2344 = vmatpush1.bf16.msra.mxu0 %v3428_v43  ;;  %v535_v23 = vld [vmem:[%s4195_s4 + $0x68] sm:$0xff]  ;;  %v520_v27 = vld [vmem:[%s4194_s3 + $0x1f0] sm:$0xff]  ;;  %v525_v29 = vld [vmem:[%s4195_s4 + $0x18] sm:$0xff] }
  0x63   : > { %2346 = vmatprep.subr.bf16.mxu0 %v3431_v44  ;;  %2376 = vmatpush1.bf16.msra.mxu1 %v3479_v4  ;;  %4285 = vst [vmem:[#allocation29_spill] sm:$0xff] %v3515_v21  ;;  %4286 = vst [vmem:[#allocation30_spill] sm:$0xff] %v3521_v24  ;;  %v529_v30 = vld [vmem:[%s4195_s4 + $0x38] sm:$0xff]  ;;  %v3536_v31 = vld [vmem:[#allocation2] sm:$0xff]  ;;  %v3541_v35 = vpack.c.bf16 %v535_v23, %v531_v20  ;;  %v3553_v45 = vpack.c.bf16 %v520_v27, %v516_v26  ;;  %v596_v26 = vstv %s3203_s26 }
  0x64   : > { %2378 = vmatprep.subr.bf16.mxu1 %v3485_v6  ;;  %v530_v37 = vld [vmem:[%s4195_s4 + $0x40] sm:$0xff]  ;;  %v539_v39 = vld [vmem:[%s4195_s4 + $0x88] sm:$0xff]  ;;  %v3559_v49 = vpack.c.bf16 %v529_v30, %v525_v29  ;;  %v524_v52 = vld [vmem:[%s4195_s4 + $0x10] sm:$0xff] }
  0x65   : > { %v534_v38 = vld [vmem:[%s4195_s4 + $0x60] sm:$0xff]  ;;  %4287 = vst [vmem:[#allocation31_spill] sm:$0xff] %v3553_v45  ;;  %v543_v47 = vld [vmem:[%s4195_s4 + $0xa8] sm:$0xff]  ;;  %v528_v54 = vld [vmem:[%s4195_s4 + $0x30] sm:$0xff] }
  0x66   : > { %2348 = vmatpush1.bf16.msra.mxu0 %v3464_v61  ;;  %4288 = vst [vmem:[#allocation32_spill] sm:$0xff] %v3559_v49  ;;  %v533_v55 = vld [vmem:[%s4195_s4 + $0x58] sm:$0xff]  ;;  %v3575_v58 = vpack.c.bf16 %v534_v38, %v530_v37  ;;  %v3579_v63 = vpack.c.bf16 %v543_v47, %v539_v39  ;;  %v538_v1 = vld [vmem:[%s4195_s4 + $0x80] sm:$0xff]  ;;  %v547_v5 = vld [vmem:[%s4195_s4 + $0xc8] sm:$0xff]  ;;  %v3591_v8 = vpack.c.bf16 %v528_v54, %v524_v52  ;;  %v780_v39 = vstv %s591_s18 }
  0x67   : > { %2350 = vmatprep.subr.bf16.mxu0 %v3467_v62  ;;  %2380 = vmatpush1.bf16.msra.mxu1 %v3515_v21  ;;  %v537_v57 = vld [vmem:[%s4195_s4 + $0x78] sm:$0xff]  ;;  %v542_v2 = vld [vmem:[%s4195_s4 + $0xa0] sm:$0xff]  ;;  %v551_v9 = vld [vmem:[%s4195_s4 + $0xe8] sm:$0xff] }
  0x68   : > { %2382 = vmatprep.subr.bf16.mxu1 %v3521_v24  ;;  %v3597_v10 = vpack.c.bf16 %v537_v57, %v533_v55  ;;  %v532_v11 = vld [vmem:[%s4195_s4 + $0x50] sm:$0xff]  ;;  %v541_v19 = vld [vmem:[%s4195_s4 + $0x98] sm:$0xff]  ;;  %v3613_v23 = vpack.c.bf16 %v542_v2, %v538_v1  ;;  %v3618_v27 = vpack.c.bf16 %v551_v9, %v547_v5  ;;  %v546_v29 = vld [vmem:[%s4195_s4 + $0xc0] sm:$0xff] }
  0x69   : > { %v536_v17 = vld [vmem:[%s4195_s4 + $0x70] sm:$0xff]  ;;  %v545_v20 = vld [vmem:[%s4195_s4 + $0xb8] sm:$0xff]  ;;  %v550_v30 = vld [vmem:[%s4195_s4 + $0xe0] sm:$0xff] }
  0x6a   : > { %2352 = vmatpush1.bf16.msra.mxu0 %v3500_v13  ;;  %4289 = vst [vmem:[#allocation33_spill] sm:$0xff] %v3613_v23  ;;  %4290 = vst [vmem:[#allocation34_spill] sm:$0xff] %v3618_v27  ;;  %v555_v37 = vld [vmem:[%s4195_s4 + $0x108] sm:$0xff]  ;;  %v3630_v38 = vpack.c.bf16 %v536_v17, %v532_v11  ;;  %v3636_v52 = vpack.c.bf16 %v545_v20, %v541_v19  ;;  %v540_v54 = vld [vmem:[%s4195_s4 + $0x90] sm:$0xff]  ;;  %v3658_v5 = vpack.c.bf16 %v550_v30, %v546_v29 }
  0x6b   : > { %2386 = vmatprep.subr.bf16.mxu0 %v3503_v14  ;;  %2384 = vmatpush1.bf16.msra.mxu1 %v3553_v45  ;;  %v559_v47 = vld [vmem:[%s4195_s4 + $0x128] sm:$0xff]  ;;  %v544_v55 = vld [vmem:[%s4195_s4 + $0xb0] sm:$0xff]  ;;  %v549_v57 = vld [vmem:[%s4195_s4 + $0xd8] sm:$0xff]  ;;  %v1343_v29 = vstv %s1336_s9  ;;  %s1711_s9 = ssub.s32 8, %s3203_s26 }
  0x6c   : > { %2418 = vmatprep.subr.bf16.mxu1 %v3559_v49  ;;  %v553_v1 = vld [vmem:[%s4195_s4 + $0xf8] sm:$0xff]  ;;  %v3655_v2 = vld [vmem:[%s4193_s2] sm:$0xff]  ;;  %4291 = vst [vmem:[#allocation35_spill] sm:$0xff] %v3658_v5  ;;  %v3663_v9 = vpack.c.bf16 %v559_v47, %v555_v37  ;;  %v563_v19 = vld [vmem:[%s4195_s4 + $0x148] sm:$0xff]  ;;  %v3675_v20 = vpack.c.bf16 %v544_v55, %v540_v54 }
  0x6d   : > { %663 = vmatmul.mubr.f32.vlgmr.msra.gmra.mrb[0].mxu0 %v3536_v31  ;;  %vm597_vm0 = vcmp.lt.s32.totalorder %v596_v26, %v3655_v2  ;;  %vm781_vm1 = vcmp.lt.s32.totalorder %v780_v39, %v3655_v2  ;;  %v554_v11 = vld [vmem:[%s4195_s4 + $0x100] sm:$0xff]  ;;  %v567_v30 = vld [vmem:[%s4195_s4 + $0x168] sm:$0xff]  ;;  %v3682_v37 = vpack.c.bf16 %v553_v1, %v549_v57  ;;  %v548_v47 = vld [vmem:[%s4195_s4 + $0xd0] sm:$0xff]  ;;  %vm1344_vm2 = vcmp.lt.s32.totalorder %v1343_v29, %v3655_v2 }
  0x6e   : > { %2388 = vmatpush1.bf16.msra.mxu0 %v3538_v33  ;;  %846 = vmatprep.mubr.f32.mxu0 %v4200_v40  ;;  %4292 = vst [vmem:[#allocation36_spill] sm:$0xff] %v3663_v9  ;;  %v558_v17 = vld [vmem:[%s4195_s4 + $0x120] sm:$0xff]  ;;  %4293 = vst [vmem:[#allocation37_spill] sm:$0xff] %v3675_v20  ;;  %v768_v26 = vsel %vm597_vm0, 1, %v4206_v46  ;;  %v552_v54 = vld [vmem:[%s4195_s4 + $0xf0] sm:$0xff]  ;;  %v952_v57 = vsel %vm781_vm1, 1, %v4206_v46 }
  0x6f   : > { %2390 = vmatprep.subr.bf16.mxu0 %v3541_v35  ;;  %734 = vmatmul.mubr.f32.vlgmr.msra.gmra.mrb[0].mxu1 %v3536_v31  ;;  %4294 = vst [vmem:[#allocation38_spill] sm:$0xff] %v3682_v37  ;;  %v557_v55 = vld [vmem:[%s4195_s4 + $0x118] sm:$0xff]  ;;  %v3701_v1 = vpack.c.bf16 %v558_v17, %v554_v11  ;;  %v571_v39 = vld [vmem:[%s4195_s4 + $0x188] sm:$0xff]  ;;  %v3717_v11 = vpack.c.bf16 %v552_v54, %v548_v47  ;;  %v1717_v17 = vstv %s1710_s13  ;;  %v556_v46 = vld [vmem:[%s4195_s4 + $0x110] sm:$0xff] }
  0x70   : > { %2420 = vmatpush1.bf16.msra.mxu1 %v3591_v8  ;;  %917 = vmatprep.mubr.f32.mxu1 %v4200_v40  ;;  %v561_v40 = vld [vmem:[%s4195_s4 + $0x138] sm:$0xff]  ;;  %vm1718_vm3 = vcmp.lt.s32.totalorder %v1717_v17, %v3655_v2  ;;  %v583_v29 = vld [vmem:[%s4195_s4 + $0x1e8] sm:$0xff] }
  0x71   : > { %2422 = vmatprep.subr.bf16.mxu1 %v3597_v10  ;;  %770 = vperm.xlu0 %2876, %v768_v26   ;;  %4295 = vst [vmem:[#allocation39_spill] sm:$0xff] %v3701_v1  ;;  %v3705_v26 = vpack.c.bf16 %v567_v30, %v563_v19  ;;  %v575_v19 = vld [vmem:[%s4195_s4 + $0x1a8] sm:$0xff]  ;;  %v3723_v30 = vpack.c.bf16 %v561_v40, %v557_v55  ;;  %v565_v47 = vld [vmem:[%s4195_s4 + $0x158] sm:$0xff] }
  0x72   : > { %2392 = vmatpush1.bf16.msra.mxu0 %v3575_v58  ;;  %v569_v54 = vld [vmem:[%s4195_s4 + $0x178] sm:$0xff] }
  0x73   : > { %2394 = vmatprep.subr.bf16.mxu0 %v3579_v63  ;;  %4296 = vst [vmem:[#allocation40_spill] sm:$0xff] %v3705_v26  ;;  %4297 = vst [vmem:[#allocation41_spill] sm:$0xff] %v3723_v30 }
  0x74   : > { %2424 = vmatpush1.bf16.msra.mxu1 %v3630_v38 }
  0x75   : > { %2426 = vmatprep.subr.bf16.mxu1 %v3636_v52  ;;  %954 = vperm.xlu0 %2876, %v952_v57   ;;  %v3745_v57 = vpack.c.bf16 %v575_v19, %v571_v39  ;;  %v3763_v39 = vpack.c.bf16 %v569_v54, %v565_v47  ;;  %v564_v19 = vld [vmem:[%s4195_s4 + $0x150] sm:$0xff] }
  0x76   : > { %2396 = vmatpush1.bf16.msra.mxu0 %v3613_v23  ;;  %v566_v23 = vld [vmem:[%s4195_s4 + $0x160] sm:$0xff] }
  0x77   : > { %2398 = vmatprep.subr.bf16.mxu0 %v3618_v27  ;;  %v562_v27 = vld [vmem:[%s4195_s4 + $0x140] sm:$0xff] }
  0x78   : > { %2428 = vmatpush1.bf16.msra.mxu1 %v3675_v20  ;;  %v3741_v55 = vpack.c.bf16 %v566_v23, %v562_v27  ;;  %v574_v20 = vld [vmem:[%s4195_s4 + $0x1a0] sm:$0xff]  ;;  %v579_v23 = vld [vmem:[%s4195_s4 + $0x1c8] sm:$0xff] }
  0x79   : > { %2430 = vmatprep.subr.bf16.mxu1 %v3682_v37  ;;  %v570_v37 = vld [vmem:[%s4195_s4 + $0x180] sm:$0xff] }
  0x7a   : > { %2400 = vmatpush1.bf16.msra.mxu0 %v3658_v5  ;;  %v4298_v5 = vmov 0   ;;  %v3781_v54 = vpack.c.bf16 %v574_v20, %v570_v37  ;;  %v572_v37 = vld [vmem:[%s4195_s4 + $0x190] sm:$0xff] }
  0x7b   : > { %2402 = vmatprep.subr.bf16.mxu0 %v3663_v9  ;;  %v560_v9 = vld [vmem:[%s4195_s4 + $0x130] sm:$0xff]  ;;  %v1515_v40 = vsel %vm1344_vm2, 1, %v4298_v5  ;;  %v1889_v47 = vsel %vm1718_vm3, 1, %v4298_v5 }
  0x7c   : > { %2432 = vmatpush1.bf16.msra.mxu1 %v3717_v11  ;;  %v3757_v27 = vpack.c.bf16 %v560_v9, %v556_v46  ;;  %1517 = vperm.xlu0 %2876, %v1515_v40   ;;  %v573_v46 = vld [vmem:[%s4195_s4 + $0x198] sm:$0xff]  ;;  %4299 = vst [vmem:[#allocation42_spill] sm:$0xff] %v3781_v54  ;;  %v578_v40 = vld [vmem:[%s4195_s4 + $0x1c0] sm:$0xff] }
  0x7d   : > { %2434 = vmatprep.subr.bf16.mxu1 %v3723_v30  ;;  %v577_v9 = vld [vmem:[%s4195_s4 + $0x1b8] sm:$0xff]  ;;  %v582_v30 = vld [vmem:[%s4195_s4 + $0x1e0] sm:$0xff] }
  0x7e   : > { %2404 = vmatpush1.bf16.msra.mxu0 %v3701_v1  ;;  %v3784_v1 = vpack.c.bf16 %v583_v29, %v579_v23  ;;  %v3796_v20 = vpack.c.bf16 %v577_v9, %v573_v46  ;;  %v576_v23 = vld [vmem:[%s4195_s4 + $0x1b0] sm:$0xff]  ;;  %v581_v29 = vld [vmem:[%s4195_s4 + $0x1d8] sm:$0xff] }
  0x7f   : > { %2406 = vmatprep.subr.bf16.mxu0 %v3705_v26  ;;  %v568_v26 = vld [vmem:[%s4195_s4 + $0x170] sm:$0xff]  ;;  %v3815_v46 = vpack.c.bf16 %v576_v23, %v572_v37  ;;  %v4300_v37 = vmov 0.0   ;;  %v1153_v23 = vstv %s963_s12 }
  0x80   : > { %2436 = vmatpush1.bf16.msra.mxu1 %v3757_v27  ;;  %v3793_v17 = vpack.c.bf16 %v568_v26, %v564_v19  ;;  %1891 = vperm.xlu0 %2876, %v1889_v47   ;;  %v585_v26 = vld [vmem:[%s4195_s4 + $0x1f8] sm:$0xff]  ;;  %v3811_v19 = vpack.c.bf16 %v582_v30, %v578_v40  ;;  %v580_v47 = vld [vmem:[%s4195_s4 + $0x1d0] sm:$0xff]  ;;  %vm1154_vm5 = vcmp.lt.s32.totalorder %v1153_v23, %v3655_v2  ;;  %v592_v23 = vld [vmem:[%s3218_s14] sm:$0xff] }
  0x81   : > { %2438 = vmatprep.subr.bf16.mxu1 %v3763_v39  ;;  %v3818_v9 = vpack.c.bf16 %v585_v26, %v581_v29  ;;  %v3827_v30 = vld [vmem:[#allocation4] sm:$0xff]  ;;  %v1527_v26 = vstv %s1337_s16 }
  0x82   : > { %2408 = vmatpush1.bf16.msra.mxu0 %v3741_v55  ;;  %vm1528_vm6 = vcmp.lt.s32.totalorder %v1527_v26, %v3655_v2 }
  0x83   : > { %2410 = vmatprep.subr.bf16.mxu0 %v3745_v57 }
  0x84   : > { %2440 = vmatpush1.bf16.msra.mxu1 %v3793_v17 }
  0x85   : > { %2442 = vmatprep.subr.bf16.mxu1 %v3796_v20 }
  0x86   : > { %2412 = vmatpush1.bf16.msra.mxu0 %v3781_v54  ;;  %v584_v54 = vld [vmem:[%s4195_s4 + $0x1f0] sm:$0xff] }
  0x87   : > { %2414 = vmatprep.subr.bf16.mxu0 %v3784_v1  ;;  %v3830_v40 = vpack.c.bf16 %v584_v54, %v580_v47  ;;  %v969_v54 = vstv %s962_s22  ;;  %v1325_v47 = vsel %vm1154_vm5, 1, %v4298_v5 }
  0x88   : > { %2444 = vmatpush1.bf16.msra.mxu1 %v3815_v46  ;;  %vm970_vm4 = vcmp.lt.s32.totalorder %v969_v54, %v3655_v2 }
  0x89   : > { %2446 = vmatprep.subr.bf16.mxu1 %v3818_v9  ;;  %v1141_v29 = vsel %vm970_vm4, 1, %v4298_v5 }
  0x8a   : > { %2416 = vmatpush1.bf16.msra.mxu0 %v3811_v19  ;;  %1143 = vperm.xlu1 %2877, %v1141_v29  }
  0x8b   : > { %2450 = vmatprep.subr.bf16.mxu0 %v3232_v36 }
  0x8c   : > { %2448 = vmatpush1.bf16.msra.mxu1 %v3830_v40 }
  0x8d   : > { %847 = vmatmul.mubr.f32.vlgmr.msra.gmra.mrb[2].mxu0 %v3827_v30  ;;  %2482 = vmatprep.subr.bf16.mxu1 %v3288_v56 }
  0x8e   : > { %2452 = vmatpush1.bf16.msra.mxu0 %v3245_v41  ;;  %1035 = vmatprep.mubr.f32.mxu0 %v4300_v37 }
  0x8f   : > { %2454 = vmatprep.subr.bf16.mxu0 %v3247_v42  ;;  %918 = vmatmul.mubr.f32.vlgmr.msra.gmra.mrb[2].mxu1 %v3827_v30 }
  0x90   : > { %2484 = vmatpush1.bf16.msra.mxu1 %v3296_v59  ;;  %1106 = vmatprep.mubr.f32.mxu1 %v4300_v37 }
  0x91   : > { %2486 = vmatprep.subr.bf16.mxu1 %v3321_v3  ;;  %1327 = vperm.xlu1 %2877, %v1325_v47  }
  0x92   : > { %2456 = vmatpush1.bf16.msra.mxu0 %v3265_v48 }
  0x93   : > { %2458 = vmatprep.subr.bf16.mxu0 %v3274_v51 }
  0x94   : > { %2488 = vmatpush1.bf16.msra.mxu1 %v3332_v7 }
  0x95   : > { %2490 = vmatprep.subr.bf16.mxu1 %v3356_v15 }
  0x96   : > { %2460 = vmatpush1.bf16.msra.mxu0 %v3299_v60 }
  0x97   : > { %2462 = vmatprep.subr.bf16.mxu0 %v3312_v0 }
  0x98   : > { %2492 = vmatpush1.bf16.msra.mxu1 %v3365_v18 }
  0x99   : > { %2494 = vmatprep.subr.bf16.mxu1 %v3377_v22 }
  0x9a   : > { %2464 = vmatpush1.bf16.msra.mxu0 %v3348_v12 }
  0x9b   : > { %2466 = vmatprep.subr.bf16.mxu0 %v3359_v16 }
  0x9c   : > { %2496 = vmatpush1.bf16.msra.mxu1 %v3407_v32 }
  0x9d   : > { %2498 = vmatprep.subr.bf16.mxu1 %v3413_v34 }
  0x9e   : > { %2468 = vmatpush1.bf16.msra.mxu0 %v3386_v25 }
  0x9f   : > { %2470 = vmatprep.subr.bf16.mxu0 %v3395_v28 }
  0xa0   : > { %2500 = vmatpush1.bf16.msra.mxu1 %v3443_v50 }
  0xa1   : > { %2502 = vmatprep.subr.bf16.mxu1 %v3449_v53 }
  0xa2   : > { %2472 = vmatpush1.bf16.msra.mxu0 %v3428_v43  ;;  %v2266_v43 = vld [vmem:[%s3220_s23 + $0x70] sm:$0xff] }
  0xa3   : > { %2474 = vmatprep.subr.bf16.mxu0 %v3431_v44 }
  0xa4   : > { %2504 = vmatpush1.bf16.msra.mxu1 %v3479_v4 }
  0xa5   : > { %2506 = vmatprep.subr.bf16.mxu1 %v3485_v6 }
  0xa6   : > { %2476 = vmatpush1.bf16.msra.mxu0 %v3464_v61  ;;  %v594_v61 = vld [vmem:[%s3218_s14 + $0x10] sm:$0xff] }
  0xa7   : > { %2478 = vmatprep.subr.bf16.mxu0 %v3467_v62 }
  0xa8   : > { %2508 = vmatpush1.bf16.msra.mxu1 %v3515_v21 }
  0xa9   : > { %2510 = vmatprep.subr.bf16.mxu1 %v3521_v24 }
  0xaa   : > { %2480 = vmatpush1.bf16.msra.mxu0 %v3500_v13 }
  0xab   : > { %2514 = vmatprep.subr.bf16.mxu0 %v3503_v14  ;;  %v1699_v14 = vsel %vm1528_vm6, 1, %v4298_v5 }
  0xac   : > { %2512 = vmatpush1.bf16.msra.mxu1 %v3553_v45  ;;  %1701 = vperm.xlu1 %2877, %v1699_v14   ;;  %v593_v45 = vld [vmem:[%s3218_s14 + $0x8] sm:$0xff] }
  0xad   : > { %2546 = vmatprep.subr.bf16.mxu1 %v3559_v49  ;;  %v1900_v49 = vstv %s1711_s9 }
  0xae   : > { %vm1901_vm7 = vcmp.lt.s32.totalorder %v1900_v49, %v3655_v2  ;;  %v595_v49 = vld [vmem:[%s3218_s14 + $0x18] sm:$0xff] }
  0xaf   : > { %v2072_v54 = vsel %vm1901_vm7, 1, %v4298_v5 }
  0xb0   : > { %2074 = vperm.xlu1 %2877, %v2072_v54  }
 0x140   : > { %v664_v29 = vpop.f32.mrb[0].mxu0 }
 0x141   : > { %v740_v13 = vadd.f32 %v664_v29, %v592_v23  ;;  %v666_v24 = vpop.f32.mrb[1].mxu0  ;;  %v771_v29 = vpop.permute.xlu0 %770 }
 0x142   : > { %v741_v62 = vadd.f32 %v666_v24, %v593_v45  ;;  %v735_v47 = vpop.f32.mrb[0].mxu1  ;;  %vm772_vm8 = vcmp.eq.s32.totalorder %v771_v29, 1 }
 0x143   : > { %v2261_v21 = vmul.f32 -1.442695, %v740_v13  ;;  %v737_v6 = vpop.f32.mrb[1].mxu1  ;;  %v742_v44 = vadd.f32 %v735_v47, %v594_v61  ;;  %v2265_v47 = vld [vmem:[%s3220_s23 + $0x68] sm:$0xff] }
 0x144   : > { %v2262_v26 = vmul.f32 -1.442695, %v741_v62  ;;  %v743_v2 = vadd.f32 %v737_v6, %v595_v49  ;;  %v2264_v6 = vld [vmem:[%s3220_s23 + $0x60] sm:$0xff] }
 0x145   : > { %2878 = vpow2.f32 %v2261_v21  ;;  %v2263_v14 = vmul.f32 -1.442695, %v742_v44  ;;  %v587_v21 = vld [vmem:[#allocation3] sm:$0xff] }
 0x146   : > { %2880 = vpow2.f32 %v2262_v26 }
 0x147   : > { %2882 = vpow2.f32 %v2263_v14 }
 0x148   : > { %2884 = vtanh.f32 %v743_v2 }
 0x14f   : > { %v2879_v5 = vpop.eup %2878 }
 0x150   : > { %v2881_v54 = vpop.eup %2880  ;;  %v753_v4 = vadd.f32 1.0, %v2879_v5 }
 0x151   : > { %v754_v23 = vadd.f32 1.0, %v2881_v54  ;;  %v2883_v62 = vpop.eup %2882 }
 0x152   : > { %2886 = vrcp.f32 %v753_v4  ;;  %v2885_v13 = vpop.eup %2884  ;;  %v755_v45 = vadd.f32 1.0, %v2883_v62 }
 0x153   : > { %2888 = vrcp.f32 %v754_v23 }
 0x154   : > { %2890 = vrcp.f32 %v755_v45  ;;  %v2267_v45 = vld [vmem:[%s3220_s23 + $0x78] sm:$0xff] }
 0x15c   : > { %v2887_v24 = vpop.eup %2886 }
 0x15d   : > { %v2889_v61 = vpop.eup %2888  ;;  %v764_v44 = vmul.f32 %v2887_v24, %v2885_v13 }
 0x15e   : > { %v763_v26 = vmul.f32 %v2889_v61, %v587_v21  ;;  %v2891_v53 = vpop.eup %2890 }
 0x160   : > { %v848_v49 = vpop.f32.mrb[2].mxu0  ;;  %v765_v14 = vadd.f32 %v764_v44, %v763_v26 }
 0x161   : > { %v924_v2 = vadd.f32 %v2264_v6, %v848_v49  ;;  %v850_v4 = vpop.f32.mrb[3].mxu0 }
 0x162   : > { %2892 = vtanh.f32 %v765_v14  ;;  %v3891_v5 = vsel %vm772_vm8, %v765_v14, %v587_v21  ;;  %v925_v54 = vadd.f32 %v2265_v47, %v850_v4  ;;  %v919_v13 = vpop.f32.mrb[2].mxu1  ;;  %v4304_v4 = vld [vmem:[#allocation38_spill] sm:$0xff] }
 0x163   : > { %v2268_v23 = vmul.f32 -1.442695, %v924_v2  ;;  %v921_v24 = vpop.f32.mrb[3].mxu1  ;;  %v926_v61 = vadd.f32 %v2266_v43, %v919_v13  ;;  %v4303_v2 = vld [vmem:[#allocation34_spill] sm:$0xff] }
 0x164   : > { %v2269_v62 = vmul.f32 -1.442695, %v925_v54  ;;  %v927_v6 = vadd.f32 %v2267_v45, %v921_v24  ;;  %v589_v54 = vld [vmem:[#allocation5] sm:$0xff] }
 0x165   : > { %2894 = vpow2.f32 %v2268_v23  ;;  %v2270_v28 = vmul.f32 -1.442695, %v926_v61  ;;  %v4305_v61 = vld [vmem:[#allocation35_spill] sm:$0xff] }
 0x166   : > { %2896 = vpow2.f32 %v2269_v62 }
 0x167   : > { %2898 = vpow2.f32 %v2270_v28 }
 0x168   : > { %2900 = vtanh.f32 %v927_v6  ;;  %v4307_v6 = vld [vmem:[#allocation41_spill] sm:$0xff] }
 0x16c   : > { %v2893_v44 = vpop.eup %2892 }
 0x16d   : > { %v767_v26 = vmul.f32 %v2893_v44, %v2891_v53  ;;  %v4301_v53 = vld [vmem:[#allocation33_spill] sm:$0xff]  ;;  %v4306_v44 = vld [vmem:[#allocation36_spill] sm:$0xff] }
 0x16f   : > { %v2895_v49 = vpop.eup %2894  ;;  %v3897_v21 = vsel %vm772_vm8, %v767_v26, %v3536_v31  ;;  %v4302_v31 = vld [vmem:[#allocation37_spill] sm:$0xff]  ;;  %v955_v26 = vpop.permute.xlu0 %954 }
 0x170   : > { %v2897_v47 = vpop.eup %2896  ;;  %v937_v14 = vadd.f32 1.0, %v2895_v49  ;;  %959 = vst [vmem:[%s3211_s21] sm:$0xff] %v3897_v21  ;;  %1036 = vmatmul.mubr.f32.vlgmr.msra.gmra.mrb[4].mxu0 %v3897_v21  ;;  %1107 = vmatmul.mubr.f32.vlgmr.msra.gmra.mrb[4].mxu1 %v3897_v21  ;;  %vm956_vm9 = vcmp.eq.s32.totalorder %v955_v26, 1  ;;  %v4315_v26 = vld [vmem:[#allocation20_spill] sm:$0xff] }
 0x171   : > { %v938_v43 = vadd.f32 1.0, %v2897_v47  ;;  %2516 = vmatpush1.bf16.msra.mxu0 %v3538_v33  ;;  %2548 = vmatpush1.bf16.msra.mxu1 %v3591_v8  ;;  %v2899_v28 = vpop.eup %2898  ;;  %v4308_v47 = vld [vmem:[#allocation39_spill] sm:$0xff] }
 0x172   : > { %2902 = vrcp.f32 %v937_v14  ;;  %2518 = vmatprep.subr.bf16.mxu0 %v3541_v35  ;;  %2550 = vmatprep.subr.bf16.mxu1 %v3597_v10  ;;  %v2901_v29 = vpop.eup %2900  ;;  %v939_v62 = vadd.f32 1.0, %v2899_v28  ;;  %v4309_v14 = vld [vmem:[#allocation40_spill] sm:$0xff]  ;;  %v4310_v28 = vld [vmem:[#allocation42_spill] sm:$0xff] }
 0x173   : > { %2904 = vrcp.f32 %v938_v43  ;;  %1219 = vmatprep.mubr.f32.mxu0 %v4300_v37  ;;  %1290 = vmatprep.mubr.f32.mxu1 %v4300_v37 }
 0x174   : > { %2906 = vrcp.f32 %v939_v62 }
 0x175   : > { %2520 = vmatpush1.bf16.msra.mxu0 %v3575_v58  ;;  %2552 = vmatpush1.bf16.msra.mxu1 %v3630_v38 }
 0x176   : > { %2522 = vmatprep.subr.bf16.mxu0 %v3579_v63  ;;  %2554 = vmatprep.subr.bf16.mxu1 %v3636_v52 }
 0x179   : > { %2524 = vmatpush1.bf16.msra.mxu0 %v4301_v53  ;;  %2556 = vmatpush1.bf16.msra.mxu1 %v4302_v31 }
 0x17a   : > { %2526 = vmatprep.subr.bf16.mxu0 %v4303_v2  ;;  %2558 = vmatprep.subr.bf16.mxu1 %v4304_v4 }
 0x17c   : > { %v2903_v23 = vpop.eup %2902 }
 0x17d   : > { %v2905_v13 = vpop.eup %2904  ;;  %v948_v24 = vmul.f32 %v2903_v23, %v2901_v29  ;;  %2528 = vmatpush1.bf16.msra.mxu0 %v4305_v61  ;;  %2560 = vmatpush1.bf16.msra.mxu1 %v3717_v11 }
 0x17e   : > { %v947_v45 = vmul.f32 %v2905_v13, %v589_v54  ;;  %2530 = vmatprep.subr.bf16.mxu0 %v4306_v44  ;;  %2562 = vmatprep.subr.bf16.mxu1 %v4307_v6  ;;  %v2907_v29 = vpop.eup %2906  ;;  %v4312_v13 = vld [vmem:[#allocation22_spill] sm:$0xff] }
 0x180   : > { %v949_v49 = vadd.f32 %v948_v24, %v947_v45  ;;  %v4313_v24 = vld [vmem:[#allocation19_spill] sm:$0xff]  ;;  %v4314_v45 = vld [vmem:[#allocation25_spill] sm:$0xff] }
 0x181   : > { %2532 = vmatpush1.bf16.msra.mxu0 %v4308_v47  ;;  %2564 = vmatpush1.bf16.msra.mxu1 %v3757_v27 }
 0x182   : > { %2908 = vtanh.f32 %v949_v49  ;;  %2534 = vmatprep.subr.bf16.mxu0 %v4309_v14  ;;  %2566 = vmatprep.subr.bf16.mxu1 %v3763_v39  ;;  %v3926_v43 = vsel %vm956_vm9, %v949_v49, %v589_v54  ;;  %v4316_v49 = vld [vmem:[#allocation26_spill] sm:$0xff] }
 0x185   : > { %2536 = vmatpush1.bf16.msra.mxu0 %v3741_v55  ;;  %2568 = vmatpush1.bf16.msra.mxu1 %v3793_v17 }
 0x186   : > { %2538 = vmatprep.subr.bf16.mxu0 %v3745_v57  ;;  %2570 = vmatprep.subr.bf16.mxu1 %v3796_v20 }
 0x189   : > { %2540 = vmatpush1.bf16.msra.mxu0 %v4310_v28  ;;  %2572 = vmatpush1.bf16.msra.mxu1 %v3815_v46 }
 0x18a   : > { %2542 = vmatprep.subr.bf16.mxu0 %v3784_v1  ;;  %2574 = vmatprep.subr.bf16.mxu1 %v3818_v9 }
 0x18c   : > { %v2909_v54 = vpop.eup %2908 }
 0x18d   : > { %2544 = vmatpush1.bf16.msra.mxu0 %v3811_v19  ;;  %2576 = vmatpush1.bf16.msra.mxu1 %v3830_v40  ;;  %v951_v23 = vmul.f32 %v2909_v54, %v2907_v29  ;;  %v4317_v29 = vld [vmem:[#allocation23_spill] sm:$0xff]  ;;  %v4318_v54 = vld [vmem:[#allocation29_spill] sm:$0xff] }
 0x18e   : > { %2578 = vmatprep.subr.bf16.mxu0 %v3232_v36  ;;  %2610 = vmatprep.subr.bf16.mxu1 %v3288_v56 }
 0x18f   : > { %v3942_v62 = vsel %vm956_vm9, %v951_v23, %v3827_v30  ;;  %v4311_v30 = vld [vmem:[#allocation16_spill] sm:$0xff] }
 0x190   : > { %2271 = vst [vmem:[%s3216_s20 + $0x18] sm:$0xff] %v3942_v62  ;;  %1220 = vmatmul.mubr.f32.vlgmr.msra.gmra.mrb[6].mxu0 %v3942_v62  ;;  %1291 = vmatmul.mubr.f32.vlgmr.msra.gmra.mrb[6].mxu1 %v3942_v62  ;;  %v4319_v23 = vld [vmem:[#allocation24_spill] sm:$0xff] }
 0x191   : > { %2580 = vmatpush1.bf16.msra.mxu0 %v3245_v41  ;;  %2612 = vmatpush1.bf16.msra.mxu1 %v3296_v59 }
 0x192   : > { %2582 = vmatprep.subr.bf16.mxu0 %v3247_v42  ;;  %2614 = vmatprep.subr.bf16.mxu1 %v3321_v3 }
 0x193   : > { %1409 = vmatprep.mubr.f32.mxu0 %v4300_v37  ;;  %1480 = vmatprep.mubr.f32.mxu1 %v4300_v37 }
 0x195   : > { %2584 = vmatpush1.bf16.msra.mxu0 %v3265_v48  ;;  %2616 = vmatpush1.bf16.msra.mxu1 %v3332_v7 }
 0x196   : > { %2586 = vmatprep.subr.bf16.mxu0 %v3274_v51  ;;  %2618 = vmatprep.subr.bf16.mxu1 %v3356_v15 }
 0x199   : > { %2588 = vmatpush1.bf16.msra.mxu0 %v3299_v60  ;;  %2620 = vmatpush1.bf16.msra.mxu1 %v3365_v18  ;;  %v2282_v60 = vld [vmem:[%s3220_s23 + $0x58] sm:$0xff] }
 0x19a   : > { %2590 = vmatprep.subr.bf16.mxu0 %v3312_v0  ;;  %2622 = vmatprep.subr.bf16.mxu1 %v3377_v22 }
 0x19d   : > { %2592 = vmatpush1.bf16.msra.mxu0 %v3348_v12  ;;  %2624 = vmatpush1.bf16.msra.mxu1 %v3407_v32  ;;  %v2274_v12 = vld [vmem:[%s3218_s14 + $0x30] sm:$0xff] }
 0x19e   : > { %2594 = vmatprep.subr.bf16.mxu0 %v3359_v16  ;;  %2626 = vmatprep.subr.bf16.mxu1 %v3413_v34 }
 0x1a1   : > { %2596 = vmatpush1.bf16.msra.mxu0 %v3386_v25  ;;  %2628 = vmatpush1.bf16.msra.mxu1 %v3443_v50  ;;  %v4320_v50 = vld [vmem:[#allocation30_spill] sm:$0xff]  ;;  %v4321_v25 = vld [vmem:[#allocation27_spill] sm:$0xff] }
 0x1a2   : > { %2598 = vmatprep.subr.bf16.mxu0 %v4311_v30  ;;  %2630 = vmatprep.subr.bf16.mxu1 %v4312_v13  ;;  %v4322_v13 = vld [vmem:[#allocation31_spill] sm:$0xff] }
 0x1a5   : > { %2600 = vmatpush1.bf16.msra.mxu0 %v4313_v24  ;;  %2632 = vmatpush1.bf16.msra.mxu1 %v4314_v45  ;;  %v4323_v24 = vld [vmem:[#allocation28_spill] sm:$0xff] }
 0x1a6   : > { %2602 = vmatprep.subr.bf16.mxu0 %v4315_v26  ;;  %2634 = vmatprep.subr.bf16.mxu1 %v4316_v49  ;;  %v4324_v45 = vld [vmem:[#allocation32_spill] sm:$0xff]  ;;  %v2273_v49 = vld [vmem:[%s3218_s14 + $0x28] sm:$0xff] }
 0x1a7   : > { %v2272_v26 = vld [vmem:[%s3218_s14 + $0x20] sm:$0xff] }
 0x1a9   : > { %2604 = vmatpush1.bf16.msra.mxu0 %v4317_v29  ;;  %2636 = vmatpush1.bf16.msra.mxu1 %v4318_v54 }
 0x1aa   : > { %2606 = vmatprep.subr.bf16.mxu0 %v4319_v23  ;;  %2638 = vmatprep.subr.bf16.mxu1 %v4320_v50 }
 0x1ad   : > { %2608 = vmatpush1.bf16.msra.mxu0 %v4321_v25  ;;  %2640 = vmatpush1.bf16.msra.mxu1 %v4322_v13  ;;  %v2275_v13 = vld [vmem:[%s3218_s14 + $0x38] sm:$0xff] }
 0x1ae   : > { %2642 = vmatprep.subr.bf16.mxu0 %v4323_v24  ;;  %2674 = vmatprep.subr.bf16.mxu1 %v4324_v45 }
 0x243   : > { %v1037_v30 = vpop.f32.mrb[4].mxu0  ;;  %v1108_v29 = vpop.f32.mrb[4].mxu1 }
 0x244   : > { %v1113_v34 = vadd.f32 %v2272_v26, %v1037_v30  ;;  %v1039_v54 = vpop.f32.mrb[5].mxu0  ;;  %v1110_v16 = vpop.f32.mrb[5].mxu1  ;;  %v1115_v25 = vadd.f32 %v2274_v12, %v1108_v29  ;;  %v2279_v29 = vld [vmem:[%s3220_s23 + $0x40] sm:$0xff] }
 0x245   : > { %v1114_v23 = vadd.f32 %v2273_v49, %v1039_v54  ;;  %v1116_v22 = vadd.f32 %v2275_v13, %v1110_v16 }
 0x246   : > { %v2276_v32 = vmul.f32 -1.442695, %v1113_v34  ;;  %v2278_v24 = vmul.f32 -1.442695, %v1115_v25  ;;  %v2280_v25 = vld [vmem:[%s3220_s23 + $0x48] sm:$0xff] }
 0x247   : > { %v2277_v50 = vmul.f32 -1.442695, %v1114_v23 }
 0x248   : > { %2910 = vpow2.f32 %v2276_v32  ;;  %v1144_v32 = vpop.permute.xlu1 %1143 }
 0x249   : > { %2912 = vpow2.f32 %v2277_v50  ;;  %vm1145_vm10 = vcmp.eq.s32.totalorder %v1144_v32, 1 }
 0x24a   : > { %2914 = vtanh.f32 %v1116_v22 }
 0x24b   : > { %2916 = vpow2.f32 %v2278_v24 }
 0x252   : > { %v2911_v0 = vpop.eup %2910 }
 0x253   : > { %v1126_v45 = vadd.f32 1.0, %v2911_v0  ;;  %v2913_v18 = vpop.eup %2912 }
 0x254   : > { %v1127_v30 = vadd.f32 1.0, %v2913_v18  ;;  %v2915_v26 = vpop.eup %2914 }
 0x255   : > { %2918 = vrcp.f32 %v1126_v45  ;;  %v2917_v34 = vpop.eup %2916 }
 0x256   : > { %2920 = vrcp.f32 %v1127_v30  ;;  %v1128_v12 = vadd.f32 1.0, %v2917_v34 }
 0x258   : > { %2922 = vrcp.f32 %v1128_v12 }
 0x25f   : > { %v2919_v49 = vpop.eup %2918 }
 0x260   : > { %v1137_v54 = vmul.f32 %v2919_v49, %v2915_v26  ;;  %v2921_v50 = vpop.eup %2920  ;;  %v2281_v49 = vld [vmem:[%s3220_s23 + $0x50] sm:$0xff] }
 0x261   : > { %v1136_v16 = vmul.f32 %v2921_v50, %v3891_v5 }
 0x262   : > { %v2923_v15 = vpop.eup %2922 }
 0x263   : > { %v1221_v0 = vpop.f32.mrb[6].mxu0  ;;  %v1292_v22 = vpop.f32.mrb[6].mxu1  ;;  %v1138_v13 = vadd.f32 %v1137_v54, %v1136_v16 }
 0x264   : > { %v1297_v24 = vadd.f32 %v2279_v29, %v1221_v0  ;;  %v1223_v18 = vpop.f32.mrb[7].mxu0  ;;  %v1294_v45 = vpop.f32.mrb[7].mxu1  ;;  %v1299_v50 = vadd.f32 %v2281_v49, %v1292_v22 }
 0x265   : > { %v1298_v23 = vadd.f32 %v2280_v25, %v1223_v18  ;;  %2924 = vtanh.f32 %v1138_v13  ;;  %v3991_v30 = vsel %vm1145_vm10, %v1138_v13, %v3891_v5  ;;  %v1300_v54 = vadd.f32 %v2282_v60, %v1294_v45 }
 0x266   : > { %v2283_v26 = vmul.f32 -1.442695, %v1297_v24  ;;  %v2285_v16 = vmul.f32 -1.442695, %v1299_v50 }
 0x267   : > { %v2284_v34 = vmul.f32 -1.442695, %v1298_v23  ;;  %v1328_v23 = vpop.permute.xlu1 %1327 }
 0x268   : > { %2926 = vpow2.f32 %v2283_v26  ;;  %vm1329_vm11 = vcmp.eq.s32.totalorder %v1328_v23, 1  ;;  %v4349_v23 = vld [vmem:[#allocation32_spill] sm:$0xff] }
 0x269   : > { %2928 = vpow2.f32 %v2284_v34 }
 0x26a   : > { %2930 = vtanh.f32 %v1300_v54 }
 0x26b   : > { %2932 = vpow2.f32 %v2285_v16  ;;  %v4336_v16 = vld [vmem:[#allocation16_spill] sm:$0xff] }
 0x26f   : > { %v2925_v29 = vpop.eup %2924 }
 0x270   : > { %v1140_v0 = vmul.f32 %v2925_v29, %v2923_v15  ;;  %v4332_v29 = vld [vmem:[#allocation12_spill] sm:$0xff] }
 0x272   : > { %v2927_v12 = vpop.eup %2926  ;;  %v3997_v25 = vsel %vm1145_vm10, %v1140_v0, %v3897_v21  ;;  %v4337_v0 = vld [vmem:[#allocation22_spill] sm:$0xff] }
 0x273   : > { %v1310_v5 = vadd.f32 1.0, %v2927_v12  ;;  %v2929_v13 = vpop.eup %2928  ;;  %2286 = vst [vmem:[%s3211_s21 + $0x8] sm:$0xff] %v3997_v25  ;;  %1410 = vmatmul.mubr.f32.vlgmr.msra.gmra.mrb[8].mxu0 %v3997_v25  ;;  %1481 = vmatmul.mubr.f32.vlgmr.msra.gmra.mrb[8].mxu1 %v3997_v25  ;;  %v4338_v12 = vld [vmem:[#allocation19_spill] sm:$0xff] }
 0x274   : > { %v1311_v60 = vadd.f32 1.0, %v2929_v13  ;;  %2644 = vmatpush1.bf16.msra.mxu0 %v3538_v33  ;;  %2676 = vmatpush1.bf16.msra.mxu1 %v3591_v8  ;;  %v2931_v15 = vpop.eup %2930  ;;  %v4340_v13 = vld [vmem:[#allocation20_spill] sm:$0xff] }
 0x275   : > { %2934 = vrcp.f32 %v1310_v5  ;;  %2646 = vmatprep.subr.bf16.mxu0 %v3541_v35  ;;  %2678 = vmatprep.subr.bf16.mxu1 %v3597_v10  ;;  %v2933_v21 = vpop.eup %2932  ;;  %v4339_v5 = vld [vmem:[#allocation25_spill] sm:$0xff] }
 0x276   : > { %2936 = vrcp.f32 %v1311_v60  ;;  %1593 = vmatprep.mubr.f32.mxu0 %v4300_v37  ;;  %1664 = vmatprep.mubr.f32.mxu1 %v4300_v37  ;;  %v1312_v18 = vadd.f32 1.0, %v2933_v21  ;;  %v4341_v60 = vld [vmem:[#allocation26_spill] sm:$0xff]  ;;  %v4343_v21 = vld [vmem:[#allocation29_spill] sm:$0xff] }
 0x278   : > { %2648 = vmatpush1.bf16.msra.mxu0 %v3575_v58  ;;  %2680 = vmatpush1.bf16.msra.mxu1 %v3630_v38  ;;  %2938 = vrcp.f32 %v1312_v18  ;;  %v4347_v18 = vld [vmem:[#allocation31_spill] sm:$0xff] }
 0x279   : > { %2650 = vmatprep.subr.bf16.mxu0 %v3579_v63  ;;  %2682 = vmatprep.subr.bf16.mxu1 %v3636_v52 }
 0x27c   : > { %2652 = vmatpush1.bf16.msra.mxu0 %v4301_v53  ;;  %2684 = vmatpush1.bf16.msra.mxu1 %v4302_v31 }
 0x27d   : > { %2654 = vmatprep.subr.bf16.mxu0 %v4303_v2  ;;  %2686 = vmatprep.subr.bf16.mxu1 %v4304_v4 }
 0x27f   : > { %v2935_v32 = vpop.eup %2934 }
 0x280   : > { %v1321_v22 = vmul.f32 %v2935_v32, %v2931_v15  ;;  %v2937_v24 = vpop.eup %2936  ;;  %2656 = vmatpush1.bf16.msra.mxu0 %v4305_v61  ;;  %2688 = vmatpush1.bf16.msra.mxu1 %v3717_v11  ;;  %v4342_v15 = vld [vmem:[#allocation23_spill] sm:$0xff]  ;;  %v4344_v32 = vld [vmem:[#allocation24_spill] sm:$0xff] }
 0x281   : > { %v1320_v45 = vmul.f32 %v2937_v24, %v3926_v43  ;;  %2658 = vmatprep.subr.bf16.mxu0 %v4306_v44  ;;  %2690 = vmatprep.subr.bf16.mxu1 %v4307_v6  ;;  %v4346_v24 = vld [vmem:[#allocation27_spill] sm:$0xff] }
 0x283   : > { %v1322_v26 = vadd.f32 %v1321_v22, %v1320_v45  ;;  %v4345_v22 = vld [vmem:[#allocation30_spill] sm:$0xff]  ;;  %v4348_v45 = vld [vmem:[#allocation28_spill] sm:$0xff] }
 0x284   : > { %2660 = vmatpush1.bf16.msra.mxu0 %v4308_v47  ;;  %2692 = vmatpush1.bf16.msra.mxu1 %v3757_v27 }
 0x285   : > { %2940 = vtanh.f32 %v1322_v26  ;;  %v4026_v34 = vsel %vm1329_vm11, %v1322_v26, %v3926_v43  ;;  %2662 = vmatprep.subr.bf16.mxu0 %v4309_v14  ;;  %2694 = vmatprep.subr.bf16.mxu1 %v3763_v39  ;;  %v2939_v43 = vpop.eup %2938  ;;  %v2288_v26 = vld [vmem:[%s3218_s14 + $0x40] sm:$0xff] }
 0x288   : > { %2664 = vmatpush1.bf16.msra.mxu0 %v3741_v55  ;;  %2696 = vmatpush1.bf16.msra.mxu1 %v3793_v17 }
 0x289   : > { %2666 = vmatprep.subr.bf16.mxu0 %v3745_v57  ;;  %2698 = vmatprep.subr.bf16.mxu1 %v3796_v20 }
 0x28c   : > { %2668 = vmatpush1.bf16.msra.mxu0 %v4310_v28  ;;  %2700 = vmatpush1.bf16.msra.mxu1 %v3815_v46 }
 0x28d   : > { %2670 = vmatprep.subr.bf16.mxu0 %v3784_v1  ;;  %2702 = vmatprep.subr.bf16.mxu1 %v3818_v9 }
 0x28f   : > { %v2941_v49 = vpop.eup %2940 }
 0x290   : > { %v1324_v50 = vmul.f32 %v2941_v49, %v2939_v43  ;;  %2672 = vmatpush1.bf16.msra.mxu0 %v3811_v19  ;;  %2704 = vmatpush1.bf16.msra.mxu1 %v3830_v40  ;;  %v2289_v43 = vld [vmem:[%s3218_s14 + $0x48] sm:$0xff] }
 0x291   : > { %2706 = vmatprep.subr.bf16.mxu0 %v3232_v36  ;;  %2738 = vmatprep.subr.bf16.mxu1 %v3288_v56  ;;  %v4325_v36 = vld [vmem:[#allocation11_spill] sm:$0xff]  ;;  %v4326_v56 = vld [vmem:[#allocation8_spill] sm:$0xff] }
 0x292   : > { %v4044_v54 = vsel %vm1329_vm11, %v1324_v50, %v3942_v62  ;;  %v4331_v62 = vld [vmem:[#allocation17_spill] sm:$0xff] }
 0x293   : > { %2287 = vst [vmem:[%s3216_s20 + $0x10] sm:$0xff] %v4044_v54  ;;  %1594 = vmatmul.mubr.f32.vlgmr.msra.gmra.mrb[10].mxu0 %v4044_v54  ;;  %1665 = vmatmul.mubr.f32.vlgmr.msra.gmra.mrb[10].mxu1 %v4044_v54 }
 0x294   : > { %2708 = vmatpush1.bf16.msra.mxu0 %v3245_v41  ;;  %2740 = vmatpush1.bf16.msra.mxu1 %v3296_v59  ;;  %v4327_v41 = vld [vmem:[#allocation13_spill] sm:$0xff] }
 0x295   : > { %2710 = vmatprep.subr.bf16.mxu0 %v3247_v42  ;;  %2742 = vmatprep.subr.bf16.mxu1 %v3321_v3  ;;  %v4328_v59 = vld [vmem:[#allocation9_spill] sm:$0xff]  ;;  %v4329_v42 = vld [vmem:[#allocation14_spill] sm:$0xff] }
 0x296   : > { %1783 = vmatprep.mubr.f32.mxu0 %v4300_v37  ;;  %1854 = vmatprep.mubr.f32.mxu1 %v4300_v37  ;;  %v4330_v3 = vld [vmem:[#allocation10_spill] sm:$0xff] }
 0x298   : > { %2712 = vmatpush1.bf16.msra.mxu0 %v3265_v48  ;;  %2744 = vmatpush1.bf16.msra.mxu1 %v3332_v7  ;;  %v4333_v48 = vld [vmem:[#allocation18_spill] sm:$0xff]  ;;  %v4334_v7 = vld [vmem:[#allocation15_spill] sm:$0xff] }
 0x299   : > { %2714 = vmatprep.subr.bf16.mxu0 %v3274_v51  ;;  %2746 = vmatprep.subr.bf16.mxu1 %v4325_v36  ;;  %v4335_v51 = vld [vmem:[#allocation21_spill] sm:$0xff] }
 0x29c   : > { %2716 = vmatpush1.bf16.msra.mxu0 %v4326_v56  ;;  %2748 = vmatpush1.bf16.msra.mxu1 %v4327_v41 }
 0x29d   : > { %2718 = vmatprep.subr.bf16.mxu0 %v4328_v59  ;;  %2750 = vmatprep.subr.bf16.mxu1 %v4329_v42 }
 0x2a0   : > { %2720 = vmatpush1.bf16.msra.mxu0 %v4330_v3  ;;  %2752 = vmatpush1.bf16.msra.mxu1 %v4331_v62  ;;  %v2290_v62 = vld [vmem:[%s3218_s14 + $0x50] sm:$0xff] }
 0x2a1   : > { %2722 = vmatprep.subr.bf16.mxu0 %v4332_v29  ;;  %2754 = vmatprep.subr.bf16.mxu1 %v4333_v48  ;;  %v2291_v48 = vld [vmem:[%s3218_s14 + $0x58] sm:$0xff] }
 0x2a4   : > { %2724 = vmatpush1.bf16.msra.mxu0 %v4334_v7  ;;  %2756 = vmatpush1.bf16.msra.mxu1 %v4335_v51 }
 0x2a5   : > { %2726 = vmatprep.subr.bf16.mxu0 %v4336_v16  ;;  %2758 = vmatprep.subr.bf16.mxu1 %v4337_v0 }
 0x2a8   : > { %2728 = vmatpush1.bf16.msra.mxu0 %v4338_v12  ;;  %2760 = vmatpush1.bf16.msra.mxu1 %v4339_v5 }
 0x2a9   : > { %2730 = vmatprep.subr.bf16.mxu0 %v4340_v13  ;;  %2762 = vmatprep.subr.bf16.mxu1 %v4341_v60 }
 0x2ac   : > { %2732 = vmatpush1.bf16.msra.mxu0 %v4342_v15  ;;  %2764 = vmatpush1.bf16.msra.mxu1 %v4343_v21 }
 0x2ad   : > { %2734 = vmatprep.subr.bf16.mxu0 %v4344_v32  ;;  %2766 = vmatprep.subr.bf16.mxu1 %v4345_v22 }
 0x2b0   : > { %2736 = vmatpush1.bf16.msra.mxu0 %v4346_v24  ;;  %2768 = vmatpush1.bf16.msra.mxu1 %v4347_v18  ;;  %v2295_v24 = vld [vmem:[%s3220_s23 + $0x20] sm:$0xff]  ;;  %v1518_v18 = vpop.permute.xlu0 %1517 }
 0x2b1   : > { %2770 = vmatprep.subr.bf16.mxu0 %v4348_v45  ;;  %2802 = vmatprep.subr.bf16.mxu1 %v4349_v23  ;;  %v2296_v23 = vld [vmem:[%s3220_s23 + $0x28] sm:$0xff]  ;;  %vm1519_vm12 = vcmp.eq.s32.totalorder %v1518_v18, 1 }
 0x346   : > { %v1411_v49 = vpop.f32.mrb[8].mxu0  ;;  %v1482_v50 = vpop.f32.mrb[8].mxu1 }
 0x347   : > { %v1487_v36 = vadd.f32 %v2288_v26, %v1411_v49  ;;  %v1413_v56 = vpop.f32.mrb[9].mxu0  ;;  %v1484_v41 = vpop.f32.mrb[9].mxu1  ;;  %v1489_v29 = vadd.f32 %v2290_v62, %v1482_v50  ;;  %v2297_v62 = vld [vmem:[%s3220_s23 + $0x30] sm:$0xff] }
 0x348   : > { %v1488_v59 = vadd.f32 %v2289_v43, %v1413_v56  ;;  %v1490_v7 = vadd.f32 %v2291_v48, %v1484_v41  ;;  %v2298_v48 = vld [vmem:[%s3220_s23 + $0x38] sm:$0xff] }
 0x349   : > { %v2292_v42 = vmul.f32 -1.442695, %v1487_v36  ;;  %v2294_v51 = vmul.f32 -1.442695, %v1489_v29 }
 0x34a   : > { %v2293_v3 = vmul.f32 -1.442695, %v1488_v59 }
 0x34b   : > { %2942 = vpow2.f32 %v2292_v42 }
 0x34c   : > { %2944 = vpow2.f32 %v2293_v3 }
 0x34d   : > { %2946 = vtanh.f32 %v1490_v7 }
 0x34e   : > { %2948 = vpow2.f32 %v2294_v51 }
 0x355   : > { %v2943_v16 = vpop.eup %2942 }
 0x356   : > { %v1500_v0 = vadd.f32 1.0, %v2943_v16  ;;  %v2945_v12 = vpop.eup %2944 }
 0x357   : > { %v1501_v5 = vadd.f32 1.0, %v2945_v12  ;;  %v2947_v13 = vpop.eup %2946 }
 0x358   : > { %2950 = vrcp.f32 %v1500_v0  ;;  %v2949_v60 = vpop.eup %2948 }
 0x359   : > { %2952 = vrcp.f32 %v1501_v5  ;;  %v1502_v22 = vadd.f32 1.0, %v2949_v60 }
 0x35b   : > { %2954 = vrcp.f32 %v1502_v22 }
 0x362   : > { %v2951_v15 = vpop.eup %2950 }
 0x363   : > { %v1511_v21 = vmul.f32 %v2951_v15, %v2947_v13  ;;  %v2953_v32 = vpop.eup %2952 }
 0x364   : > { %v1510_v45 = vmul.f32 %v2953_v32, %v3991_v30 }
 0x365   : > { %v2955_v7 = vpop.eup %2954 }
 0x366   : > { %v1595_v26 = vpop.f32.mrb[10].mxu0  ;;  %v1666_v43 = vpop.f32.mrb[10].mxu1  ;;  %v1512_v49 = vadd.f32 %v1511_v21, %v1510_v45  ;;  %v1896_v45 = vld [vmem:[%s3220_s23] sm:$0xff] }
 0x367   : > { %v1671_v50 = vadd.f32 %v2295_v24, %v1595_v26  ;;  %v1597_v36 = vpop.f32.mrb[11].mxu0  ;;  %v1668_v56 = vpop.f32.mrb[11].mxu1  ;;  %v1673_v29 = vadd.f32 %v2297_v62, %v1666_v43  ;;  %v1897_v43 = vld [vmem:[%s3220_s23 + $0x8] sm:$0xff] }
 0x368   : > { %v1672_v41 = vadd.f32 %v2296_v23, %v1597_v36  ;;  %2956 = vtanh.f32 %v1512_v49  ;;  %v4093_v42 = vsel %vm1519_vm12, %v1512_v49, %v3991_v30  ;;  %v1674_v51 = vadd.f32 %v2298_v48, %v1668_v56  ;;  %v1892_v23 = vpop.permute.xlu0 %1891 }
 0x369   : > { %v2299_v59 = vmul.f32 -1.442695, %v1671_v50  ;;  %v2301_v0 = vmul.f32 -1.442695, %v1673_v29  ;;  %vm1893_vm14 = vcmp.eq.s32.totalorder %v1892_v23, 1 }
 0x36a   : > { %v2300_v3 = vmul.f32 -1.442695, %v1672_v41 }
 0x36b   : > { %2958 = vpow2.f32 %v2299_v59 }
 0x36c   : > { %2960 = vpow2.f32 %v2300_v3 }
 0x36d   : > { %2962 = vtanh.f32 %v1674_v51 }
 0x36e   : > { %2964 = vpow2.f32 %v2301_v0 }
 0x372   : > { %v2957_v16 = vpop.eup %2956 }
 0x373   : > { %v1514_v12 = vmul.f32 %v2957_v16, %v2955_v7  ;;  %v1898_v7 = vld [vmem:[%s3220_s23 + $0x10] sm:$0xff]  ;;  %v1899_v16 = vld [vmem:[%s3220_s23 + $0x18] sm:$0xff] }
 0x375   : > { %v2959_v5 = vpop.eup %2958  ;;  %v4099_v60 = vsel %vm1519_vm12, %v1514_v12, %v3997_v25 }
 0x376   : > { %v1684_v13 = vadd.f32 1.0, %v2959_v5  ;;  %v2961_v30 = vpop.eup %2960  ;;  %2302 = vst [vmem:[%s3211_s21 + $0x10] sm:$0xff] %v4099_v60  ;;  %1784 = vmatmul.mubr.f32.vlgmr.msra.gmra.mrb[12].mxu0 %v4099_v60  ;;  %1855 = vmatmul.mubr.f32.vlgmr.msra.gmra.mrb[12].mxu1 %v4099_v60 }
 0x377   : > { %v1685_v15 = vadd.f32 1.0, %v2961_v30  ;;  %2772 = vmatpush1.bf16.msra.mxu0 %v3538_v33  ;;  %2804 = vmatpush1.bf16.msra.mxu1 %v3591_v8  ;;  %v2963_v33 = vpop.eup %2962 }
 0x378   : > { %2966 = vrcp.f32 %v1684_v13  ;;  %2774 = vmatprep.subr.bf16.mxu0 %v3541_v35  ;;  %2806 = vmatprep.subr.bf16.mxu1 %v3597_v10  ;;  %v2965_v35 = vpop.eup %2964 }
 0x379   : > { %2968 = vrcp.f32 %v1685_v15  ;;  %1966 = vmatprep.mubr.f32.mxu0 %v4300_v37  ;;  %2037 = vmatprep.mubr.f32.mxu1 %v4300_v37 }
 0x37b   : > { %2776 = vmatpush1.bf16.msra.mxu0 %v3575_v58  ;;  %2808 = vmatpush1.bf16.msra.mxu1 %v3630_v38  ;;  %v1686_v58 = vadd.f32 1.0, %v2965_v35  ;;  %v1702_v38 = vpop.permute.xlu1 %1701 }
 0x37c   : > { %2778 = vmatprep.subr.bf16.mxu0 %v3579_v63  ;;  %2810 = vmatprep.subr.bf16.mxu1 %v3636_v52  ;;  %vm1703_vm13 = vcmp.eq.s32.totalorder %v1702_v38, 1 }
 0x37d   : > { %2970 = vrcp.f32 %v1686_v58 }
 0x37f   : > { %2780 = vmatpush1.bf16.msra.mxu0 %v4301_v53  ;;  %2812 = vmatpush1.bf16.msra.mxu1 %v4302_v31 }
 0x380   : > { %2782 = vmatprep.subr.bf16.mxu0 %v4303_v2  ;;  %2814 = vmatprep.subr.bf16.mxu1 %v4304_v4  ;;  %v2306_v4 = vld [vmem:[%s3218_s14 + $0x70] sm:$0xff] }
 0x382   : > { %v2967_v8 = vpop.eup %2966 }
 0x383   : > { %v1695_v10 = vmul.f32 %v2967_v8, %v2963_v33  ;;  %v2969_v37 = vpop.eup %2968  ;;  %2784 = vmatpush1.bf16.msra.mxu0 %v4305_v61  ;;  %2816 = vmatpush1.bf16.msra.mxu1 %v3717_v11 }
 0x384   : > { %v1694_v63 = vmul.f32 %v2969_v37, %v4026_v34  ;;  %2786 = vmatprep.subr.bf16.mxu0 %v4306_v44  ;;  %2818 = vmatprep.subr.bf16.mxu1 %v4307_v6  ;;  %v2307_v44 = vld [vmem:[%s3218_s14 + $0x78] sm:$0xff] }
 0x386   : > { %v1696_v52 = vadd.f32 %v1695_v10, %v1694_v63 }
 0x387   : > { %2788 = vmatpush1.bf16.msra.mxu0 %v4308_v47  ;;  %2820 = vmatpush1.bf16.msra.mxu1 %v3757_v27  ;;  %v2971_v27 = vpop.eup %2970 }
 0x388   : > { %2972 = vtanh.f32 %v1696_v52  ;;  %2790 = vmatprep.subr.bf16.mxu0 %v4309_v14  ;;  %2822 = vmatprep.subr.bf16.mxu1 %v3763_v39  ;;  %v4130_v11 = vsel %vm1703_vm13, %v1696_v52, %v4026_v34 }
 0x38b   : > { %2792 = vmatpush1.bf16.msra.mxu0 %v3741_v55  ;;  %2824 = vmatpush1.bf16.msra.mxu1 %v3793_v17  ;;  %v2305_v17 = vld [vmem:[%s3218_s14 + $0x68] sm:$0xff] }
 0x38c   : > { %2794 = vmatprep.subr.bf16.mxu0 %v3745_v57  ;;  %2826 = vmatprep.subr.bf16.mxu1 %v3796_v20 }
 0x38f   : > { %2796 = vmatpush1.bf16.msra.mxu0 %v4310_v28  ;;  %2828 = vmatpush1.bf16.msra.mxu1 %v3815_v46 }
 0x390   : > { %2798 = vmatprep.subr.bf16.mxu0 %v3784_v1  ;;  %2830 = vmatprep.subr.bf16.mxu1 %v3818_v9  ;;  %v2304_v1 = vld [vmem:[%s3218_s14 + $0x60] sm:$0xff] }
 0x392   : > { %v2973_v39 = vpop.eup %2972 }
 0x393   : > { %2800 = vmatpush1.bf16.msra.mxu0 %v3811_v19  ;;  %2832 = vmatpush1.bf16.msra.mxu1 %v3830_v40  ;;  %v1698_v55 = vmul.f32 %v2973_v39, %v2971_v27  ;;  %v2075_v27 = vpop.permute.xlu1 %2074 }
 0x394   : > { %vm2076_vm15 = vcmp.eq.s32.totalorder %v2075_v27, 1 }
 0x395   : > { %v4144_v57 = vsel %vm1703_vm13, %v1698_v55, %v4044_v54 }
 0x396   : > { %2303 = vst [vmem:[%s3216_s20 + $0x8] sm:$0xff] %v4144_v57  ;;  %1967 = vmatmul.mubr.f32.vlgmr.msra.gmra.mrb[14].mxu0 %v4144_v57  ;;  %2038 = vmatmul.mubr.f32.vlgmr.msra.gmra.mrb[14].mxu1 %v4144_v57 }
 0x449   : > { %v1785_v20 = vpop.f32.mrb[12].mxu0  ;;  %v1856_v46 = vpop.f32.mrb[12].mxu1 }
 0x44a   : > { %v1861_v19 = vadd.f32 %v2304_v1, %v1785_v20  ;;  %v1787_v9 = vpop.f32.mrb[13].mxu0  ;;  %v1858_v40 = vpop.f32.mrb[13].mxu1  ;;  %v1863_v61 = vadd.f32 %v2306_v4, %v1856_v46 }
 0x44b   : > { %v1862_v53 = vadd.f32 %v2305_v17, %v1787_v9  ;;  %v1864_v6 = vadd.f32 %v2307_v44, %v1858_v40 }
 0x44c   : > { %v2308_v31 = vmul.f32 -1.442695, %v1861_v19  ;;  %v2310_v47 = vmul.f32 -1.442695, %v1863_v61 }
 0x44d   : > { %v2309_v2 = vmul.f32 -1.442695, %v1862_v53 }
 0x44e   : > { %2974 = vpow2.f32 %v2308_v31 }
 0x44f   : > { %2976 = vpow2.f32 %v2309_v2 }
 0x450   : > { %2978 = vtanh.f32 %v1864_v6 }
 0x451   : > { %2980 = vpow2.f32 %v2310_v47 }
 0x458   : > { %v2975_v14 = vpop.eup %2974 }
 0x459   : > { %v1874_v28 = vadd.f32 1.0, %v2975_v14  ;;  %v2977_v25 = vpop.eup %2976 }
 0x45a   : > { %v1875_v34 = vadd.f32 1.0, %v2977_v25  ;;  %v2979_v54 = vpop.eup %2978 }
 0x45b   : > { %2982 = vrcp.f32 %v1874_v28  ;;  %v2981_v21 = vpop.eup %2980 }
 0x45c   : > { %2984 = vrcp.f32 %v1875_v34  ;;  %v1876_v18 = vadd.f32 1.0, %v2981_v21 }
 0x45e   : > { %2986 = vrcp.f32 %v1876_v18 }
 0x465   : > { %v2983_v32 = vpop.eup %2982 }
 0x466   : > { %v1885_v22 = vmul.f32 %v2983_v32, %v2979_v54  ;;  %v2985_v24 = vpop.eup %2984 }
 0x467   : > { %v1884_v26 = vmul.f32 %v2985_v24, %v4093_v42 }
 0x468   : > { %v2987_v0 = vpop.eup %2986 }
 0x469   : > { %v1968_v49 = vpop.f32.mrb[14].mxu0  ;;  %v2039_v50 = vpop.f32.mrb[14].mxu1  ;;  %v1886_v36 = vadd.f32 %v1885_v22, %v1884_v26 }
 0x46a   : > { %v2044_v56 = vadd.f32 %v1968_v49, %v1896_v45  ;;  %v1970_v41 = vpop.f32.mrb[15].mxu0  ;;  %v2041_v59 = vpop.f32.mrb[15].mxu1  ;;  %v2046_v51 = vadd.f32 %v2039_v50, %v1898_v7 }
 0x46b   : > { %v2045_v3 = vadd.f32 %v1970_v41, %v1897_v43  ;;  %2988 = vtanh.f32 %v1886_v36  ;;  %v1895_v62 = vsel %vm1893_vm14, %v1886_v36, %v4093_v42  ;;  %v2047_v12 = vadd.f32 %v2041_v59, %v1899_v16 }
 0x46c   : > { %v2311_v29 = vmul.f32 -1.442695, %v2044_v56  ;;  %2083 = vst [vmem:[#allocation3] sm:$0xff] %v1895_v62  ;;  %v2313_v13 = vmul.f32 -1.442695, %v2046_v51 }
 0x46d   : > { %v2312_v48 = vmul.f32 -1.442695, %v2045_v3 }
 0x46e   : > { %2990 = vpow2.f32 %v2311_v29 }
 0x46f   : > { %2992 = vpow2.f32 %v2312_v48 }
 0x470   : > { %2994 = vtanh.f32 %v2047_v12 }
 0x471   : > { %2996 = vpow2.f32 %v2313_v13 }
 0x475   : > { %v2989_v5 = vpop.eup %2988 }
 0x476   : > { %v1888_v30 = vmul.f32 %v2989_v5, %v2987_v0 }
 0x478   : > { %v2991_v15 = vpop.eup %2990  ;;  %v1894_v33 = vsel %vm1893_vm14, %v1888_v30, %v4099_v60 }
 0x479   : > { %v2057_v35 = vadd.f32 1.0, %v2991_v15  ;;  %v2993_v42 = vpop.eup %2992  ;;  %2314 = vst [vmem:[%s3211_s21 + $0x18] sm:$0xff] %v1894_v33  ;;  %2082 = vst [vmem:[#allocation2] sm:$0xff] %v1894_v33 }
 0x47a   : > { %v2058_v8 = vadd.f32 1.0, %v2993_v42  ;;  %v2995_v10 = vpop.eup %2994 }
 0x47b   : > { %2998 = vrcp.f32 %v2057_v35  ;;  %v2997_v37 = vpop.eup %2996 }
 0x47c   : > { %3000 = vrcp.f32 %v2058_v8  ;;  %v2059_v52 = vadd.f32 1.0, %v2997_v37 }
 0x47e   : > { %3002 = vrcp.f32 %v2059_v52 }
 0x485   : > { %v2999_v58 = vpop.eup %2998 }
 0x486   : > { %v2068_v63 = vmul.f32 %v2999_v58, %v2995_v10  ;;  %v3001_v38 = vpop.eup %3000 }
 0x487   : > { %v2067_v39 = vmul.f32 %v3001_v38, %v4130_v11 }
 0x488   : > { %v3003_v1 = vpop.eup %3002 }
 0x489   : > { %v2069_v60 = vadd.f32 %v2068_v63, %v2067_v39 }
 0x48b   : > { %3004 = vtanh.f32 %v2069_v60  ;;  %v2078_v55 = vsel %vm2076_vm15, %v2069_v60, %v4130_v11 }
 0x48c   : > { %2085 = vst [vmem:[#allocation5] sm:$0xff] %v2078_v55  ;;  %v2092_v9 = vadd.f32 (!%p2315_p0), %v2078_v55, %v1895_v62 }
 0x48e   : > { %2093 = vst [vmem:[%s4199_s8] sm:$0xff] (!%p2315_p0), %v2092_v9 }
 0x493   : > { %2089 = sbr.rel (%p2315_p0) target bundleno = 1180 (0x49c), region = 94 }
 0x495   : > { %v3005_v17 = vpop.eup %3004 }
 0x496   : > { %v2071_v20 = vmul.f32 %v3005_v17, %v3003_v1 }
 0x498   : > { %v2077_v46 = vsel %vm2076_vm15, %v2071_v20, %v4144_v57 }
 0x499   : > { %2081 = vst [vmem:[%s3216_s20] sm:$0xff] %v2077_v46  ;;  %2084 = vst [vmem:[#allocation4] sm:$0xff] %v2077_v46  ;;  %v2090_v19 = vadd.f32 (!%p2315_p0), %v2077_v46, %v1894_v33 }
 0x49b   : > { %2091 = vst [vmem:[%s4198_s7] sm:$0xff] %v2090_v19 }
 0x49c PF: > { %p16_p1 = scmp.ge.s32.totalorder %s3123_s11, 5   ;;  %s4350_s27 = smov %s3032_s28 }
 0x49d   : > { %s4351_s28 = smov %s3142_s19  ;;  %s4352_s29 = smov %s3040_s30 }
 0x49e   : > { %s4353_s30 = smov %s3133_s15  ;;  %s4354_s9 = smov %s3123_s11 }
 0x49f   :  { %18 = sbr.rel (!%p16_p1) target bundleno = 3 (0x3), region = 177 }

// kernel: encoder_forward.5
= control target key start
LH: loop header
LB: loop body
LE: loop exit
PB: predicated region body
PF: predicated region fallthrough
CT: control target
= control target key end

     0   :  { %s2903_s21 = smov 0   ;;  %s2905_s22 = smov 0   ;;  %s3973_s0 = inlined_call_operand.vmem [shape: f32[12,8,1024], index: 0, kind: input, shape index: {}, may-alias: {0,1}]   ;;  %s3974_s1 = inlined_call_operand.vmem [shape: f32[12,8,1024], index: 1, kind: input, shape index: {}, may-alias: {0,1}]   ;;  %s3975_s2 = inlined_call_operand.vmem [shape: s32[8,1], index: 2, kind: input, shape index: {}]   ;;  %s3976_s3 = inlined_call_operand.vmem [shape: f32[128,512], index: 3, kind: input, shape index: {}]   ;;  %s3977_s4 = inlined_call_operand.vmem [shape: f32[128,512], index: 4, kind: input, shape index: {}]   ;;  %s3978_s5 = inlined_call_operand.vmem [shape: f32[8,128], index: 5, kind: output, shape index: {0}]   ;;  %s3979_s6 = inlined_call_operand.vmem [shape: f32[8,128], index: 6, kind: output, shape index: {1}]  }
   0x1   :  { %s2907_s23 = smov 0   ;;  %s2909_s24 = smov 0  }
   0x2   :  { %s2911_s25 = smov 0  }
   0x3 LB: > { %s2929_s26 = sadd.s32 4294967295, %s2863_s25   ;;  %s2932_s27 = sadd.s32 1, %s2863_s25   ;;  %s2863_s25 = sphi %s2911_s25, %s4139_s25   ;;  %s2859_s24 = sphi %s2909_s24, %s4138_s24   ;;  %s2855_s23 = sphi %s2907_s23, %s4137_s23   ;;  %s2851_s22 = sphi %s2905_s22, %s4136_s22   ;;  %s2847_s21 = sphi %s2903_s21, %s4135_s21  }
   0x4   : > { %s21_s28 = ssub.s32 %s2863_s25, %s2932_s27  ;;  %s24_s29 = sadd.s32 1, %s2859_s24 }
   0x5   : > { %p22_p0 = scmp.eq.s32.totalorder %s21_s28, 0  ;;  %p31_p1 = scmp.ne.s32.totalorder %s2859_s24, %s2855_s23 }
   0x6   : > { %p32_p2 = scmp.eq.s32.totalorder %s2863_s25, 0  ;;  %s47_s30 = ssub.s32 2, %s2863_s25 }
   0x7   : > { %s2942_s7 = scalar_select %p22_p0, %s2859_s24, %s24_s29  }
   0x8   : > { %p33_p3 = por %p32_p2, %p31_p1  ;;  %s48_s8 = ssub.s32 2, %s2932_s27 }
   0x9   : > { %s49_s9 = ssub.s32 %s47_s30, %s48_s8  ;;  %s52_s10 = sadd.s32 1, %s2851_s22 }
   0xa   : > { %p50_p4 = scmp.eq.s32.totalorder %s49_s9, 0  ;;  %p59_p5 = scmp.ne.s32.totalorder %s2851_s22, %s2847_s21 }
   0xb   : > { %p2057_p7 = scmp.ge.s32.totalorder %s2863_s25, 3 }
   0xc   : > { %s2951_s11 = scalar_select %p50_p4, %s2851_s22, %s52_s10  }
   0xd   : > { %p2953_p6 = por %p59_p5, %p32_p2  ;;  %199 = sbr.rel (%p2057_p7) target bundleno = 44 (0x2c), region = 28 }
  0x14   : > { %202 = sbr.rel (!%p33_p3) target bundleno = 32 (0x20), region = 32  ;;  %s204_s13 = sand.u32 (%p33_p3), 1, %s2859_s24  }
  0x15   : > { %s2138_s14 = sshll.u32 (%p33_p3), %s2863_s25, 8  ;;  %s2058_s15 = sshll.u32 (%p33_p3), %s204_s13, 7 }
  0x16   : > { %s2963_s18 = scalar_lea.vmem (%p33_p3), %s3973_s0, %s2138_s14  ;;  %s206_s19 = scalar_lea.vmem (%p33_p3), [#allocation6], %s2058_s15 }
  0x17   : > { %v223_v0 = vld [vmem:[%s2963_s18] sm:$0xff] (%p33_p3)  ;;  %v225_v1 = vld [vmem:[%s2963_s18 + $0x8] sm:$0xff] (%p33_p3)  ;;  %v227_v2 = vld [vmem:[%s2963_s18 + $0x10] sm:$0xff] (%p33_p3) }
  0x18   : > { %224 = vst [vmem:[%s206_s19] sm:$0xff] (%p33_p3), %v223_v0  ;;  %226 = vst [vmem:[%s206_s19 + $0x8] sm:$0xff] (%p33_p3), %v225_v1  ;;  %v229_v3 = vld [vmem:[%s2963_s18 + $0x18] sm:$0xff] (%p33_p3)  ;;  %v231_v4 = vld [vmem:[%s2963_s18 + $0x40] sm:$0xff] (%p33_p3) }
  0x19   : > { %228 = vst [vmem:[%s206_s19 + $0x10] sm:$0xff] (%p33_p3), %v227_v2  ;;  %v233_v5 = vld [vmem:[%s2963_s18 + $0x48] sm:$0xff] (%p33_p3)  ;;  %230 = vst [vmem:[%s206_s19 + $0x18] sm:$0xff] (%p33_p3), %v229_v3  ;;  %v235_v6 = vld [vmem:[%s2963_s18 + $0x50] sm:$0xff] (%p33_p3) }
  0x1a   : > { %232 = vst [vmem:[%s206_s19 + $0x20] sm:$0xff] (%p33_p3), %v231_v4  ;;  %234 = vst [vmem:[%s206_s19 + $0x28] sm:$0xff] (%p33_p3), %v233_v5  ;;  %v237_v7 = vld [vmem:[%s2963_s18 + $0x58] sm:$0xff] (%p33_p3)  ;;  %v239_v8 = vld [vmem:[%s2963_s18 + $0x80] sm:$0xff] (%p33_p3) }
  0x1b   : > { %236 = vst [vmem:[%s206_s19 + $0x30] sm:$0xff] %v235_v6  ;;  %238 = vst [vmem:[%s206_s19 + $0x38] sm:$0xff] %v237_v7  ;;  %v241_v9 = vld [vmem:[%s2963_s18 + $0x88] sm:$0xff]  ;;  %v243_v10 = vld [vmem:[%s2963_s18 + $0x90] sm:$0xff] }
  0x1c   : > { %240 = vst [vmem:[%s206_s19 + $0x40] sm:$0xff] %v239_v8  ;;  %v245_v11 = vld [vmem:[%s2963_s18 + $0x98] sm:$0xff]  ;;  %242 = vst [vmem:[%s206_s19 + $0x48] sm:$0xff] %v241_v9  ;;  %v247_v12 = vld [vmem:[%s2963_s18 + $0xc0] sm:$0xff] }
  0x1d   : > { %244 = vst [vmem:[%s206_s19 + $0x50] sm:$0xff] %v243_v10  ;;  %246 = vst [vmem:[%s206_s19 + $0x58] sm:$0xff] %v245_v11  ;;  %v249_v13 = vld [vmem:[%s2963_s18 + $0xc8] sm:$0xff]  ;;  %v251_v14 = vld [vmem:[%s2963_s18 + $0xd0] sm:$0xff] }
  0x1e   : > { %248 = vst [vmem:[%s206_s19 + $0x60] sm:$0xff] %v247_v12  ;;  %250 = vst [vmem:[%s206_s19 + $0x68] sm:$0xff] %v249_v13  ;;  %v253_v15 = vld [vmem:[%s2963_s18 + $0xd8] sm:$0xff] }
  0x1f   : > { %252 = vst [vmem:[%s206_s19 + $0x70] sm:$0xff] %v251_v14  ;;  %254 = vst [vmem:[%s206_s19 + $0x78] sm:$0xff] %v253_v15 }
  0x20 PF: > { %260 = sbr.rel (!%p2953_p6) target bundleno = 44 (0x2c), region = 55  ;;  %s262_s20 = sand.u32 (%p2953_p6), 1, %s2851_s22  }
  0x21   : > { %s2139_s28 = sshll.u32 (%p2953_p6), %s47_s30, 8  ;;  %s2062_s29 = sshll.u32 (%p2953_p6), %s262_s20, 7 }
  0x22   : > { %s2989_s10 = scalar_lea.vmem (%p2953_p6), %s3974_s1, %s2139_s28  ;;  %s264_s12 = scalar_lea.vmem (%p2953_p6), [#allocation7], %s2062_s29 }
  0x23   : > { %v2065_v16 = vld [vmem:[%s2989_s10 + $0x20] sm:$0xff] (%p2953_p6)  ;;  %v2066_v17 = vld [vmem:[%s2989_s10 + $0x28] sm:$0xff] (%p2953_p6)  ;;  %v2067_v18 = vld [vmem:[%s2989_s10 + $0x30] sm:$0xff] (%p2953_p6) }
  0x24   : > { %284 = vst [vmem:[%s264_s12] sm:$0xff] (%p2953_p6), %v2065_v16  ;;  %286 = vst [vmem:[%s264_s12 + $0x8] sm:$0xff] (%p2953_p6), %v2066_v17  ;;  %v2068_v19 = vld [vmem:[%s2989_s10 + $0x38] sm:$0xff] (%p2953_p6)  ;;  %v2069_v20 = vld [vmem:[%s2989_s10 + $0x60] sm:$0xff] (%p2953_p6) }
  0x25   : > { %288 = vst [vmem:[%s264_s12 + $0x10] sm:$0xff] (%p2953_p6), %v2067_v18  ;;  %v2070_v21 = vld [vmem:[%s2989_s10 + $0x68] sm:$0xff] (%p2953_p6)  ;;  %290 = vst [vmem:[%s264_s12 + $0x18] sm:$0xff] (%p2953_p6), %v2068_v19  ;;  %v2071_v22 = vld [vmem:[%s2989_s10 + $0x70] sm:$0xff] (%p2953_p6) }
  0x26   : > { %292 = vst [vmem:[%s264_s12 + $0x20] sm:$0xff] (%p2953_p6), %v2069_v20  ;;  %294 = vst [vmem:[%s264_s12 + $0x28] sm:$0xff] (%p2953_p6), %v2070_v21  ;;  %v2072_v23 = vld [vmem:[%s2989_s10 + $0x78] sm:$0xff] (%p2953_p6)  ;;  %v2073_v24 = vld [vmem:[%s2989_s10 + $0xa0] sm:$0xff] (%p2953_p6) }
  0x27   : > { %296 = vst [vmem:[%s264_s12 + $0x30] sm:$0xff] %v2071_v22  ;;  %298 = vst [vmem:[%s264_s12 + $0x38] sm:$0xff] %v2072_v23  ;;  %v2074_v25 = vld [vmem:[%s2989_s10 + $0xa8] sm:$0xff]  ;;  %v2075_v26 = vld [vmem:[%s2989_s10 + $0xb0] sm:$0xff] }
  0x28   : > { %300 = vst [vmem:[%s264_s12 + $0x40] sm:$0xff] %v2073_v24  ;;  %v2076_v27 = vld [vmem:[%s2989_s10 + $0xb8] sm:$0xff]  ;;  %302 = vst [vmem:[%s264_s12 + $0x48] sm:$0xff] %v2074_v25  ;;  %v2077_v28 = vld [vmem:[%s2989_s10 + $0xe0] sm:$0xff] }
  0x29   : > { %304 = vst [vmem:[%s264_s12 + $0x50] sm:$0xff] %v2075_v26  ;;  %306 = vst [vmem:[%s264_s12 + $0x58] sm:$0xff] %v2076_v27  ;;  %v2078_v29 = vld [vmem:[%s2989_s10 + $0xe8] sm:$0xff]  ;;  %v2079_v30 = vld [vmem:[%s2989_s10 + $0xf0] sm:$0xff] }
  0x2a   : > { %308 = vst [vmem:[%s264_s12 + $0x60] sm:$0xff] %v2077_v28  ;;  %310 = vst [vmem:[%s264_s12 + $0x68] sm:$0xff] %v2078_v29  ;;  %v2080_v31 = vld [vmem:[%s2989_s10 + $0xf8] sm:$0xff] }
  0x2b   : > { %312 = vst [vmem:[%s264_s12 + $0x70] sm:$0xff] %v2079_v30  ;;  %314 = vst [vmem:[%s264_s12 + $0x78] sm:$0xff] %v2080_v31 }
  0x2c PF: > { %p2081_p8 = scmp.ge.s32.totalorder %s2863_s25, 1  ;;  %p319_p9 = scmp.lt.s32.totalorder %s2863_s25, 4 }
  0x2e   : > { %p320_p10 = pnand %p2081_p8, %p319_p9 }
  0x30   : > { %323 = sbr.rel (%p320_p10) target bundleno = 1174 (0x496), region = 78 }
  0x37   : > { %s326_s30 = sand.u32 1, %s2855_s23   ;;  %s333_s13 = sand.u32 1, %s2847_s21  }
  0x38   : > { %s2082_s14 = sshll.u32 %s326_s30, 7  ;;  %s2083_s15 = sshll.u32 %s333_s13, 7 }
  0x39   : > { %s3011_s16 = scalar_lea.vmem [#allocation6], %s2082_s14  ;;  %s3013_s17 = scalar_lea.vmem [#allocation7], %s2083_s15 }
  0x3a   : > { %p2084_p11 = scmp.ne.s32.totalorder %s2929_s26, 0 }
  0x3b   : > { %v2865_v32 = vmov (!%p2084_p11), 0.0  }
  0x3c   : > { %367 = sbr.rel (%p2084_p11) target bundleno = 67 (0x43), region = 90  ;;  %368 = vst [vmem:[#allocation2] sm:$0xff] (!%p2084_p11), %v2865_v32  ;;  %369 = vst [vmem:[#allocation3] sm:$0xff] (!%p2084_p11), %v2865_v32 }
  0x3d   : > { %370 = vst [vmem:[#allocation4] sm:$0xff] (!%p2084_p11), %v2865_v32  ;;  %371 = vst [vmem:[#allocation5] sm:$0xff] (!%p2084_p11), %v2865_v32 }
  0x43 PF: > { %v374_v33 = vld [vmem:[%s3976_s3 + $0x8] sm:$0xff]  ;;  %v373_v35 = vld [vmem:[%s3976_s3] sm:$0xff]  ;;  %v3980_v40 = vmov 0.0   ;;  %v3986_v46 = vmov 0   ;;  %v376_v53 = vld [vmem:[%s3976_s3 + $0x18] sm:$0xff]  ;;  %s3387_s28 = sshll.u32 %s2929_s26, 2 }
  0x44   : > { %v378_v34 = vld [vmem:[%s3976_s3 + $0x28] sm:$0xff]  ;;  %v377_v37 = vld [vmem:[%s3976_s3 + $0x20] sm:$0xff]  ;;  %577 = vmatprep.mubr.f32.mxu0 %v3980_v40  ;;  %648 = vmatprep.mubr.f32.mxu1 %v3980_v40  ;;  %v380_v54 = vld [vmem:[%s3976_s3 + $0x38] sm:$0xff]  ;;  %s506_s13 = ssub.s32 11, %s3387_s28  ;;  %s1244_s25 = sadd.s32 2, %s3387_s28 }
  0x45   : > { %v3025_v36 = vpack.c.bf16 %v378_v34, %v374_v33  ;;  %v382_v38 = vld [vmem:[%s3976_s3 + $0x48] sm:$0xff]  ;;  %v3038_v41 = vpack.c.bf16 %v377_v37, %v373_v35  ;;  %v381_v43 = vld [vmem:[%s3976_s3 + $0x40] sm:$0xff]  ;;  %2695 = vset.pattern.permute.xlu0 %v3986_v46  ;;  %2696 = vset.pattern.permute.xlu1 %v3986_v46  ;;  %v3081_v56 = vpack.c.bf16 %v380_v54, %v376_v53  ;;  %v375_v57 = vld [vmem:[%s3976_s3 + $0x10] sm:$0xff]  ;;  %s1614_s19 = sadd.s32 3, %s3387_s28  ;;  %s874_s30 = sadd.s32 1, %s3387_s28 }
  0x46   : > { %v386_v39 = vld [vmem:[%s3976_s3 + $0x68] sm:$0xff]  ;;  %v385_v44 = vld [vmem:[%s3976_s3 + $0x60] sm:$0xff]  ;;  %v379_v58 = vld [vmem:[%s3976_s3 + $0x30] sm:$0xff]  ;;  %s875_s14 = ssub.s32 10, %s3387_s28  ;;  %s1245_s15 = ssub.s32 9, %s3387_s28 }
  0x47   : > { %v3040_v42 = vpack.c.bf16 %v386_v39, %v382_v38  ;;  %v390_v45 = vld [vmem:[%s3976_s3 + $0x88] sm:$0xff]  ;;  %2141 = vmatprep.subr.bf16.mxu0 %v3025_v36  ;;  %v3058_v48 = vpack.c.bf16 %v385_v44, %v381_v43  ;;  %v389_v49 = vld [vmem:[%s3976_s3 + $0x80] sm:$0xff]  ;;  %v3089_v59 = vpack.c.bf16 %v379_v58, %v375_v57  ;;  %2173 = vmatprep.subr.bf16.mxu1 %v3081_v56  ;;  %v384_v61 = vld [vmem:[%s3976_s3 + $0x58] sm:$0xff]  ;;  %p2134_p12 = scmp.ne.s32.totalorder %s2929_s26, 2 }
  0x48   : > { %v394_v47 = vld [vmem:[%s3976_s3 + $0xa8] sm:$0xff]  ;;  %2143 = vmatpush1.bf16.msra.mxu0 %v3038_v41  ;;  %v393_v50 = vld [vmem:[%s3976_s3 + $0xa0] sm:$0xff]  ;;  %v388_v62 = vld [vmem:[%s3976_s3 + $0x78] sm:$0xff] }
  0x49   : > { %2145 = vmatprep.subr.bf16.mxu0 %v3040_v42  ;;  %v3067_v51 = vpack.c.bf16 %v394_v47, %v390_v45  ;;  %v398_v52 = vld [vmem:[%s3976_s3 + $0xc8] sm:$0xff]  ;;  %v3092_v60 = vpack.c.bf16 %v393_v50, %v389_v49  ;;  %v383_v63 = vld [vmem:[%s3976_s3 + $0x50] sm:$0xff]  ;;  %v397_v1 = vld [vmem:[%s3976_s3 + $0xc0] sm:$0xff]  ;;  %2175 = vmatpush1.bf16.msra.mxu1 %v3089_v59  ;;  %v3114_v3 = vpack.c.bf16 %v388_v62, %v384_v61 }
  0x4a   : > { %v402_v55 = vld [vmem:[%s3976_s3 + $0xe8] sm:$0xff]  ;;  %v401_v2 = vld [vmem:[%s3976_s3 + $0xe0] sm:$0xff]  ;;  %v387_v4 = vld [vmem:[%s3976_s3 + $0x70] sm:$0xff] }
  0x4b   : > { %4046 = vst [vmem:[#allocation8_spill] sm:$0xff] %v3067_v51  ;;  %4047 = vst [vmem:[#allocation9_spill] sm:$0xff] %v3092_v60  ;;  %v3105_v0 = vpack.c.bf16 %v402_v55, %v398_v52  ;;  %v406_v5 = vld [vmem:[%s3976_s3 + $0x108] sm:$0xff]  ;;  %v3125_v7 = vpack.c.bf16 %v387_v4, %v383_v63  ;;  %v392_v8 = vld [vmem:[%s3976_s3 + $0x98] sm:$0xff]  ;;  %2177 = vmatprep.subr.bf16.mxu1 %v3114_v3  ;;  %v3141_v12 = vpack.c.bf16 %v401_v2, %v397_v1 }
  0x4c   : > { %2147 = vmatpush1.bf16.msra.mxu0 %v3058_v48  ;;  %v410_v6 = vld [vmem:[%s3976_s3 + $0x128] sm:$0xff]  ;;  %v396_v9 = vld [vmem:[%s3976_s3 + $0xb8] sm:$0xff]  ;;  %v391_v10 = vld [vmem:[%s3976_s3 + $0x90] sm:$0xff] }
  0x4d   : > { %2149 = vmatprep.subr.bf16.mxu0 %v3067_v51  ;;  %4048 = vst [vmem:[#allocation10_spill] sm:$0xff] %v3105_v0  ;;  %v395_v11 = vld [vmem:[%s3976_s3 + $0xb0] sm:$0xff]  ;;  %4049 = vst [vmem:[#allocation11_spill] sm:$0xff] %v3141_v12  ;;  %v405_v13 = vld [vmem:[%s3976_s3 + $0x100] sm:$0xff]  ;;  %v3149_v15 = vpack.c.bf16 %v396_v9, %v392_v8  ;;  %v3152_v16 = vpack.c.bf16 %v410_v6, %v406_v5  ;;  %2179 = vmatpush1.bf16.msra.mxu1 %v3125_v7 }
  0x4e   : > { %v409_v14 = vld [vmem:[%s3976_s3 + $0x120] sm:$0xff]  ;;  %v414_v17 = vld [vmem:[%s3976_s3 + $0x148] sm:$0xff]  ;;  %v3158_v18 = vpack.c.bf16 %v395_v11, %v391_v10  ;;  %v400_v19 = vld [vmem:[%s3976_s3 + $0xd8] sm:$0xff] }
  0x4f   : > { %4050 = vst [vmem:[#allocation12_spill] sm:$0xff] %v3149_v15  ;;  %4051 = vst [vmem:[#allocation13_spill] sm:$0xff] %v3152_v16  ;;  %v404_v20 = vld [vmem:[%s3976_s3 + $0xf8] sm:$0xff]  ;;  %v418_v21 = vld [vmem:[%s3976_s3 + $0x168] sm:$0xff]  ;;  %2181 = vmatprep.subr.bf16.mxu1 %v3149_v15  ;;  %v3179_v25 = vpack.c.bf16 %v409_v14, %v405_v13 }
  0x50   : > { %2151 = vmatpush1.bf16.msra.mxu0 %v3092_v60  ;;  %4052 = vst [vmem:[#allocation14_spill] sm:$0xff] %v3158_v18  ;;  %v3170_v22 = vpack.c.bf16 %v404_v20, %v400_v19  ;;  %v399_v23 = vld [vmem:[%s3976_s3 + $0xd0] sm:$0xff]  ;;  %v408_v26 = vld [vmem:[%s3976_s3 + $0x118] sm:$0xff]  ;;  %v3188_v28 = vpack.c.bf16 %v418_v21, %v414_v17  ;;  %v413_v29 = vld [vmem:[%s3976_s3 + $0x140] sm:$0xff] }
  0x51   : > { %2153 = vmatprep.subr.bf16.mxu0 %v3105_v0  ;;  %v403_v24 = vld [vmem:[%s3976_s3 + $0xf0] sm:$0xff]  ;;  %4054 = vst [vmem:[#allocation16_spill] sm:$0xff] %v3179_v25  ;;  %v412_v27 = vld [vmem:[%s3976_s3 + $0x138] sm:$0xff]  ;;  %v417_v30 = vld [vmem:[%s3976_s3 + $0x160] sm:$0xff]  ;;  %2183 = vmatpush1.bf16.msra.mxu1 %v3158_v18 }
  0x52   : > { %4053 = vst [vmem:[#allocation15_spill] sm:$0xff] %v3170_v22  ;;  %4055 = vst [vmem:[#allocation17_spill] sm:$0xff] %v3188_v28  ;;  %v422_v31 = vld [vmem:[%s3976_s3 + $0x188] sm:$0xff]  ;;  %v3200_v32 = vpack.c.bf16 %v403_v24, %v399_v23  ;;  %2185 = vmatprep.subr.bf16.mxu1 %v3170_v22  ;;  %v3206_v34 = vpack.c.bf16 %v412_v27, %v408_v26  ;;  %v407_v35 = vld [vmem:[%s3976_s3 + $0x110] sm:$0xff]  ;;  %v3221_v43 = vpack.c.bf16 %v417_v30, %v413_v29 }
  0x53   : > { %v426_v33 = vld [vmem:[%s3976_s3 + $0x1a8] sm:$0xff]  ;;  %v411_v37 = vld [vmem:[%s3976_s3 + $0x130] sm:$0xff]  ;;  %v416_v38 = vld [vmem:[%s3976_s3 + $0x158] sm:$0xff] }
  0x54   : > { %2155 = vmatpush1.bf16.msra.mxu0 %v3141_v12  ;;  %4056 = vst [vmem:[#allocation18_spill] sm:$0xff] %v3200_v32  ;;  %4057 = vst [vmem:[#allocation19_spill] sm:$0xff] %v3206_v34  ;;  %v420_v39 = vld [vmem:[%s3976_s3 + $0x178] sm:$0xff]  ;;  %v3224_v44 = vpack.c.bf16 %v426_v33, %v422_v31  ;;  %v421_v45 = vld [vmem:[%s3976_s3 + $0x180] sm:$0xff]  ;;  %v3236_v50 = vpack.c.bf16 %v411_v37, %v407_v35 }
  0x55   : > { %2157 = vmatprep.subr.bf16.mxu0 %v3152_v16  ;;  %4058 = vst [vmem:[#allocation20_spill] sm:$0xff] %v3221_v43  ;;  %v425_v47 = vld [vmem:[%s3976_s3 + $0x1a0] sm:$0xff]  ;;  %2187 = vmatpush1.bf16.msra.mxu1 %v3200_v32  ;;  %v430_v49 = vld [vmem:[%s3976_s3 + $0x1c8] sm:$0xff]  ;;  %v3242_v53 = vpack.c.bf16 %v420_v39, %v416_v38  ;;  %v415_v54 = vld [vmem:[%s3976_s3 + $0x150] sm:$0xff] }
  0x56   : > { %4059 = vst [vmem:[#allocation21_spill] sm:$0xff] %v3224_v44  ;;  %4060 = vst [vmem:[#allocation22_spill] sm:$0xff] %v3236_v50  ;;  %v434_v52 = vld [vmem:[%s3976_s3 + $0x1e8] sm:$0xff]  ;;  %2189 = vmatprep.subr.bf16.mxu1 %v3206_v34  ;;  %v419_v55 = vld [vmem:[%s3976_s3 + $0x170] sm:$0xff]  ;;  %v3257_v61 = vpack.c.bf16 %v425_v47, %v421_v45 }
  0x57   : > { %4061 = vst [vmem:[#allocation23_spill] sm:$0xff] %v3242_v53  ;;  %v424_v57 = vld [vmem:[%s3976_s3 + $0x198] sm:$0xff]  ;;  %v3260_v62 = vpack.c.bf16 %v434_v52, %v430_v49  ;;  %v429_v63 = vld [vmem:[%s3976_s3 + $0x1c0] sm:$0xff]  ;;  %v438_v2 = vld [vmem:[%s3977_s4 + $0x8] sm:$0xff]  ;;  %v3272_v4 = vpack.c.bf16 %v419_v55, %v415_v54 }
  0x58   : > { %2159 = vmatpush1.bf16.msra.mxu0 %v3179_v25  ;;  %v428_v58 = vld [vmem:[%s3976_s3 + $0x1b8] sm:$0xff]  ;;  %4062 = vst [vmem:[#allocation24_spill] sm:$0xff] %v3257_v61  ;;  %v433_v1 = vld [vmem:[%s3976_s3 + $0x1e0] sm:$0xff]  ;;  %v442_v5 = vld [vmem:[%s3977_s4 + $0x28] sm:$0xff] }
  0x59   : > { %2161 = vmatprep.subr.bf16.mxu0 %v3188_v28  ;;  %4063 = vst [vmem:[#allocation25_spill] sm:$0xff] %v3260_v62  ;;  %2191 = vmatpush1.bf16.msra.mxu1 %v3236_v50  ;;  %4064 = vst [vmem:[#allocation26_spill] sm:$0xff] %v3272_v4  ;;  %v3278_v6 = vpack.c.bf16 %v428_v58, %v424_v57  ;;  %v423_v8 = vld [vmem:[%s3976_s3 + $0x190] sm:$0xff]  ;;  %v432_v10 = vld [vmem:[%s3976_s3 + $0x1d8] sm:$0xff]  ;;  %v3293_v13 = vpack.c.bf16 %v433_v1, %v429_v63 }
  0x5a   : > { %2193 = vmatprep.subr.bf16.mxu1 %v3242_v53  ;;  %v427_v9 = vld [vmem:[%s3976_s3 + $0x1b0] sm:$0xff]  ;;  %v436_v11 = vld [vmem:[%s3976_s3 + $0x1f8] sm:$0xff]  ;;  %v3296_v14 = vpack.c.bf16 %v442_v5, %v438_v2  ;;  %v437_v17 = vld [vmem:[%s3977_s4] sm:$0xff] }
  0x5b   : > { %4065 = vst [vmem:[#allocation27_spill] sm:$0xff] %v3278_v6  ;;  %4066 = vst [vmem:[#allocation28_spill] sm:$0xff] %v3293_v13  ;;  %v441_v19 = vld [vmem:[%s3977_s4 + $0x20] sm:$0xff]  ;;  %v446_v20 = vld [vmem:[%s3977_s4 + $0x48] sm:$0xff]  ;;  %v3308_v21 = vpack.c.bf16 %v427_v9, %v423_v8  ;;  %v3314_v24 = vpack.c.bf16 %v436_v11, %v432_v10 }
  0x5c   : > { %2163 = vmatpush1.bf16.msra.mxu0 %v3221_v43  ;;  %4067 = vst [vmem:[#allocation29_spill] sm:$0xff] %v3296_v14  ;;  %v450_v23 = vld [vmem:[%s3977_s4 + $0x68] sm:$0xff]  ;;  %v431_v26 = vld [vmem:[%s3976_s3 + $0x1d0] sm:$0xff]  ;;  %v440_v29 = vld [vmem:[%s3977_s4 + $0x18] sm:$0xff]  ;;  %v3331_v33 = vpack.c.bf16 %v441_v19, %v437_v17 }
  0x5d   : > { %2165 = vmatprep.subr.bf16.mxu0 %v3224_v44  ;;  %2195 = vmatpush1.bf16.msra.mxu1 %v3272_v4  ;;  %4068 = vst [vmem:[#allocation30_spill] sm:$0xff] %v3308_v21  ;;  %4069 = vst [vmem:[#allocation31_spill] sm:$0xff] %v3314_v24  ;;  %v435_v27 = vld [vmem:[%s3976_s3 + $0x1f0] sm:$0xff]  ;;  %v444_v30 = vld [vmem:[%s3977_s4 + $0x38] sm:$0xff]  ;;  %v3334_v35 = vpack.c.bf16 %v450_v23, %v446_v20 }
  0x5e   : > { %2197 = vmatprep.subr.bf16.mxu1 %v3278_v6  ;;  %v3329_v31 = vld [vmem:[#allocation2] sm:$0xff]  ;;  %v454_v39 = vld [vmem:[%s3977_s4 + $0x88] sm:$0xff]  ;;  %v3346_v45 = vpack.c.bf16 %v435_v27, %v431_v26  ;;  %v3352_v49 = vpack.c.bf16 %v444_v30, %v440_v29  ;;  %v439_v52 = vld [vmem:[%s3977_s4 + $0x10] sm:$0xff]  ;;  %v511_v26 = vstv %s3387_s28 }
  0x5f   : > { %v445_v37 = vld [vmem:[%s3977_s4 + $0x40] sm:$0xff]  ;;  %v458_v47 = vld [vmem:[%s3977_s4 + $0xa8] sm:$0xff]  ;;  %v443_v54 = vld [vmem:[%s3977_s4 + $0x30] sm:$0xff] }
  0x60   : > { %2167 = vmatpush1.bf16.msra.mxu0 %v3257_v61  ;;  %v449_v38 = vld [vmem:[%s3977_s4 + $0x60] sm:$0xff]  ;;  %4070 = vst [vmem:[#allocation32_spill] sm:$0xff] %v3346_v45  ;;  %4071 = vst [vmem:[#allocation33_spill] sm:$0xff] %v3352_v49  ;;  %v448_v55 = vld [vmem:[%s3977_s4 + $0x58] sm:$0xff]  ;;  %v3372_v63 = vpack.c.bf16 %v458_v47, %v454_v39  ;;  %v3384_v8 = vpack.c.bf16 %v443_v54, %v439_v52  ;;  %v695_v39 = vstv %s506_s13  ;;  %s1615_s13 = ssub.s32 8, %s3387_s28 }
  0x61   : > { %2169 = vmatprep.subr.bf16.mxu0 %v3260_v62  ;;  %2199 = vmatpush1.bf16.msra.mxu1 %v3308_v21  ;;  %v452_v57 = vld [vmem:[%s3977_s4 + $0x78] sm:$0xff]  ;;  %v3368_v58 = vpack.c.bf16 %v449_v38, %v445_v37  ;;  %v453_v1 = vld [vmem:[%s3977_s4 + $0x80] sm:$0xff]  ;;  %v462_v5 = vld [vmem:[%s3977_s4 + $0xc8] sm:$0xff] }
  0x62   : > { %2201 = vmatprep.subr.bf16.mxu1 %v3314_v24  ;;  %v457_v2 = vld [vmem:[%s3977_s4 + $0xa0] sm:$0xff]  ;;  %v466_v9 = vld [vmem:[%s3977_s4 + $0xe8] sm:$0xff]  ;;  %v3393_v10 = vpack.c.bf16 %v452_v57, %v448_v55  ;;  %v447_v11 = vld [vmem:[%s3977_s4 + $0x50] sm:$0xff] }
  0x63   : > { %v451_v17 = vld [vmem:[%s3977_s4 + $0x70] sm:$0xff]  ;;  %v456_v19 = vld [vmem:[%s3977_s4 + $0x98] sm:$0xff]  ;;  %v3409_v23 = vpack.c.bf16 %v457_v2, %v453_v1  ;;  %v3414_v27 = vpack.c.bf16 %v466_v9, %v462_v5  ;;  %v461_v29 = vld [vmem:[%s3977_s4 + $0xc0] sm:$0xff] }
  0x64   : > { %2171 = vmatpush1.bf16.msra.mxu0 %v3293_v13  ;;  %v460_v20 = vld [vmem:[%s3977_s4 + $0xb8] sm:$0xff]  ;;  %v465_v30 = vld [vmem:[%s3977_s4 + $0xe0] sm:$0xff]  ;;  %v470_v37 = vld [vmem:[%s3977_s4 + $0x108] sm:$0xff]  ;;  %v3426_v38 = vpack.c.bf16 %v451_v17, %v447_v11 }
  0x65   : > { %2205 = vmatprep.subr.bf16.mxu0 %v3296_v14  ;;  %2203 = vmatpush1.bf16.msra.mxu1 %v3346_v45  ;;  %4072 = vst [vmem:[#allocation34_spill] sm:$0xff] %v3409_v23  ;;  %4073 = vst [vmem:[#allocation35_spill] sm:$0xff] %v3414_v27  ;;  %v474_v47 = vld [vmem:[%s3977_s4 + $0x128] sm:$0xff]  ;;  %v3432_v52 = vpack.c.bf16 %v460_v20, %v456_v19  ;;  %v455_v54 = vld [vmem:[%s3977_s4 + $0x90] sm:$0xff]  ;;  %v3454_v5 = vpack.c.bf16 %v465_v30, %v461_v29  ;;  %v1251_v29 = vstv %s1244_s25 }
  0x66   : > { %2237 = vmatprep.subr.bf16.mxu1 %v3352_v49  ;;  %v459_v55 = vld [vmem:[%s3977_s4 + $0xb0] sm:$0xff]  ;;  %v464_v57 = vld [vmem:[%s3977_s4 + $0xd8] sm:$0xff]  ;;  %v3451_v2 = vld [vmem:[%s3975_s2] sm:$0xff]  ;;  %v3459_v9 = vpack.c.bf16 %v474_v47, %v470_v37 }
  0x67   : > { %578 = vmatmul.mubr.f32.vlgmr.msra.gmra.mrb[0].mxu0 %v3329_v31  ;;  %v468_v1 = vld [vmem:[%s3977_s4 + $0xf8] sm:$0xff]  ;;  %4074 = vst [vmem:[#allocation36_spill] sm:$0xff] %v3454_v5  ;;  %vm512_vm0 = vcmp.lt.s32.totalorder %v511_v26, %v3451_v2  ;;  %vm696_vm1 = vcmp.lt.s32.totalorder %v695_v39, %v3451_v2  ;;  %v469_v11 = vld [vmem:[%s3977_s4 + $0x100] sm:$0xff]  ;;  %v478_v19 = vld [vmem:[%s3977_s4 + $0x148] sm:$0xff]  ;;  %v3471_v20 = vpack.c.bf16 %v459_v55, %v455_v54 }
  0x68   : > { %2207 = vmatpush1.bf16.msra.mxu0 %v3331_v33  ;;  %761 = vmatprep.mubr.f32.mxu0 %v3980_v40  ;;  %4075 = vst [vmem:[#allocation37_spill] sm:$0xff] %v3459_v9  ;;  %v473_v17 = vld [vmem:[%s3977_s4 + $0x120] sm:$0xff]  ;;  %v683_v26 = vsel %vm512_vm0, 1, %v3986_v46  ;;  %v482_v30 = vld [vmem:[%s3977_s4 + $0x168] sm:$0xff]  ;;  %v3478_v37 = vpack.c.bf16 %v468_v1, %v464_v57  ;;  %v463_v47 = vld [vmem:[%s3977_s4 + $0xd0] sm:$0xff]  ;;  %v867_v57 = vsel %vm696_vm1, 1, %v3986_v46  ;;  %vm1252_vm2 = vcmp.lt.s32.totalorder %v1251_v29, %v3451_v2 }
  0x69   : > { %2209 = vmatprep.subr.bf16.mxu0 %v3334_v35  ;;  %649 = vmatmul.mubr.f32.vlgmr.msra.gmra.mrb[0].mxu1 %v3329_v31  ;;  %4076 = vst [vmem:[#allocation38_spill] sm:$0xff] %v3471_v20  ;;  %v467_v54 = vld [vmem:[%s3977_s4 + $0xf0] sm:$0xff]  ;;  %v472_v55 = vld [vmem:[%s3977_s4 + $0x118] sm:$0xff]  ;;  %v3497_v1 = vpack.c.bf16 %v473_v17, %v469_v11  ;;  %v486_v39 = vld [vmem:[%s3977_s4 + $0x188] sm:$0xff]  ;;  %v1621_v17 = vstv %s1614_s19 }
  0x6a   : > { %2239 = vmatpush1.bf16.msra.mxu1 %v3384_v8  ;;  %832 = vmatprep.mubr.f32.mxu1 %v3980_v40  ;;  %4077 = vst [vmem:[#allocation39_spill] sm:$0xff] %v3478_v37  ;;  %v476_v40 = vld [vmem:[%s3977_s4 + $0x138] sm:$0xff]  ;;  %v3513_v11 = vpack.c.bf16 %v467_v54, %v463_v47  ;;  %v471_v46 = vld [vmem:[%s3977_s4 + $0x110] sm:$0xff]  ;;  %vm1622_vm3 = vcmp.lt.s32.totalorder %v1621_v17, %v3451_v2  ;;  %v498_v29 = vld [vmem:[%s3977_s4 + $0x1e8] sm:$0xff] }
  0x6b   : > { %2241 = vmatprep.subr.bf16.mxu1 %v3393_v10  ;;  %685 = vperm.xlu0 %2695, %v683_v26   ;;  %4078 = vst [vmem:[#allocation40_spill] sm:$0xff] %v3497_v1  ;;  %v3501_v26 = vpack.c.bf16 %v482_v30, %v478_v19  ;;  %v490_v19 = vld [vmem:[%s3977_s4 + $0x1a8] sm:$0xff]  ;;  %v3519_v30 = vpack.c.bf16 %v476_v40, %v472_v55  ;;  %v480_v47 = vld [vmem:[%s3977_s4 + $0x158] sm:$0xff] }
  0x6c   : > { %2211 = vmatpush1.bf16.msra.mxu0 %v3368_v58  ;;  %v484_v54 = vld [vmem:[%s3977_s4 + $0x178] sm:$0xff] }
  0x6d   : > { %2213 = vmatprep.subr.bf16.mxu0 %v3372_v63  ;;  %4079 = vst [vmem:[#allocation41_spill] sm:$0xff] %v3501_v26  ;;  %4080 = vst [vmem:[#allocation42_spill] sm:$0xff] %v3519_v30 }
  0x6e   : > { %2243 = vmatpush1.bf16.msra.mxu1 %v3426_v38 }
  0x6f   : > { %2245 = vmatprep.subr.bf16.mxu1 %v3432_v52  ;;  %869 = vperm.xlu0 %2695, %v867_v57   ;;  %v3541_v57 = vpack.c.bf16 %v490_v19, %v486_v39  ;;  %v3559_v39 = vpack.c.bf16 %v484_v54, %v480_v47  ;;  %v479_v19 = vld [vmem:[%s3977_s4 + $0x150] sm:$0xff] }
  0x70   : > { %2215 = vmatpush1.bf16.msra.mxu0 %v3409_v23  ;;  %v481_v23 = vld [vmem:[%s3977_s4 + $0x160] sm:$0xff] }
  0x71   : > { %2217 = vmatprep.subr.bf16.mxu0 %v3414_v27  ;;  %v477_v27 = vld [vmem:[%s3977_s4 + $0x140] sm:$0xff] }
  0x72   : > { %2247 = vmatpush1.bf16.msra.mxu1 %v3471_v20  ;;  %v3537_v55 = vpack.c.bf16 %v481_v23, %v477_v27  ;;  %v489_v20 = vld [vmem:[%s3977_s4 + $0x1a0] sm:$0xff]  ;;  %v494_v23 = vld [vmem:[%s3977_s4 + $0x1c8] sm:$0xff] }
  0x73   : > { %2249 = vmatprep.subr.bf16.mxu1 %v3478_v37  ;;  %v485_v37 = vld [vmem:[%s3977_s4 + $0x180] sm:$0xff] }
  0x74   : > { %2219 = vmatpush1.bf16.msra.mxu0 %v3454_v5  ;;  %v4081_v5 = vmov 0   ;;  %v3577_v54 = vpack.c.bf16 %v489_v20, %v485_v37  ;;  %v487_v37 = vld [vmem:[%s3977_s4 + $0x190] sm:$0xff] }
  0x75   : > { %2221 = vmatprep.subr.bf16.mxu0 %v3459_v9  ;;  %v475_v9 = vld [vmem:[%s3977_s4 + $0x130] sm:$0xff]  ;;  %v1423_v40 = vsel %vm1252_vm2, 1, %v4081_v5  ;;  %v1793_v47 = vsel %vm1622_vm3, 1, %v4081_v5 }
  0x76   : > { %2251 = vmatpush1.bf16.msra.mxu1 %v3513_v11  ;;  %v3553_v27 = vpack.c.bf16 %v475_v9, %v471_v46  ;;  %1425 = vperm.xlu0 %2695, %v1423_v40   ;;  %v488_v46 = vld [vmem:[%s3977_s4 + $0x198] sm:$0xff]  ;;  %4082 = vst [vmem:[#allocation43_spill] sm:$0xff] %v3577_v54  ;;  %v493_v40 = vld [vmem:[%s3977_s4 + $0x1c0] sm:$0xff] }
  0x77   : > { %2253 = vmatprep.subr.bf16.mxu1 %v3519_v30  ;;  %v492_v9 = vld [vmem:[%s3977_s4 + $0x1b8] sm:$0xff]  ;;  %v497_v30 = vld [vmem:[%s3977_s4 + $0x1e0] sm:$0xff] }
  0x78   : > { %2223 = vmatpush1.bf16.msra.mxu0 %v3497_v1  ;;  %v3580_v1 = vpack.c.bf16 %v498_v29, %v494_v23  ;;  %v3592_v20 = vpack.c.bf16 %v492_v9, %v488_v46  ;;  %v491_v23 = vld [vmem:[%s3977_s4 + $0x1b0] sm:$0xff]  ;;  %v496_v29 = vld [vmem:[%s3977_s4 + $0x1d8] sm:$0xff] }
  0x79   : > { %2225 = vmatprep.subr.bf16.mxu0 %v3501_v26  ;;  %v483_v26 = vld [vmem:[%s3977_s4 + $0x170] sm:$0xff]  ;;  %v3611_v46 = vpack.c.bf16 %v491_v23, %v487_v37  ;;  %v4083_v37 = vmov 0.0   ;;  %v1065_v23 = vstv %s875_s14 }
  0x7a   : > { %2255 = vmatpush1.bf16.msra.mxu1 %v3553_v27  ;;  %v3589_v17 = vpack.c.bf16 %v483_v26, %v479_v19  ;;  %1795 = vperm.xlu0 %2695, %v1793_v47   ;;  %v500_v26 = vld [vmem:[%s3977_s4 + $0x1f8] sm:$0xff]  ;;  %v3607_v19 = vpack.c.bf16 %v497_v30, %v493_v40  ;;  %v495_v47 = vld [vmem:[%s3977_s4 + $0x1d0] sm:$0xff]  ;;  %vm1066_vm5 = vcmp.lt.s32.totalorder %v1065_v23, %v3451_v2  ;;  %v507_v23 = vld [vmem:[%s3011_s16] sm:$0xff] }
  0x7b   : > { %2257 = vmatprep.subr.bf16.mxu1 %v3559_v39  ;;  %v3614_v9 = vpack.c.bf16 %v500_v26, %v496_v29  ;;  %v3623_v30 = vld [vmem:[#allocation4] sm:$0xff]  ;;  %v1435_v26 = vstv %s1245_s15 }
  0x7c   : > { %2227 = vmatpush1.bf16.msra.mxu0 %v3537_v55  ;;  %vm1436_vm6 = vcmp.lt.s32.totalorder %v1435_v26, %v3451_v2 }
  0x7d   : > { %2229 = vmatprep.subr.bf16.mxu0 %v3541_v57 }
  0x7e   : > { %2259 = vmatpush1.bf16.msra.mxu1 %v3589_v17 }
  0x7f   : > { %2261 = vmatprep.subr.bf16.mxu1 %v3592_v20 }
  0x80   : > { %2231 = vmatpush1.bf16.msra.mxu0 %v3577_v54  ;;  %v499_v54 = vld [vmem:[%s3977_s4 + $0x1f0] sm:$0xff] }
  0x81   : > { %2233 = vmatprep.subr.bf16.mxu0 %v3580_v1  ;;  %v3626_v40 = vpack.c.bf16 %v499_v54, %v495_v47  ;;  %v881_v54 = vstv %s874_s30  ;;  %v1237_v47 = vsel %vm1066_vm5, 1, %v4081_v5 }
  0x82   : > { %2263 = vmatpush1.bf16.msra.mxu1 %v3611_v46  ;;  %vm882_vm4 = vcmp.lt.s32.totalorder %v881_v54, %v3451_v2 }
  0x83   : > { %2265 = vmatprep.subr.bf16.mxu1 %v3614_v9  ;;  %v1053_v29 = vsel %vm882_vm4, 1, %v4081_v5 }
  0x84   : > { %2235 = vmatpush1.bf16.msra.mxu0 %v3607_v19  ;;  %1055 = vperm.xlu1 %2696, %v1053_v29  }
  0x85   : > { %2269 = vmatprep.subr.bf16.mxu0 %v3025_v36 }
  0x86   : > { %2267 = vmatpush1.bf16.msra.mxu1 %v3626_v40 }
  0x87   : > { %762 = vmatmul.mubr.f32.vlgmr.msra.gmra.mrb[2].mxu0 %v3623_v30  ;;  %2301 = vmatprep.subr.bf16.mxu1 %v3081_v56 }
  0x88   : > { %2271 = vmatpush1.bf16.msra.mxu0 %v3038_v41  ;;  %947 = vmatprep.mubr.f32.mxu0 %v4083_v37 }
  0x89   : > { %2273 = vmatprep.subr.bf16.mxu0 %v3040_v42  ;;  %833 = vmatmul.mubr.f32.vlgmr.msra.gmra.mrb[2].mxu1 %v3623_v30 }
  0x8a   : > { %2303 = vmatpush1.bf16.msra.mxu1 %v3089_v59  ;;  %1018 = vmatprep.mubr.f32.mxu1 %v4083_v37 }
  0x8b   : > { %2305 = vmatprep.subr.bf16.mxu1 %v3114_v3  ;;  %1239 = vperm.xlu1 %2696, %v1237_v47  }
  0x8c   : > { %2275 = vmatpush1.bf16.msra.mxu0 %v3058_v48 }
  0x8d   : > { %2277 = vmatprep.subr.bf16.mxu0 %v3067_v51 }
  0x8e   : > { %2307 = vmatpush1.bf16.msra.mxu1 %v3125_v7 }
  0x8f   : > { %2309 = vmatprep.subr.bf16.mxu1 %v3149_v15 }
  0x90   : > { %2279 = vmatpush1.bf16.msra.mxu0 %v3092_v60 }
  0x91   : > { %2281 = vmatprep.subr.bf16.mxu0 %v3105_v0 }
  0x92   : > { %2311 = vmatpush1.bf16.msra.mxu1 %v3158_v18 }
  0x93   : > { %2313 = vmatprep.subr.bf16.mxu1 %v3170_v22 }
  0x94   : > { %2283 = vmatpush1.bf16.msra.mxu0 %v3141_v12 }
  0x95   : > { %2285 = vmatprep.subr.bf16.mxu0 %v3152_v16 }
  0x96   : > { %2315 = vmatpush1.bf16.msra.mxu1 %v3200_v32 }
  0x97   : > { %2317 = vmatprep.subr.bf16.mxu1 %v3206_v34 }
  0x98   : > { %2287 = vmatpush1.bf16.msra.mxu0 %v3179_v25 }
  0x99   : > { %2289 = vmatprep.subr.bf16.mxu0 %v3188_v28 }
  0x9a   : > { %2319 = vmatpush1.bf16.msra.mxu1 %v3236_v50 }
  0x9b   : > { %2321 = vmatprep.subr.bf16.mxu1 %v3242_v53  ;;  %v2092_v53 = vld [vmem:[%s3013_s17 + $0x78] sm:$0xff] }
  0x9c   : > { %2291 = vmatpush1.bf16.msra.mxu0 %v3221_v43  ;;  %v2091_v43 = vld [vmem:[%s3013_s17 + $0x70] sm:$0xff] }
  0x9d   : > { %2293 = vmatprep.subr.bf16.mxu0 %v3224_v44 }
  0x9e   : > { %2323 = vmatpush1.bf16.msra.mxu1 %v3272_v4 }
  0x9f   : > { %2325 = vmatprep.subr.bf16.mxu1 %v3278_v6 }
  0xa0   : > { %2295 = vmatpush1.bf16.msra.mxu0 %v3257_v61  ;;  %v509_v61 = vld [vmem:[%s3011_s16 + $0x10] sm:$0xff] }
  0xa1   : > { %2297 = vmatprep.subr.bf16.mxu0 %v3260_v62 }
  0xa2   : > { %2327 = vmatpush1.bf16.msra.mxu1 %v3308_v21 }
  0xa3   : > { %2329 = vmatprep.subr.bf16.mxu1 %v3314_v24 }
  0xa4   : > { %2299 = vmatpush1.bf16.msra.mxu0 %v3293_v13 }
  0xa5   : > { %2333 = vmatprep.subr.bf16.mxu0 %v3296_v14  ;;  %v1607_v14 = vsel %vm1436_vm6, 1, %v4081_v5 }
  0xa6   : > { %2331 = vmatpush1.bf16.msra.mxu1 %v3346_v45  ;;  %1609 = vperm.xlu1 %2696, %v1607_v14   ;;  %v508_v45 = vld [vmem:[%s3011_s16 + $0x8] sm:$0xff] }
  0xa7   : > { %2365 = vmatprep.subr.bf16.mxu1 %v3352_v49  ;;  %v1804_v49 = vstv %s1615_s13 }
  0xa8   : > { %vm1805_vm7 = vcmp.lt.s32.totalorder %v1804_v49, %v3451_v2  ;;  %v510_v49 = vld [vmem:[%s3011_s16 + $0x18] sm:$0xff] }
  0xa9   : > { %v1976_v54 = vsel %vm1805_vm7, 1, %v4081_v5 }
  0xaa   : > { %1978 = vperm.xlu1 %2696, %v1976_v54  }
 0x13a   : > { %v579_v29 = vpop.f32.mrb[0].mxu0 }
 0x13b   : > { %v655_v13 = vadd.f32 %v579_v29, %v507_v23  ;;  %v581_v24 = vpop.f32.mrb[1].mxu0  ;;  %v686_v29 = vpop.permute.xlu0 %685 }
 0x13c   : > { %v656_v62 = vadd.f32 %v581_v24, %v508_v45  ;;  %v650_v47 = vpop.f32.mrb[0].mxu1  ;;  %vm687_vm8 = vcmp.eq.s32.totalorder %v686_v29, 1  ;;  %v4086_v29 = vld [vmem:[#allocation35_spill] sm:$0xff] }
 0x13d   : > { %v2086_v21 = vmul.f32 -1.442695, %v655_v13  ;;  %v652_v6 = vpop.f32.mrb[1].mxu1  ;;  %v657_v44 = vadd.f32 %v650_v47, %v509_v61  ;;  %v2090_v47 = vld [vmem:[%s3013_s17 + $0x68] sm:$0xff] }
 0x13e   : > { %v2087_v26 = vmul.f32 -1.442695, %v656_v62  ;;  %v658_v2 = vadd.f32 %v652_v6, %v510_v49  ;;  %v2089_v6 = vld [vmem:[%s3013_s17 + $0x60] sm:$0xff] }
 0x13f   : > { %2697 = vpow2.f32 %v2086_v21  ;;  %v2088_v14 = vmul.f32 -1.442695, %v657_v44  ;;  %v502_v21 = vld [vmem:[#allocation3] sm:$0xff] }
 0x140   : > { %2699 = vpow2.f32 %v2087_v26 }
 0x141   : > { %2701 = vpow2.f32 %v2088_v14 }
 0x142   : > { %2703 = vtanh.f32 %v658_v2 }
 0x149   : > { %v2698_v5 = vpop.eup %2697 }
 0x14a   : > { %v2700_v54 = vpop.eup %2699  ;;  %v668_v4 = vadd.f32 1.0, %v2698_v5 }
 0x14b   : > { %v669_v23 = vadd.f32 1.0, %v2700_v54  ;;  %v2702_v62 = vpop.eup %2701 }
 0x14c   : > { %2705 = vrcp.f32 %v668_v4  ;;  %v2704_v13 = vpop.eup %2703  ;;  %v670_v45 = vadd.f32 1.0, %v2702_v62 }
 0x14d   : > { %2707 = vrcp.f32 %v669_v23 }
 0x14e   : > { %2709 = vrcp.f32 %v670_v45 }
 0x156   : > { %v2706_v24 = vpop.eup %2705 }
 0x157   : > { %v2708_v61 = vpop.eup %2707  ;;  %v679_v44 = vmul.f32 %v2706_v24, %v2704_v13 }
 0x158   : > { %v678_v26 = vmul.f32 %v2708_v61, %v502_v21  ;;  %v2710_v45 = vpop.eup %2709 }
 0x15a   : > { %v763_v49 = vpop.f32.mrb[2].mxu0  ;;  %v680_v14 = vadd.f32 %v679_v44, %v678_v26 }
 0x15b   : > { %v839_v2 = vadd.f32 %v2089_v6, %v763_v49  ;;  %v765_v4 = vpop.f32.mrb[3].mxu0 }
 0x15c   : > { %2711 = vtanh.f32 %v680_v14  ;;  %v3687_v5 = vsel %vm687_vm8, %v680_v14, %v502_v21  ;;  %v840_v54 = vadd.f32 %v2090_v47, %v765_v4  ;;  %v834_v13 = vpop.f32.mrb[2].mxu1  ;;  %v4087_v14 = vld [vmem:[#allocation39_spill] sm:$0xff] }
 0x15d   : > { %v2093_v23 = vmul.f32 -1.442695, %v839_v2  ;;  %v836_v24 = vpop.f32.mrb[3].mxu1  ;;  %v841_v61 = vadd.f32 %v2091_v43, %v834_v13  ;;  %v504_v2 = vld [vmem:[#allocation5] sm:$0xff]  ;;  %v4088_v13 = vld [vmem:[#allocation36_spill] sm:$0xff] }
 0x15e   : > { %v2094_v62 = vmul.f32 -1.442695, %v840_v54  ;;  %v842_v44 = vadd.f32 %v2092_v53, %v836_v24  ;;  %v4085_v53 = vld [vmem:[#allocation38_spill] sm:$0xff] }
 0x15f   : > { %2713 = vpow2.f32 %v2093_v23  ;;  %v2095_v28 = vmul.f32 -1.442695, %v841_v61  ;;  %v4089_v61 = vld [vmem:[#allocation37_spill] sm:$0xff] }
 0x160   : > { %2715 = vpow2.f32 %v2094_v62 }
 0x161   : > { %2717 = vpow2.f32 %v2095_v28 }
 0x162   : > { %2719 = vtanh.f32 %v842_v44  ;;  %v870_v44 = vpop.permute.xlu0 %869 }
 0x163   : > { %vm871_vm9 = vcmp.eq.s32.totalorder %v870_v44, 1  ;;  %v4099_v44 = vld [vmem:[#allocation21_spill] sm:$0xff] }
 0x166   : > { %v2712_v50 = vpop.eup %2711 }
 0x167   : > { %v682_v6 = vmul.f32 %v2712_v50, %v2710_v45  ;;  %v4084_v50 = vld [vmem:[#allocation34_spill] sm:$0xff] }
 0x168   : > { %v4090_v45 = vld [vmem:[#allocation42_spill] sm:$0xff] }
 0x169   : > { %v2714_v26 = vpop.eup %2713  ;;  %v3693_v21 = vsel %vm687_vm8, %v682_v6, %v3329_v31 }
 0x16a   : > { %v2716_v47 = vpop.eup %2715  ;;  %v852_v49 = vadd.f32 1.0, %v2714_v26  ;;  %948 = vmatmul.mubr.f32.vlgmr.msra.gmra.mrb[4].mxu0 %v3693_v21  ;;  %1019 = vmatmul.mubr.f32.vlgmr.msra.gmra.mrb[4].mxu1 %v3693_v21  ;;  %v4091_v26 = vld [vmem:[#allocation40_spill] sm:$0xff] }
 0x16b   : > { %v853_v43 = vadd.f32 1.0, %v2716_v47  ;;  %2335 = vmatpush1.bf16.msra.mxu0 %v3331_v33  ;;  %2367 = vmatpush1.bf16.msra.mxu1 %v3384_v8  ;;  %v2718_v28 = vpop.eup %2717  ;;  %v4092_v47 = vld [vmem:[#allocation41_spill] sm:$0xff] }
 0x16c   : > { %2721 = vrcp.f32 %v852_v49  ;;  %2337 = vmatprep.subr.bf16.mxu0 %v3334_v35  ;;  %2369 = vmatprep.subr.bf16.mxu1 %v3393_v10  ;;  %v2720_v31 = vpop.eup %2719  ;;  %v854_v54 = vadd.f32 1.0, %v2718_v28 }
 0x16d   : > { %2723 = vrcp.f32 %v853_v43  ;;  %1131 = vmatprep.mubr.f32.mxu0 %v4083_v37  ;;  %1202 = vmatprep.mubr.f32.mxu1 %v4083_v37  ;;  %v4093_v43 = vld [vmem:[#allocation43_spill] sm:$0xff] }
 0x16e   : > { %2725 = vrcp.f32 %v854_v54  ;;  %v4095_v54 = vld [vmem:[#allocation17_spill] sm:$0xff] }
 0x16f   : > { %2339 = vmatpush1.bf16.msra.mxu0 %v3368_v58  ;;  %2371 = vmatpush1.bf16.msra.mxu1 %v3426_v38 }
 0x170   : > { %2341 = vmatprep.subr.bf16.mxu0 %v3372_v63  ;;  %2373 = vmatprep.subr.bf16.mxu1 %v3432_v52 }
 0x173   : > { %2343 = vmatpush1.bf16.msra.mxu0 %v4084_v50  ;;  %2375 = vmatpush1.bf16.msra.mxu1 %v4085_v53 }
 0x174   : > { %2345 = vmatprep.subr.bf16.mxu0 %v4086_v29  ;;  %2377 = vmatprep.subr.bf16.mxu1 %v4087_v14 }
 0x176   : > { %v2722_v4 = vpop.eup %2721 }
 0x177   : > { %v2724_v23 = vpop.eup %2723  ;;  %v863_v62 = vmul.f32 %v2722_v4, %v2720_v31  ;;  %2347 = vmatpush1.bf16.msra.mxu0 %v4088_v13  ;;  %2379 = vmatpush1.bf16.msra.mxu1 %v3513_v11 }
 0x178   : > { %v862_v24 = vmul.f32 %v2724_v23, %v504_v2  ;;  %2349 = vmatprep.subr.bf16.mxu0 %v4089_v61  ;;  %2381 = vmatprep.subr.bf16.mxu1 %v4090_v45  ;;  %v2726_v28 = vpop.eup %2725  ;;  %v4096_v23 = vld [vmem:[#allocation23_spill] sm:$0xff] }
 0x17a   : > { %v864_v6 = vadd.f32 %v863_v62, %v862_v24  ;;  %v4097_v62 = vld [vmem:[#allocation20_spill] sm:$0xff]  ;;  %v4098_v24 = vld [vmem:[#allocation26_spill] sm:$0xff] }
 0x17b   : > { %2351 = vmatpush1.bf16.msra.mxu0 %v4091_v26  ;;  %2383 = vmatpush1.bf16.msra.mxu1 %v3553_v27 }
 0x17c   : > { %2727 = vtanh.f32 %v864_v6  ;;  %2353 = vmatprep.subr.bf16.mxu0 %v4092_v47  ;;  %2385 = vmatprep.subr.bf16.mxu1 %v3559_v39  ;;  %v3720_v49 = vsel %vm871_vm9, %v864_v6, %v504_v2  ;;  %v4100_v6 = vld [vmem:[#allocation27_spill] sm:$0xff] }
 0x17f   : > { %2355 = vmatpush1.bf16.msra.mxu0 %v3537_v55  ;;  %2387 = vmatpush1.bf16.msra.mxu1 %v3589_v17 }
 0x180   : > { %2357 = vmatprep.subr.bf16.mxu0 %v3541_v57  ;;  %2389 = vmatprep.subr.bf16.mxu1 %v3592_v20 }
 0x183   : > { %2359 = vmatpush1.bf16.msra.mxu0 %v4093_v43  ;;  %2391 = vmatpush1.bf16.msra.mxu1 %v3611_v46 }
 0x184   : > { %2361 = vmatprep.subr.bf16.mxu0 %v3580_v1  ;;  %2393 = vmatprep.subr.bf16.mxu1 %v3614_v9 }
 0x186   : > { %v2728_v31 = vpop.eup %2727 }
 0x187   : > { %2363 = vmatpush1.bf16.msra.mxu0 %v3607_v19  ;;  %2395 = vmatpush1.bf16.msra.mxu1 %v3626_v40  ;;  %v866_v2 = vmul.f32 %v2728_v31, %v2726_v28  ;;  %v4101_v28 = vld [vmem:[#allocation24_spill] sm:$0xff]  ;;  %v4102_v31 = vld [vmem:[#allocation30_spill] sm:$0xff] }
 0x188   : > { %2397 = vmatprep.subr.bf16.mxu0 %v3025_v36  ;;  %2429 = vmatprep.subr.bf16.mxu1 %v3081_v56 }
 0x189   : > { %v3736_v4 = vsel %vm871_vm9, %v866_v2, %v3623_v30  ;;  %v4094_v30 = vld [vmem:[#allocation22_spill] sm:$0xff]  ;;  %v4103_v2 = vld [vmem:[#allocation25_spill] sm:$0xff] }
 0x18a   : > { %1132 = vmatmul.mubr.f32.vlgmr.msra.gmra.mrb[6].mxu0 %v3736_v4  ;;  %1203 = vmatmul.mubr.f32.vlgmr.msra.gmra.mrb[6].mxu1 %v3736_v4 }
 0x18b   : > { %2399 = vmatpush1.bf16.msra.mxu0 %v3038_v41  ;;  %2431 = vmatpush1.bf16.msra.mxu1 %v3089_v59 }
 0x18c   : > { %2401 = vmatprep.subr.bf16.mxu0 %v3040_v42  ;;  %2433 = vmatprep.subr.bf16.mxu1 %v3114_v3 }
 0x18d   : > { %1317 = vmatprep.mubr.f32.mxu0 %v4083_v37  ;;  %1388 = vmatprep.mubr.f32.mxu1 %v4083_v37 }
 0x18f   : > { %2403 = vmatpush1.bf16.msra.mxu0 %v3058_v48  ;;  %2435 = vmatpush1.bf16.msra.mxu1 %v3125_v7 }
 0x190   : > { %2405 = vmatprep.subr.bf16.mxu0 %v3067_v51  ;;  %2437 = vmatprep.subr.bf16.mxu1 %v3149_v15 }
 0x193   : > { %2407 = vmatpush1.bf16.msra.mxu0 %v3092_v60  ;;  %2439 = vmatpush1.bf16.msra.mxu1 %v3158_v18  ;;  %v2106_v60 = vld [vmem:[%s3013_s17 + $0x58] sm:$0xff] }
 0x194   : > { %2409 = vmatprep.subr.bf16.mxu0 %v3105_v0  ;;  %2441 = vmatprep.subr.bf16.mxu1 %v3170_v22 }
 0x197   : > { %2411 = vmatpush1.bf16.msra.mxu0 %v3141_v12  ;;  %2443 = vmatpush1.bf16.msra.mxu1 %v3200_v32  ;;  %v2098_v12 = vld [vmem:[%s3011_s16 + $0x30] sm:$0xff] }
 0x198   : > { %2413 = vmatprep.subr.bf16.mxu0 %v3152_v16  ;;  %2445 = vmatprep.subr.bf16.mxu1 %v3206_v34 }
 0x19b   : > { %2415 = vmatpush1.bf16.msra.mxu0 %v3179_v25  ;;  %2447 = vmatpush1.bf16.msra.mxu1 %v4094_v30  ;;  %v4104_v30 = vld [vmem:[#allocation31_spill] sm:$0xff]  ;;  %v4105_v25 = vld [vmem:[#allocation28_spill] sm:$0xff] }
 0x19c   : > { %2417 = vmatprep.subr.bf16.mxu0 %v4095_v54  ;;  %2449 = vmatprep.subr.bf16.mxu1 %v4096_v23  ;;  %v4106_v23 = vld [vmem:[#allocation32_spill] sm:$0xff] }
 0x19f   : > { %2419 = vmatpush1.bf16.msra.mxu0 %v4097_v62  ;;  %2451 = vmatpush1.bf16.msra.mxu1 %v4098_v24  ;;  %v4107_v62 = vld [vmem:[#allocation29_spill] sm:$0xff] }
 0x1a0   : > { %2421 = vmatprep.subr.bf16.mxu0 %v4099_v44  ;;  %2453 = vmatprep.subr.bf16.mxu1 %v4100_v6  ;;  %v4108_v24 = vld [vmem:[#allocation33_spill] sm:$0xff]  ;;  %v2096_v44 = vld [vmem:[%s3011_s16 + $0x20] sm:$0xff] }
 0x1a1   : > { %v2097_v6 = vld [vmem:[%s3011_s16 + $0x28] sm:$0xff] }
 0x1a3   : > { %2423 = vmatpush1.bf16.msra.mxu0 %v4101_v28  ;;  %2455 = vmatpush1.bf16.msra.mxu1 %v4102_v31 }
 0x1a4   : > { %2425 = vmatprep.subr.bf16.mxu0 %v4103_v2  ;;  %2457 = vmatprep.subr.bf16.mxu1 %v4104_v30 }
 0x1a7   : > { %2427 = vmatpush1.bf16.msra.mxu0 %v4105_v25  ;;  %2459 = vmatpush1.bf16.msra.mxu1 %v4106_v23  ;;  %v2099_v23 = vld [vmem:[%s3011_s16 + $0x38] sm:$0xff] }
 0x1a8   : > { %2461 = vmatprep.subr.bf16.mxu0 %v4107_v62  ;;  %2493 = vmatprep.subr.bf16.mxu1 %v4108_v24 }
 0x23d   : > { %v949_v54 = vpop.f32.mrb[4].mxu0  ;;  %v1020_v28 = vpop.f32.mrb[4].mxu1 }
 0x23e   : > { %v1025_v34 = vadd.f32 %v2096_v44, %v949_v54  ;;  %v951_v31 = vpop.f32.mrb[5].mxu0  ;;  %v1022_v16 = vpop.f32.mrb[5].mxu1  ;;  %v1027_v25 = vadd.f32 %v2098_v12, %v1020_v28  ;;  %v2103_v28 = vld [vmem:[%s3013_s17 + $0x40] sm:$0xff] }
 0x23f   : > { %v1026_v2 = vadd.f32 %v2097_v6, %v951_v31  ;;  %v1028_v22 = vadd.f32 %v2099_v23, %v1022_v16 }
 0x240   : > { %v2100_v32 = vmul.f32 -1.442695, %v1025_v34  ;;  %v2102_v62 = vmul.f32 -1.442695, %v1027_v25  ;;  %v2104_v25 = vld [vmem:[%s3013_s17 + $0x48] sm:$0xff] }
 0x241   : > { %v2101_v30 = vmul.f32 -1.442695, %v1026_v2 }
 0x242   : > { %2729 = vpow2.f32 %v2100_v32  ;;  %v1056_v32 = vpop.permute.xlu1 %1055 }
 0x243   : > { %2731 = vpow2.f32 %v2101_v30  ;;  %vm1057_vm10 = vcmp.eq.s32.totalorder %v1056_v32, 1 }
 0x244   : > { %2733 = vtanh.f32 %v1028_v22 }
 0x245   : > { %2735 = vpow2.f32 %v2102_v62 }
 0x24c   : > { %v2730_v0 = vpop.eup %2729 }
 0x24d   : > { %v1038_v24 = vadd.f32 1.0, %v2730_v0  ;;  %v2732_v18 = vpop.eup %2731 }
 0x24e   : > { %v1039_v54 = vadd.f32 1.0, %v2732_v18  ;;  %v2734_v44 = vpop.eup %2733 }
 0x24f   : > { %2737 = vrcp.f32 %v1038_v24  ;;  %v2736_v34 = vpop.eup %2735 }
 0x250   : > { %2739 = vrcp.f32 %v1039_v54  ;;  %v1040_v12 = vadd.f32 1.0, %v2736_v34 }
 0x252   : > { %2741 = vrcp.f32 %v1040_v12 }
 0x259   : > { %v2738_v6 = vpop.eup %2737 }
 0x25a   : > { %v1049_v31 = vmul.f32 %v2738_v6, %v2734_v44  ;;  %v2740_v30 = vpop.eup %2739  ;;  %v2105_v6 = vld [vmem:[%s3013_s17 + $0x50] sm:$0xff] }
 0x25b   : > { %v1048_v16 = vmul.f32 %v2740_v30, %v3687_v5 }
 0x25c   : > { %v2742_v15 = vpop.eup %2741 }
 0x25d   : > { %v1133_v0 = vpop.f32.mrb[6].mxu0  ;;  %v1204_v22 = vpop.f32.mrb[6].mxu1  ;;  %v1050_v23 = vadd.f32 %v1049_v31, %v1048_v16 }
 0x25e   : > { %v1209_v62 = vadd.f32 %v2103_v28, %v1133_v0  ;;  %v1135_v18 = vpop.f32.mrb[7].mxu0  ;;  %v1206_v24 = vpop.f32.mrb[7].mxu1  ;;  %v1211_v30 = vadd.f32 %v2105_v6, %v1204_v22 }
 0x25f   : > { %v1210_v2 = vadd.f32 %v2104_v25, %v1135_v18  ;;  %2743 = vtanh.f32 %v1050_v23  ;;  %v3783_v54 = vsel %vm1057_vm10, %v1050_v23, %v3687_v5  ;;  %v1212_v51 = vadd.f32 %v2106_v60, %v1206_v24  ;;  %v1240_v18 = vpop.permute.xlu1 %1239 }
 0x260   : > { %v2107_v44 = vmul.f32 -1.442695, %v1209_v62  ;;  %v2109_v28 = vmul.f32 -1.442695, %v1211_v30  ;;  %vm1241_vm11 = vcmp.eq.s32.totalorder %v1240_v18, 1  ;;  %v4116_v30 = vld [vmem:[#allocation18_spill] sm:$0xff] }
 0x261   : > { %v2108_v34 = vmul.f32 -1.442695, %v1210_v2  ;;  %v4133_v18 = vld [vmem:[#allocation29_spill] sm:$0xff] }
 0x262   : > { %2745 = vpow2.f32 %v2107_v44 }
 0x263   : > { %2747 = vpow2.f32 %v2108_v34 }
 0x264   : > { %2749 = vtanh.f32 %v1212_v51 }
 0x265   : > { %2751 = vpow2.f32 %v2109_v28  ;;  %v4120_v28 = vld [vmem:[#allocation22_spill] sm:$0xff] }
 0x269   : > { %v2744_v31 = vpop.eup %2743 }
 0x26a   : > { %v1052_v16 = vmul.f32 %v2744_v31, %v2742_v15  ;;  %v4117_v31 = vld [vmem:[#allocation13_spill] sm:$0xff] }
 0x26c   : > { %v2746_v0 = vpop.eup %2745  ;;  %v3789_v12 = vsel %vm1057_vm10, %v1052_v16, %v3693_v21  ;;  %v4121_v16 = vld [vmem:[#allocation17_spill] sm:$0xff] }
 0x26d   : > { %v1222_v25 = vadd.f32 1.0, %v2746_v0  ;;  %v2748_v5 = vpop.eup %2747  ;;  %1318 = vmatmul.mubr.f32.vlgmr.msra.gmra.mrb[8].mxu0 %v3789_v12  ;;  %1389 = vmatmul.mubr.f32.vlgmr.msra.gmra.mrb[8].mxu1 %v3789_v12  ;;  %v4122_v0 = vld [vmem:[#allocation23_spill] sm:$0xff] }
 0x26e   : > { %v1223_v22 = vadd.f32 1.0, %v2748_v5  ;;  %2463 = vmatpush1.bf16.msra.mxu0 %v3331_v33  ;;  %2495 = vmatpush1.bf16.msra.mxu1 %v3384_v8  ;;  %v2750_v51 = vpop.eup %2749  ;;  %v4124_v5 = vld [vmem:[#allocation26_spill] sm:$0xff] }
 0x26f   : > { %2753 = vrcp.f32 %v1222_v25  ;;  %2465 = vmatprep.subr.bf16.mxu0 %v3334_v35  ;;  %2497 = vmatprep.subr.bf16.mxu1 %v3393_v10  ;;  %v2752_v60 = vpop.eup %2751  ;;  %v4123_v25 = vld [vmem:[#allocation20_spill] sm:$0xff] }
 0x270   : > { %2755 = vrcp.f32 %v1223_v22  ;;  %1501 = vmatprep.mubr.f32.mxu0 %v4083_v37  ;;  %1572 = vmatprep.mubr.f32.mxu1 %v4083_v37  ;;  %v1224_v23 = vadd.f32 1.0, %v2752_v60  ;;  %v4125_v22 = vld [vmem:[#allocation21_spill] sm:$0xff]  ;;  %v4127_v60 = vld [vmem:[#allocation24_spill] sm:$0xff] }
 0x272   : > { %2467 = vmatpush1.bf16.msra.mxu0 %v3368_v58  ;;  %2499 = vmatpush1.bf16.msra.mxu1 %v3426_v38  ;;  %2757 = vrcp.f32 %v1224_v23  ;;  %v4131_v23 = vld [vmem:[#allocation28_spill] sm:$0xff] }
 0x273   : > { %2469 = vmatprep.subr.bf16.mxu0 %v3372_v63  ;;  %2501 = vmatprep.subr.bf16.mxu1 %v3432_v52 }
 0x276   : > { %2471 = vmatpush1.bf16.msra.mxu0 %v4084_v50  ;;  %2503 = vmatpush1.bf16.msra.mxu1 %v4085_v53 }
 0x277   : > { %2473 = vmatprep.subr.bf16.mxu0 %v4086_v29  ;;  %2505 = vmatprep.subr.bf16.mxu1 %v4087_v14 }
 0x279   : > { %v2754_v15 = vpop.eup %2753 }
 0x27a   : > { %v1233_v21 = vmul.f32 %v2754_v15, %v2750_v51  ;;  %v2756_v32 = vpop.eup %2755  ;;  %2475 = vmatpush1.bf16.msra.mxu0 %v4088_v13  ;;  %2507 = vmatpush1.bf16.msra.mxu1 %v3513_v11  ;;  %v4126_v51 = vld [vmem:[#allocation27_spill] sm:$0xff]  ;;  %v4128_v15 = vld [vmem:[#allocation30_spill] sm:$0xff] }
 0x27b   : > { %v1232_v62 = vmul.f32 %v2756_v32, %v3720_v49  ;;  %2477 = vmatprep.subr.bf16.mxu0 %v4089_v61  ;;  %2509 = vmatprep.subr.bf16.mxu1 %v4090_v45  ;;  %v4130_v32 = vld [vmem:[#allocation31_spill] sm:$0xff] }
 0x27d   : > { %v1234_v24 = vadd.f32 %v1233_v21, %v1232_v62  ;;  %v4129_v21 = vld [vmem:[#allocation25_spill] sm:$0xff]  ;;  %v4132_v62 = vld [vmem:[#allocation32_spill] sm:$0xff] }
 0x27e   : > { %2479 = vmatpush1.bf16.msra.mxu0 %v4091_v26  ;;  %2511 = vmatpush1.bf16.msra.mxu1 %v3553_v27 }
 0x27f   : > { %2759 = vtanh.f32 %v1234_v24  ;;  %v3816_v2 = vsel %vm1241_vm11, %v1234_v24, %v3720_v49  ;;  %2481 = vmatprep.subr.bf16.mxu0 %v4092_v47  ;;  %2513 = vmatprep.subr.bf16.mxu1 %v3559_v39  ;;  %v2758_v49 = vpop.eup %2757  ;;  %v4134_v24 = vld [vmem:[#allocation33_spill] sm:$0xff] }
 0x282   : > { %2483 = vmatpush1.bf16.msra.mxu0 %v3537_v55  ;;  %2515 = vmatpush1.bf16.msra.mxu1 %v3589_v17 }
 0x283   : > { %2485 = vmatprep.subr.bf16.mxu0 %v3541_v57  ;;  %2517 = vmatprep.subr.bf16.mxu1 %v3592_v20 }
 0x286   : > { %2487 = vmatpush1.bf16.msra.mxu0 %v4093_v43  ;;  %2519 = vmatpush1.bf16.msra.mxu1 %v3611_v46 }
 0x287   : > { %2489 = vmatprep.subr.bf16.mxu0 %v3580_v1  ;;  %2521 = vmatprep.subr.bf16.mxu1 %v3614_v9 }
 0x289   : > { %v2760_v44 = vpop.eup %2759 }
 0x28a   : > { %v1236_v34 = vmul.f32 %v2760_v44, %v2758_v49  ;;  %2491 = vmatpush1.bf16.msra.mxu0 %v3607_v19  ;;  %2523 = vmatpush1.bf16.msra.mxu1 %v3626_v40  ;;  %v2110_v49 = vld [vmem:[%s3011_s16 + $0x40] sm:$0xff]  ;;  %v2111_v44 = vld [vmem:[%s3011_s16 + $0x48] sm:$0xff] }
 0x28b   : > { %2525 = vmatprep.subr.bf16.mxu0 %v3025_v36  ;;  %2557 = vmatprep.subr.bf16.mxu1 %v3081_v56  ;;  %v4109_v36 = vld [vmem:[#allocation8_spill] sm:$0xff] }
 0x28c   : > { %v3834_v6 = vsel %vm1241_vm11, %v1236_v34, %v3736_v4  ;;  %v4110_v56 = vld [vmem:[#allocation12_spill] sm:$0xff]  ;;  %v4111_v4 = vld [vmem:[#allocation9_spill] sm:$0xff] }
 0x28d   : > { %1502 = vmatmul.mubr.f32.vlgmr.msra.gmra.mrb[10].mxu0 %v3834_v6  ;;  %1573 = vmatmul.mubr.f32.vlgmr.msra.gmra.mrb[10].mxu1 %v3834_v6 }
 0x28e   : > { %2527 = vmatpush1.bf16.msra.mxu0 %v3038_v41  ;;  %2559 = vmatpush1.bf16.msra.mxu1 %v3089_v59  ;;  %v4112_v41 = vld [vmem:[#allocation14_spill] sm:$0xff] }
 0x28f   : > { %2529 = vmatprep.subr.bf16.mxu0 %v3040_v42  ;;  %2561 = vmatprep.subr.bf16.mxu1 %v3114_v3  ;;  %v4113_v59 = vld [vmem:[#allocation10_spill] sm:$0xff]  ;;  %v4114_v42 = vld [vmem:[#allocation15_spill] sm:$0xff] }
 0x290   : > { %1687 = vmatprep.mubr.f32.mxu0 %v4083_v37  ;;  %1758 = vmatprep.mubr.f32.mxu1 %v4083_v37  ;;  %v4115_v3 = vld [vmem:[#allocation11_spill] sm:$0xff] }
 0x292   : > { %2531 = vmatpush1.bf16.msra.mxu0 %v3058_v48  ;;  %2563 = vmatpush1.bf16.msra.mxu1 %v3125_v7  ;;  %v4118_v48 = vld [vmem:[#allocation19_spill] sm:$0xff]  ;;  %v4119_v7 = vld [vmem:[#allocation16_spill] sm:$0xff] }
 0x293   : > { %2533 = vmatprep.subr.bf16.mxu0 %v4109_v36  ;;  %2565 = vmatprep.subr.bf16.mxu1 %v4110_v56 }
 0x296   : > { %2535 = vmatpush1.bf16.msra.mxu0 %v4111_v4  ;;  %2567 = vmatpush1.bf16.msra.mxu1 %v4112_v41 }
 0x297   : > { %2537 = vmatprep.subr.bf16.mxu0 %v4113_v59  ;;  %2569 = vmatprep.subr.bf16.mxu1 %v4114_v42 }
 0x29a   : > { %2539 = vmatpush1.bf16.msra.mxu0 %v4115_v3  ;;  %2571 = vmatpush1.bf16.msra.mxu1 %v4116_v30  ;;  %v2112_v30 = vld [vmem:[%s3011_s16 + $0x50] sm:$0xff] }
 0x29b   : > { %2541 = vmatprep.subr.bf16.mxu0 %v4117_v31  ;;  %2573 = vmatprep.subr.bf16.mxu1 %v4118_v48  ;;  %v2113_v48 = vld [vmem:[%s3011_s16 + $0x58] sm:$0xff] }
 0x29e   : > { %2543 = vmatpush1.bf16.msra.mxu0 %v4119_v7  ;;  %2575 = vmatpush1.bf16.msra.mxu1 %v4120_v28 }
 0x29f   : > { %2545 = vmatprep.subr.bf16.mxu0 %v4121_v16  ;;  %2577 = vmatprep.subr.bf16.mxu1 %v4122_v0 }
 0x2a2   : > { %2547 = vmatpush1.bf16.msra.mxu0 %v4123_v25  ;;  %2579 = vmatpush1.bf16.msra.mxu1 %v4124_v5 }
 0x2a3   : > { %2549 = vmatprep.subr.bf16.mxu0 %v4125_v22  ;;  %2581 = vmatprep.subr.bf16.mxu1 %v4126_v51 }
 0x2a6   : > { %2551 = vmatpush1.bf16.msra.mxu0 %v4127_v60  ;;  %2583 = vmatpush1.bf16.msra.mxu1 %v4128_v15 }
 0x2a7   : > { %2553 = vmatprep.subr.bf16.mxu0 %v4129_v21  ;;  %2585 = vmatprep.subr.bf16.mxu1 %v4130_v32 }
 0x2aa   : > { %2555 = vmatpush1.bf16.msra.mxu0 %v4131_v23  ;;  %2587 = vmatpush1.bf16.msra.mxu1 %v4132_v62  ;;  %v2117_v23 = vld [vmem:[%s3013_s17 + $0x20] sm:$0xff]  ;;  %v1426_v62 = vpop.permute.xlu0 %1425 }
 0x2ab   : > { %2589 = vmatprep.subr.bf16.mxu0 %v4133_v18  ;;  %2621 = vmatprep.subr.bf16.mxu1 %v4134_v24  ;;  %v2118_v24 = vld [vmem:[%s3013_s17 + $0x28] sm:$0xff]  ;;  %vm1427_vm12 = vcmp.eq.s32.totalorder %v1426_v62, 1 }
 0x340   : > { %v1319_v34 = vpop.f32.mrb[8].mxu0  ;;  %v1390_v36 = vpop.f32.mrb[8].mxu1 }
 0x341   : > { %v1395_v56 = vadd.f32 %v2110_v49, %v1319_v34  ;;  %v1321_v4 = vpop.f32.mrb[9].mxu0  ;;  %v1392_v41 = vpop.f32.mrb[9].mxu1  ;;  %v1397_v31 = vadd.f32 %v2112_v30, %v1390_v36  ;;  %v2119_v30 = vld [vmem:[%s3013_s17 + $0x30] sm:$0xff] }
 0x342   : > { %v1396_v59 = vadd.f32 %v2111_v44, %v1321_v4  ;;  %v1398_v7 = vadd.f32 %v2113_v48, %v1392_v41  ;;  %v2120_v48 = vld [vmem:[%s3013_s17 + $0x38] sm:$0xff] }
 0x343   : > { %v2114_v42 = vmul.f32 -1.442695, %v1395_v56  ;;  %v2116_v28 = vmul.f32 -1.442695, %v1397_v31 }
 0x344   : > { %v2115_v3 = vmul.f32 -1.442695, %v1396_v59 }
 0x345   : > { %2761 = vpow2.f32 %v2114_v42 }
 0x346   : > { %2763 = vpow2.f32 %v2115_v3 }
 0x347   : > { %2765 = vtanh.f32 %v1398_v7 }
 0x348   : > { %2767 = vpow2.f32 %v2116_v28 }
 0x34f   : > { %v2762_v16 = vpop.eup %2761 }
 0x350   : > { %v1408_v0 = vadd.f32 1.0, %v2762_v16  ;;  %v2764_v25 = vpop.eup %2763 }
 0x351   : > { %v1409_v5 = vadd.f32 1.0, %v2764_v25  ;;  %v2766_v22 = vpop.eup %2765 }
 0x352   : > { %2769 = vrcp.f32 %v1408_v0  ;;  %v2768_v51 = vpop.eup %2767 }
 0x353   : > { %2771 = vrcp.f32 %v1409_v5  ;;  %v1410_v32 = vadd.f32 1.0, %v2768_v51 }
 0x355   : > { %2773 = vrcp.f32 %v1410_v32 }
 0x35c   : > { %v2770_v60 = vpop.eup %2769 }
 0x35d   : > { %v1419_v15 = vmul.f32 %v2770_v60, %v2766_v22  ;;  %v2772_v21 = vpop.eup %2771 }
 0x35e   : > { %v1418_v18 = vmul.f32 %v2772_v21, %v3783_v54 }
 0x35f   : > { %v2774_v7 = vpop.eup %2773 }
 0x360   : > { %v1503_v49 = vpop.f32.mrb[10].mxu0  ;;  %v1574_v44 = vpop.f32.mrb[10].mxu1  ;;  %v1420_v34 = vadd.f32 %v1419_v15, %v1418_v18  ;;  %v1800_v18 = vld [vmem:[%s3013_s17] sm:$0xff] }
 0x361   : > { %v1579_v36 = vadd.f32 %v2117_v23, %v1503_v49  ;;  %v1505_v56 = vpop.f32.mrb[11].mxu0  ;;  %v1576_v4 = vpop.f32.mrb[11].mxu1  ;;  %v1581_v31 = vadd.f32 %v2119_v30, %v1574_v44  ;;  %v1801_v44 = vld [vmem:[%s3013_s17 + $0x8] sm:$0xff] }
 0x362   : > { %v1580_v41 = vadd.f32 %v2118_v24, %v1505_v56  ;;  %2775 = vtanh.f32 %v1420_v34  ;;  %v3881_v42 = vsel %vm1427_vm12, %v1420_v34, %v3783_v54  ;;  %v1582_v28 = vadd.f32 %v2120_v48, %v1576_v4  ;;  %v1796_v24 = vpop.permute.xlu0 %1795 }
 0x363   : > { %v2121_v59 = vmul.f32 -1.442695, %v1579_v36  ;;  %v2123_v0 = vmul.f32 -1.442695, %v1581_v31  ;;  %vm1797_vm14 = vcmp.eq.s32.totalorder %v1796_v24, 1 }
 0x364   : > { %v2122_v3 = vmul.f32 -1.442695, %v1580_v41 }
 0x365   : > { %2777 = vpow2.f32 %v2121_v59 }
 0x366   : > { %2779 = vpow2.f32 %v2122_v3 }
 0x367   : > { %2781 = vtanh.f32 %v1582_v28 }
 0x368   : > { %2783 = vpow2.f32 %v2123_v0 }
 0x36c   : > { %v2776_v16 = vpop.eup %2775 }
 0x36d   : > { %v1422_v25 = vmul.f32 %v2776_v16, %v2774_v7  ;;  %v1802_v7 = vld [vmem:[%s3013_s17 + $0x10] sm:$0xff]  ;;  %v1803_v16 = vld [vmem:[%s3013_s17 + $0x18] sm:$0xff] }
 0x36f   : > { %v2778_v5 = vpop.eup %2777  ;;  %v3887_v51 = vsel %vm1427_vm12, %v1422_v25, %v3789_v12 }
 0x370   : > { %v1592_v22 = vadd.f32 1.0, %v2778_v5  ;;  %v2780_v54 = vpop.eup %2779  ;;  %1688 = vmatmul.mubr.f32.vlgmr.msra.gmra.mrb[12].mxu0 %v3887_v51  ;;  %1759 = vmatmul.mubr.f32.vlgmr.msra.gmra.mrb[12].mxu1 %v3887_v51 }
 0x371   : > { %v1593_v60 = vadd.f32 1.0, %v2780_v54  ;;  %2591 = vmatpush1.bf16.msra.mxu0 %v3331_v33  ;;  %2623 = vmatpush1.bf16.msra.mxu1 %v3384_v8  ;;  %v2782_v33 = vpop.eup %2781 }
 0x372   : > { %2785 = vrcp.f32 %v1592_v22  ;;  %2593 = vmatprep.subr.bf16.mxu0 %v3334_v35  ;;  %2625 = vmatprep.subr.bf16.mxu1 %v3393_v10  ;;  %v2784_v35 = vpop.eup %2783 }
 0x373   : > { %2787 = vrcp.f32 %v1593_v60  ;;  %1870 = vmatprep.mubr.f32.mxu0 %v4083_v37  ;;  %1941 = vmatprep.mubr.f32.mxu1 %v4083_v37 }
 0x375   : > { %2595 = vmatpush1.bf16.msra.mxu0 %v3368_v58  ;;  %2627 = vmatpush1.bf16.msra.mxu1 %v3426_v38  ;;  %v1594_v58 = vadd.f32 1.0, %v2784_v35  ;;  %v1610_v38 = vpop.permute.xlu1 %1609 }
 0x376   : > { %2597 = vmatprep.subr.bf16.mxu0 %v3372_v63  ;;  %2629 = vmatprep.subr.bf16.mxu1 %v3432_v52  ;;  %vm1611_vm13 = vcmp.eq.s32.totalorder %v1610_v38, 1 }
 0x377   : > { %2789 = vrcp.f32 %v1594_v58 }
 0x379   : > { %2599 = vmatpush1.bf16.msra.mxu0 %v4084_v50  ;;  %2631 = vmatpush1.bf16.msra.mxu1 %v4085_v53 }
 0x37a   : > { %2601 = vmatprep.subr.bf16.mxu0 %v4086_v29  ;;  %2633 = vmatprep.subr.bf16.mxu1 %v4087_v14  ;;  %v2126_v14 = vld [vmem:[%s3011_s16 + $0x70] sm:$0xff] }
 0x37c   : > { %v2786_v8 = vpop.eup %2785 }
 0x37d   : > { %v1603_v10 = vmul.f32 %v2786_v8, %v2782_v33  ;;  %v2788_v37 = vpop.eup %2787  ;;  %2603 = vmatpush1.bf16.msra.mxu0 %v4088_v13  ;;  %2635 = vmatpush1.bf16.msra.mxu1 %v3513_v11 }
 0x37e   : > { %v1602_v63 = vmul.f32 %v2788_v37, %v3816_v2  ;;  %2605 = vmatprep.subr.bf16.mxu0 %v4089_v61  ;;  %2637 = vmatprep.subr.bf16.mxu1 %v4090_v45  ;;  %v2127_v61 = vld [vmem:[%s3011_s16 + $0x78] sm:$0xff] }
 0x380   : > { %v1604_v52 = vadd.f32 %v1603_v10, %v1602_v63 }
 0x381   : > { %2607 = vmatpush1.bf16.msra.mxu0 %v4091_v26  ;;  %2639 = vmatpush1.bf16.msra.mxu1 %v3553_v27  ;;  %v2790_v27 = vpop.eup %2789 }
 0x382   : > { %2791 = vtanh.f32 %v1604_v52  ;;  %2609 = vmatprep.subr.bf16.mxu0 %v4092_v47  ;;  %2641 = vmatprep.subr.bf16.mxu1 %v3559_v39  ;;  %v3916_v11 = vsel %vm1611_vm13, %v1604_v52, %v3816_v2 }
 0x385   : > { %2611 = vmatpush1.bf16.msra.mxu0 %v3537_v55  ;;  %2643 = vmatpush1.bf16.msra.mxu1 %v3589_v17  ;;  %v2125_v17 = vld [vmem:[%s3011_s16 + $0x68] sm:$0xff] }
 0x386   : > { %2613 = vmatprep.subr.bf16.mxu0 %v3541_v57  ;;  %2645 = vmatprep.subr.bf16.mxu1 %v3592_v20 }
 0x389   : > { %2615 = vmatpush1.bf16.msra.mxu0 %v4093_v43  ;;  %2647 = vmatpush1.bf16.msra.mxu1 %v3611_v46 }
 0x38a   : > { %2617 = vmatprep.subr.bf16.mxu0 %v3580_v1  ;;  %2649 = vmatprep.subr.bf16.mxu1 %v3614_v9  ;;  %v2124_v1 = vld [vmem:[%s3011_s16 + $0x60] sm:$0xff] }
 0x38c   : > { %v2792_v39 = vpop.eup %2791 }
 0x38d   : > { %2619 = vmatpush1.bf16.msra.mxu0 %v3607_v19  ;;  %2651 = vmatpush1.bf16.msra.mxu1 %v3626_v40  ;;  %v1606_v55 = vmul.f32 %v2792_v39, %v2790_v27  ;;  %v1979_v27 = vpop.permute.xlu1 %1978 }
 0x38e   : > { %vm1980_vm15 = vcmp.eq.s32.totalorder %v1979_v27, 1 }
 0x38f   : > { %v3930_v57 = vsel %vm1611_vm13, %v1606_v55, %v3834_v6 }
 0x390   : > { %1871 = vmatmul.mubr.f32.vlgmr.msra.gmra.mrb[14].mxu0 %v3930_v57  ;;  %1942 = vmatmul.mubr.f32.vlgmr.msra.gmra.mrb[14].mxu1 %v3930_v57 }
 0x443   : > { %v1689_v20 = vpop.f32.mrb[12].mxu0  ;;  %v1760_v46 = vpop.f32.mrb[12].mxu1 }
 0x444   : > { %v1765_v9 = vadd.f32 %v2124_v1, %v1689_v20  ;;  %v1691_v50 = vpop.f32.mrb[13].mxu0  ;;  %v1762_v19 = vpop.f32.mrb[13].mxu1  ;;  %v1767_v13 = vadd.f32 %v2126_v14, %v1760_v46 }
 0x445   : > { %v1766_v53 = vadd.f32 %v2125_v17, %v1691_v50  ;;  %v1768_v45 = vadd.f32 %v2127_v61, %v1762_v19 }
 0x446   : > { %v2128_v40 = vmul.f32 -1.442695, %v1765_v9  ;;  %v2130_v26 = vmul.f32 -1.442695, %v1767_v13 }
 0x447   : > { %v2129_v29 = vmul.f32 -1.442695, %v1766_v53 }
 0x448   : > { %2793 = vpow2.f32 %v2128_v40 }
 0x449   : > { %2795 = vpow2.f32 %v2129_v29 }
 0x44a   : > { %2797 = vtanh.f32 %v1768_v45 }
 0x44b   : > { %2799 = vpow2.f32 %v2130_v26 }
 0x452   : > { %v2794_v47 = vpop.eup %2793 }
 0x453   : > { %v1778_v43 = vadd.f32 1.0, %v2794_v47  ;;  %v2796_v12 = vpop.eup %2795 }
 0x454   : > { %v1779_v2 = vadd.f32 1.0, %v2796_v12  ;;  %v2798_v6 = vpop.eup %2797 }
 0x455   : > { %2801 = vrcp.f32 %v1778_v43  ;;  %v2800_v15 = vpop.eup %2799 }
 0x456   : > { %2803 = vrcp.f32 %v1779_v2  ;;  %v1780_v62 = vadd.f32 1.0, %v2800_v15 }
 0x458   : > { %2805 = vrcp.f32 %v1780_v62 }
 0x45f   : > { %v2802_v21 = vpop.eup %2801 }
 0x460   : > { %v1789_v32 = vmul.f32 %v2802_v21, %v2798_v6  ;;  %v2804_v23 = vpop.eup %2803 }
 0x461   : > { %v1788_v49 = vmul.f32 %v2804_v23, %v3881_v42 }
 0x462   : > { %v2806_v0 = vpop.eup %2805 }
 0x463   : > { %v1872_v34 = vpop.f32.mrb[14].mxu0  ;;  %v1943_v36 = vpop.f32.mrb[14].mxu1  ;;  %v1790_v56 = vadd.f32 %v1789_v32, %v1788_v49 }
 0x464   : > { %v1948_v4 = vadd.f32 %v1872_v34, %v1800_v18  ;;  %v1874_v41 = vpop.f32.mrb[15].mxu0  ;;  %v1945_v59 = vpop.f32.mrb[15].mxu1  ;;  %v1950_v28 = vadd.f32 %v1943_v36, %v1802_v7 }
 0x465   : > { %v1949_v3 = vadd.f32 %v1874_v41, %v1801_v44  ;;  %2807 = vtanh.f32 %v1790_v56  ;;  %v1799_v30 = vsel %vm1797_vm14, %v1790_v56, %v3881_v42  ;;  %v1951_v25 = vadd.f32 %v1945_v59, %v1803_v16 }
 0x466   : > { %v2131_v31 = vmul.f32 -1.442695, %v1948_v4  ;;  %1984 = vst [vmem:[#allocation3] sm:$0xff] %v1799_v30  ;;  %v2133_v22 = vmul.f32 -1.442695, %v1950_v28 }
 0x467   : > { %v2132_v48 = vmul.f32 -1.442695, %v1949_v3 }
 0x468   : > { %2809 = vpow2.f32 %v2131_v31 }
 0x469   : > { %2811 = vpow2.f32 %v2132_v48 }
 0x46a   : > { %2813 = vtanh.f32 %v1951_v25 }
 0x46b   : > { %2815 = vpow2.f32 %v2133_v22 }
 0x46f   : > { %v2808_v5 = vpop.eup %2807 }
 0x470   : > { %v1792_v54 = vmul.f32 %v2808_v5, %v2806_v0 }
 0x472   : > { %v2810_v60 = vpop.eup %2809  ;;  %v1798_v33 = vsel %vm1797_vm14, %v1792_v54, %v3887_v51 }
 0x473   : > { %v1961_v35 = vadd.f32 1.0, %v2810_v60  ;;  %v2812_v42 = vpop.eup %2811  ;;  %1983 = vst [vmem:[#allocation2] sm:$0xff] %v1798_v33 }
 0x474   : > { %v1962_v8 = vadd.f32 1.0, %v2812_v42  ;;  %v2814_v10 = vpop.eup %2813 }
 0x475   : > { %2817 = vrcp.f32 %v1961_v35  ;;  %v2816_v37 = vpop.eup %2815 }
 0x476   : > { %2819 = vrcp.f32 %v1962_v8  ;;  %v1963_v52 = vadd.f32 1.0, %v2816_v37 }
 0x478   : > { %2821 = vrcp.f32 %v1963_v52 }
 0x47f   : > { %v2818_v58 = vpop.eup %2817 }
 0x480   : > { %v1972_v63 = vmul.f32 %v2818_v58, %v2814_v10  ;;  %v2820_v38 = vpop.eup %2819 }
 0x481   : > { %v1971_v39 = vmul.f32 %v2820_v38, %v3916_v11 }
 0x482   : > { %v2822_v1 = vpop.eup %2821 }
 0x483   : > { %v1973_v55 = vadd.f32 %v1972_v63, %v1971_v39 }
 0x485   : > { %2823 = vtanh.f32 %v1973_v55  ;;  %v1982_v51 = vsel %vm1980_vm15, %v1973_v55, %v3916_v11 }
 0x486   : > { %1986 = vst [vmem:[#allocation5] sm:$0xff] %v1982_v51  ;;  %v1993_v50 = vadd.f32 (!%p2134_p12), %v1982_v51, %v1799_v30 }
 0x488   : > { %1994 = vst [vmem:[%s3979_s6] sm:$0xff] (!%p2134_p12), %v1993_v50 }
 0x48d   : > { %1990 = sbr.rel (%p2134_p12) target bundleno = 1174 (0x496), region = 94 }
 0x48f   : > { %v2824_v17 = vpop.eup %2823 }
 0x490   : > { %v1975_v20 = vmul.f32 %v2824_v17, %v2822_v1 }
 0x492   : > { %v1981_v46 = vsel %vm1980_vm15, %v1975_v20, %v3930_v57 }
 0x493   : > { %1985 = vst [vmem:[#allocation4] sm:$0xff] %v1981_v46  ;;  %v1991_v9 = vadd.f32 (!%p2134_p12), %v1981_v46, %v1798_v33 }
 0x495   : > { %1992 = vst [vmem:[%s3978_s5] sm:$0xff] %v1991_v9 }
 0x496 PF: > { %p14_p13 = scmp.ge.s32.totalorder %s2932_s27, 5   ;;  %s4135_s21 = smov %s2851_s22 }
 0x497   : > { %s4136_s22 = smov %s2951_s11  ;;  %s4137_s23 = smov %s2859_s24 }
 0x498   : > { %s4138_s24 = smov %s2942_s7  ;;  %s4139_s25 = smov %s2932_s27 }
 0x499   :  { %16 = sbr.rel (!%p14_p13) target bundleno = 3 (0x3), region = 147 }

</bundles_post_ra>
